<compile_context>
chip_gen: v5e
topology: v5e:2x2
jax: 0.10.0
libtpu: 0.0.40
codegen_flags: <defaults>
</compile_context>

<pallas_src>
import functools

import jax
import jax.numpy as jnp
from jax import lax
from jax.experimental import pallas as pl
from jax.experimental.pallas import tpu as pltpu


_SQRT_HALF = 0.7071067811865476  # 1/sqrt(2): multiply instead of divide (cheaper on VPU)


def _round_up(a, b):
    return -(-a // b) * b


def _vmem_limit_bytes():
    """Per-generation scoped-VMEM budget (v7x only has 64 MiB physical)."""
    cap = 128 * 1024 * 1024
    try:
        cap = int(getattr(pltpu.get_tpu_info(), "vmem_capacity_bytes", cap)) or cap
    except Exception:
        cap = 64 * 1024 * 1024  # conservative fallback
    return int(min(cap * 6 // 10, 96 * 1024 * 1024))


def _make_kernel(K, stride, TH, Wout, Cin, Cout):
    """Fused conv+BN+GELU kernel with static tap/tiling parameters."""

    def dsl(start, size):
        if stride == 1:
            return pl.ds(start, size)
        return pl.ds(start, size, stride=stride)

    row_step = TH * stride

    def kernel(x_ref, w_ref, shift_ref, o_ref):
        # x_ref:     (Hp, Wp, Cin)        zero-padded bf16 input of batch n (resident)
        # w_ref:     (K*K*Cin, Cout)      bf16 conv taps with BN scale folded in
        # shift_ref: (1, Cout)            f32 folded BN shift
        # o_ref:     (TH, Wout, Cout)     output rows [hb*TH, hb*TH+TH)
        hb = pl.program_id(1)
        h_in0 = hb * row_step
        if row_step % 8 == 0:
            h_in0 = pl.multiple_of(h_in0, 8)  # aligned sublane loads for tap slices

        # Build the fused LHS from K*K shifted slices of the resident block (in VMEM),
        # concatenated along the channel axis -> one contraction of depth K*K*Cin.
        taps = []
        for kh in range(K):            # static, small (K*K) — only builds the LHS
            for kw in range(K):
                taps.append(x_ref[dsl(h_in0 + kh, TH), dsl(kw, Wout), :])
        lhs = jnp.concatenate(taps, axis=-1).reshape(TH * Wout, K * K * Cin)

        # One MXU matmul over the whole receptive field; f32 accumulation in the MXU.
        acc = jnp.dot(lhs, w_ref[...], preferred_element_type=jnp.float32)

        # BN shift (scale already folded into weights) + exact (erf) GELU, f32 epilogue.
        y = acc + shift_ref[...]
        out = 0.5 * y * (1.0 + lax.erf(y * _SQRT_HALF))
        o_ref[...] = out.reshape(TH, Wout, Cout).astype(o_ref.dtype)

    return kernel


@functools.partial(jax.jit, static_argnames=("kernel_size", "stride", "padding"))
def conv_module_forward(x, weight, gamma, beta, running_mean, running_var,
                        kernel_size, stride, padding):
    """x: (N, Cin, H, W) NCHW f32. weight: (Cout, Cin, K, K). Returns NCHW output."""
    N, Cin, H, W = x.shape
    Cout = weight.shape[0]
    K = kernel_size
    eps = 1e-5

    Hout = (H + 2 * padding - K) // stride + 1
    Wout = (W + 2 * padding - K) // stride + 1

    # ---- fold BN (inference) into weights (scale) + per-channel shift ----
    inv_std = 1.0 / jnp.sqrt(running_var + eps)
    scale = gamma * inv_std                                    # (Cout,)
    shift = beta - running_mean * scale                        # (Cout,)
    w_f = weight * scale[:, None, None, None]                  # (Cout, Cin, K, K)
    # Row order (kh, kw, cin) matches the LHS tap-concat order inside the kernel.
    w_flat = jnp.transpose(w_f, (2, 3, 1, 0)).reshape(K * K * Cin, Cout)
    w_flat = w_flat.astype(jnp.bfloat16)                       # bf16 MXU operands
    shift_p = shift.reshape(1, Cout).astype(jnp.float32)

    # ---- tile output rows: aim for >=~512 matmul rows, clamp by a VMEM estimate ----
    vmem_limit = _vmem_limit_bytes()
    target_rows = 512
    TH = max(1, min(Hout, -(-target_rows // max(1, Wout))))
    # lane/sublane-padded VMEM estimates (bf16 resident input is double-buffered)
    Hp_est = H + 2 * padding + K
    resident_in = 2 * Hp_est * _round_up(W + 2 * padding, 16) * 128 * 2
    per_th_row = _round_up(Wout, 8) * 128 * (2 + 4 + 2 * 4)    # lhs + acc + 2x out block
    budget = max(per_th_row, vmem_limit // 2 - resident_in)
    TH = max(1, min(TH, budget // per_th_row))
    HB = -(-Hout // TH)
    Hout_pad = HB * TH

    # ---- NHWC + spatial zero-pad (+extra rows so padded H blocks stay in range) ----
    x_nhwc = jnp.transpose(x, (0, 2, 3, 1))                    # (N, H, W, Cin)
    Hp_need = (Hout_pad - 1) * stride + K
    extra_h = max(0, Hp_need - (H + 2 * padding))
    xp = jnp.pad(x_nhwc, ((0, 0), (padding, padding + extra_h),
                          (padding, padding), (0, 0)))
    xp = xp.astype(jnp.bfloat16)                               # bf16 MXU operands
    Hp, Wp = xp.shape[1], xp.shape[2]

    kernel = _make_kernel(K, stride, TH, Wout, Cin, Cout)

    out = pl.pallas_call(
        kernel,
        out_shape=jax.ShapeDtypeStruct((N, Hout_pad, Wout, Cout), x.dtype),
        grid_spec=pltpu.PrefetchScalarGridSpec(
            num_scalar_prefetch=0,
            grid=(N, HB),
            in_specs=[
                # full padded feature map of batch n, resident across the hb loop
                pl.BlockSpec((None, Hp, Wp, Cin), lambda n, hb: (n, 0, 0, 0)),
                # resident folded weights / shift (constant block index)
                pl.BlockSpec((K * K * Cin, Cout), lambda n, hb: (0, 0)),
                pl.BlockSpec((1, Cout), lambda n, hb: (0, 0)),
            ],
            # real Cout in HBM (masked vst for small Cout beats 16x write traffic)
            out_specs=pl.BlockSpec((None, TH, Wout, Cout),
                                   lambda n, hb: (n, hb, 0, 0)),
        ),
        compiler_params=pltpu.CompilerParams(
            dimension_semantics=("parallel", "parallel"),
            vmem_limit_bytes=vmem_limit,
        ),
        cost_estimate=pl.CostEstimate(
            flops=2 * N * Hout * Wout * Cout * K * K * Cin,
            transcendentals=N * Hout * Wout * Cout,
            bytes_accessed=(N * Hp * Wp * Cin * 2
                            + K * K * Cin * Cout * 2
                            + Cout * 4
                            + N * Hout_pad * Wout * Cout * 4),
        ),
    )(xp, w_flat, shift_p)

    out = out[:, :Hout]                                        # drop row padding (if any)
    return jnp.transpose(out, (0, 3, 1, 2))                    # back to NCHW


def _reference(x, weight, gamma, beta, running_mean, running_var, stride, padding):
    eps = 1e-5
    y = lax.conv_general_dilated(
        x, weight,
        window_strides=(stride, stride),
        padding=[(padding, padding), (padding, padding)],
        dimension_numbers=("NCHW", "OIHW", "NCHW"),
    )
    scale = (gamma / jnp.sqrt(running_var + eps)).reshape(1, -1, 1, 1)
    shift = (beta - running_mean * gamma / jnp.sqrt(running_var + eps)).reshape(1, -1, 1, 1)
    y = y * scale + shift
    return 0.5 * y * (1.0 + lax.erf(y / jnp.sqrt(2.0)))


if __name__ == "__main__":
    # ConvModule(in_dim=4, out_dim=8, kernal_size=3, stride=1, padding=1) on (2,4,16,16).
    N, Cin, H, W = 2, 4, 16, 16
    Cout, K, stride, padding = 8, 3, 1, 1

    key = jax.random.PRNGKey(0)
    kx, kw, kg, kb, km, kv = jax.random.split(key, 6)

    x = jax.random.normal(kx, (N, Cin, H, W), dtype=jnp.float32)
    weight = jax.random.normal(kw, (Cout, Cin, K, K), dtype=jnp.float32) * 0.1
    gamma = 1.0 + 0.1 * jax.random.normal(kg, (Cout,), dtype=jnp.float32)
    beta = 0.1 * jax.random.normal(kb, (Cout,), dtype=jnp.float32)
    running_mean = 0.1 * jax.random.normal(km, (Cout,), dtype=jnp.float32)
    running_var = jnp.abs(1.0 + 0.1 * jax.random.normal(kv, (Cout,), dtype=jnp.float32))

    out = conv_module_forward(x, weight, gamma, beta, running_mean, running_var,
                              kernel_size=K, stride=stride, padding=padding)
    out = jax.block_until_ready(out)

    ref = _reference(x, weight, gamma, beta, running_mean, running_var, stride, padding)
    assert out.shape == (N, Cout, H, W), out.shape
    # bf16 MXU operands (f32 accumulation) => looser tolerance than a pure-f32 path.
    assert jnp.allclose(out, ref, atol=5e-2, rtol=5e-2), float(jnp.max(jnp.abs(out - ref)))

    print("KERNEL_OK")
</pallas_src>

<mosaic_0001>
module attributes {stable_mosaic.version = 11 : i64} {
  func.func @kernel(%arg0: i32, %arg1: i32, %arg2: memref<1x18x18x4xbf16, #tpu.memory_space<vmem>>, %arg3: memref<36x8xbf16, #tpu.memory_space<vmem>>, %arg4: memref<1x8xf32, #tpu.memory_space<vmem>>, %arg5: memref<1x16x16x8xf32, #tpu.memory_space<vmem>>) attributes {dimension_semantics = [#tpu.dimension_semantics<parallel>, #tpu.dimension_semantics<parallel>], iteration_bounds = array<i64: 2, 1>, scalar_prefetch = 0 : i64, scratch_operands = 0 : i64, tpu.core_type = #tpu.core_type<tc>, window_params = [{transform_indices = @transform_0, window_bounds = array<i64: 1, 18, 18, 4>}, {pipeline_mode = #tpu.pipeline_mode<synchronous>, transform_indices = @transform_1, window_bounds = array<i64: 36, 8>}, {pipeline_mode = #tpu.pipeline_mode<synchronous>, transform_indices = @transform_2, window_bounds = array<i64: 1, 8>}, {transform_indices = @transform_3, window_bounds = array<i64: 1, 16, 16, 8>}]} {
    %c16_i32 = arith.constant 16 : i32
    %0 = arith.muli %arg1, %c16_i32 : i32
    %1 = tpu.assume_multiple %0, 8 : i32
    %c0_i32 = arith.constant 0 : i32
    %2 = arith.addi %1, %c0_i32 : i32
    %c0 = arith.constant 0 : index
    %3 = arith.index_cast %2 : i32 to index
    %c0_0 = arith.constant 0 : index
    %c0_1 = arith.constant 0 : index
    %4 = vector.load %arg2[%c0, %3, %c0_0, %c0_1] : memref<1x18x18x4xbf16, #tpu.memory_space<vmem>>, vector<1x16x16x4xbf16>
    %5 = vector.shape_cast %4 : vector<1x16x16x4xbf16> to vector<16x16x4xbf16>
    %c0_i32_2 = arith.constant 0 : i32
    %6 = arith.addi %1, %c0_i32_2 : i32
    %c0_3 = arith.constant 0 : index
    %7 = arith.index_cast %6 : i32 to index
    %c1 = arith.constant 1 : index
    %c0_4 = arith.constant 0 : index
    %8 = vector.load %arg2[%c0_3, %7, %c1, %c0_4] : memref<1x18x18x4xbf16, #tpu.memory_space<vmem>>, vector<1x16x16x4xbf16>
    %9 = vector.shape_cast %8 : vector<1x16x16x4xbf16> to vector<16x16x4xbf16>
    %c0_i32_5 = arith.constant 0 : i32
    %10 = arith.addi %1, %c0_i32_5 : i32
    %c0_6 = arith.constant 0 : index
    %11 = arith.index_cast %10 : i32 to index
    %c2 = arith.constant 2 : index
    %c0_7 = arith.constant 0 : index
    %12 = vector.load %arg2[%c0_6, %11, %c2, %c0_7] : memref<1x18x18x4xbf16, #tpu.memory_space<vmem>>, vector<1x16x16x4xbf16>
    %13 = vector.shape_cast %12 : vector<1x16x16x4xbf16> to vector<16x16x4xbf16>
    %c1_i32 = arith.constant 1 : i32
    %14 = arith.addi %1, %c1_i32 : i32
    %c0_8 = arith.constant 0 : index
    %15 = arith.index_cast %14 : i32 to index
    %c0_9 = arith.constant 0 : index
    %c0_10 = arith.constant 0 : index
    %16 = vector.load %arg2[%c0_8, %15, %c0_9, %c0_10] : memref<1x18x18x4xbf16, #tpu.memory_space<vmem>>, vector<1x16x16x4xbf16>
    %17 = vector.shape_cast %16 : vector<1x16x16x4xbf16> to vector<16x16x4xbf16>
    %c1_i32_11 = arith.constant 1 : i32
    %18 = arith.addi %1, %c1_i32_11 : i32
    %c0_12 = arith.constant 0 : index
    %19 = arith.index_cast %18 : i32 to index
    %c1_13 = arith.constant 1 : index
    %c0_14 = arith.constant 0 : index
    %20 = vector.load %arg2[%c0_12, %19, %c1_13, %c0_14] : memref<1x18x18x4xbf16, #tpu.memory_space<vmem>>, vector<1x16x16x4xbf16>
    %21 = vector.shape_cast %20 : vector<1x16x16x4xbf16> to vector<16x16x4xbf16>
    %c1_i32_15 = arith.constant 1 : i32
    %22 = arith.addi %1, %c1_i32_15 : i32
    %c0_16 = arith.constant 0 : index
    %23 = arith.index_cast %22 : i32 to index
    %c2_17 = arith.constant 2 : index
    %c0_18 = arith.constant 0 : index
    %24 = vector.load %arg2[%c0_16, %23, %c2_17, %c0_18] : memref<1x18x18x4xbf16, #tpu.memory_space<vmem>>, vector<1x16x16x4xbf16>
    %25 = vector.shape_cast %24 : vector<1x16x16x4xbf16> to vector<16x16x4xbf16>
    %c2_i32 = arith.constant 2 : i32
    %26 = arith.addi %1, %c2_i32 : i32
    %c0_19 = arith.constant 0 : index
    %27 = arith.index_cast %26 : i32 to index
    %c0_20 = arith.constant 0 : index
    %c0_21 = arith.constant 0 : index
    %28 = vector.load %arg2[%c0_19, %27, %c0_20, %c0_21] : memref<1x18x18x4xbf16, #tpu.memory_space<vmem>>, vector<1x16x16x4xbf16>
    %29 = vector.shape_cast %28 : vector<1x16x16x4xbf16> to vector<16x16x4xbf16>
    %c2_i32_22 = arith.constant 2 : i32
    %30 = arith.addi %1, %c2_i32_22 : i32
    %c0_23 = arith.constant 0 : index
    %31 = arith.index_cast %30 : i32 to index
    %c1_24 = arith.constant 1 : index
    %c0_25 = arith.constant 0 : index
    %32 = vector.load %arg2[%c0_23, %31, %c1_24, %c0_25] : memref<1x18x18x4xbf16, #tpu.memory_space<vmem>>, vector<1x16x16x4xbf16>
    %33 = vector.shape_cast %32 : vector<1x16x16x4xbf16> to vector<16x16x4xbf16>
    %c2_i32_26 = arith.constant 2 : i32
    %34 = arith.addi %1, %c2_i32_26 : i32
    %c0_27 = arith.constant 0 : index
    %35 = arith.index_cast %34 : i32 to index
    %c2_28 = arith.constant 2 : index
    %c0_29 = arith.constant 0 : index
    %36 = vector.load %arg2[%c0_27, %35, %c2_28, %c0_29] : memref<1x18x18x4xbf16, #tpu.memory_space<vmem>>, vector<1x16x16x4xbf16>
    %37 = vector.shape_cast %36 : vector<1x16x16x4xbf16> to vector<16x16x4xbf16>
    %38 = tpu.concatenate %5, %9, %13, %17, %21, %25, %29, %33, %37 in 2 : vector<16x16x4xbf16>, vector<16x16x4xbf16>, vector<16x16x4xbf16>, vector<16x16x4xbf16>, vector<16x16x4xbf16>, vector<16x16x4xbf16>, vector<16x16x4xbf16>, vector<16x16x4xbf16>, vector<16x16x4xbf16> -> vector<16x16x36xbf16>
    %39 = vector.shape_cast %38 : vector<16x16x36xbf16> to vector<256x36xbf16>
    %c0_30 = arith.constant 0 : index
    %c0_31 = arith.constant 0 : index
    %40 = vector.load %arg3[%c0_30, %c0_31] : memref<36x8xbf16, #tpu.memory_space<vmem>>, vector<36x8xbf16>
    %cst = arith.constant dense<0.000000e+00> : vector<256x8xf32>
    %41 = tpu.matmul %39, %40, %cst {dimension_numbers = #tpu.dot_dimension_numbers<[1], [0], [0], [1], [0, 0, 1, 1], [], []>} : vector<256x36xbf16>, vector<36x8xbf16>, vector<256x8xf32> -> vector<256x8xf32>
    %c0_32 = arith.constant 0 : index
    %c0_33 = arith.constant 0 : index
    %42 = vector.load %arg4[%c0_32, %c0_33] : memref<1x8xf32, #tpu.memory_space<vmem>>, vector<1x8xf32>
    %43 = vector.broadcast %42 : vector<1x8xf32> to vector<256x8xf32>
    %44 = arith.addf %41, %43 : vector<256x8xf32>
    %cst_34 = arith.constant 5.000000e-01 : f32
    %45 = vector.broadcast %cst_34 : f32 to vector<256x8xf32>
    %46 = arith.mulf %45, %44 : vector<256x8xf32>
    %cst_35 = arith.constant 0.707106769 : f32
    %47 = vector.broadcast %cst_35 : f32 to vector<256x8xf32>
    %48 = arith.mulf %44, %47 : vector<256x8xf32>
    %49 = math.erf %48 : vector<256x8xf32>
    %cst_36 = arith.constant 1.000000e+00 : f32
    %50 = vector.broadcast %cst_36 : f32 to vector<256x8xf32>
    %51 = arith.addf %50, %49 : vector<256x8xf32>
    %52 = arith.mulf %46, %51 : vector<256x8xf32>
    %53 = vector.shape_cast %52 : vector<256x8xf32> to vector<16x16x8xf32>
    %c0_37 = arith.constant 0 : index
    %c0_38 = arith.constant 0 : index
    %c0_39 = arith.constant 0 : index
    %c0_40 = arith.constant 0 : index
    %54 = vector.load %arg5[%c0_37, %c0_38, %c0_39, %c0_40] : memref<1x16x16x8xf32, #tpu.memory_space<vmem>>, vector<1x16x16x8xf32>
    %55 = vector.shape_cast %54 : vector<1x16x16x8xf32> to vector<16x16x8xf32>
    %56 = vector.shape_cast %53 : vector<16x16x8xf32> to vector<1x16x16x8xf32>
    tpu.vector_store %arg5[%c0_37, %c0_38, %c0_39, %c0_40], %56 {strides = array<i32>} : memref<1x16x16x8xf32, #tpu.memory_space<vmem>>, vector<1x16x16x8xf32>,
    return
  }
  func.func @transform_0(%arg0: i32, %arg1: i32) -> (i32, i32, i32, i32) {
    %c0_i32 = arith.constant 0 : i32
    %c0_i32_0 = arith.constant 0 : i32
    %c0_i32_1 = arith.constant 0 : i32
    %c0_i32_2 = arith.constant 0 : i32
    return %arg0, %c0_i32, %c0_i32_0, %c0_i32_1 : i32, i32, i32, i32
  }
  func.func @transform_1(%arg0: i32, %arg1: i32) -> (i32, i32) {
    %c0_i32 = arith.constant 0 : i32
    %c0_i32_0 = arith.constant 0 : i32
    %c0_i32_1 = arith.constant 0 : i32
    return %c0_i32, %c0_i32_0 : i32, i32
  }
  func.func @transform_2(%arg0: i32, %arg1: i32) -> (i32, i32) {
    %c0_i32 = arith.constant 0 : i32
    %c0_i32_0 = arith.constant 0 : i32
    %c0_i32_1 = arith.constant 0 : i32
    return %c0_i32, %c0_i32_0 : i32, i32
  }
  func.func @transform_3(%arg0: i32, %arg1: i32) -> (i32, i32, i32, i32) {
    %c0_i32 = arith.constant 0 : i32
    %c0_i32_0 = arith.constant 0 : i32
    %c0_i32_1 = arith.constant 0 : i32
    return %arg0, %arg1, %c0_i32, %c0_i32_0 : i32, i32, i32, i32
  }
}

</mosaic_0001>

<bundles_post_ra>
// kernel: conv_module_forward.1
= control target key start
LH: loop header
LB: loop body
LE: loop exit
PB: predicated region body
PF: predicated region fallthrough
CT: control target
= control target key end

     0   :  { %s4485_s12 = smov 0   ;;  %s4487_s13 = smov 0   ;;  %s6859_s0 = inlined_call_operand.vmem [shape: bf16[2,18,18,4], index: 0, kind: input, shape index: {}]   ;;  %s6860_s1 = inlined_call_operand.vmem [shape: bf16[36,8], index: 1, kind: input, shape index: {}]   ;;  %s6861_s2 = inlined_call_operand.vmem [shape: f32[1,8], index: 2, kind: input, shape index: {}]   ;;  %s6862_s3 = inlined_call_operand.vmem [shape: f32[2,16,16,8], index: 3, kind: output, shape index: {}]  }
   0x1   :  { %s4489_s14 = smov 0  }
   0x2 LB: > { %s25_s15 = sadd.s32 1, %s4451_s13  ;;  %p3862_p0 = scmp.ge.s32.totalorder %s4455_s14, 1  ;;  %s4455_s14 = sphi %s4489_s14, %s13_s14   ;;  %s4451_s13 = sphi %s4487_s13, %s6904_s13   ;;  %s4447_s12 = sphi %s4485_s12, %s6903_s12  }
   0x3   : > { %p27_p1 = scmp.ge.s32.totalorder %s25_s15, 2  ;;  %p151_p2 = scmp.lt.s32.totalorder %s4455_s14, 3 }
   0x5   : > { %s6906_s15 = smov (%p27_p1, %s25_s15), 0  ;;  %p152_p3 = pnand %p3862_p0, %p151_p2 }
   0x6   : > { %p180_p4 = scmp.lt.s32.totalorder (!%p152_p3), %s4447_s12, 1  ;;  %s4457_s20 = smov (!%p152_p3), 4  }
   0x7   : > { %155 = sbr.rel (%p152_p3) target bundleno = 771 (0x303), region = 32  ;;  %s4458_s21 = smov (!%p152_p3), 8  }
   0x8   : > { %s4459_s22 = smov (!%p152_p3), 12   ;;  %s4460_s23 = smov (!%p152_p3), 16  }
   0x9   : > { %s4461_s24 = smov (!%p152_p3), 20   ;;  %s4462_s25 = smov (!%p152_p3), 28  }
   0xa   : > { %s4463_s26 = smov (!%p152_p3), 24   ;;  %s4464_s27 = smov (!%p152_p3), 32  }
   0xc   : > { %s6908_s12 = smov (!%p180_p4, %s4447_s12), 1  ;;  %vm529_vm0 = vsmask.f32 7424  ;;  %vm802_vm1 = vcmask 1046528   ;;  %vm1907_vm2 = vcmask 31744   ;;  %vm1940_vm3 = vcmask 64512  }
   0xd   : > { %s4255_s16 = smul.u32 216, %s6908_s12  ;;  %vm2228_vm4 = vcmask 1041408   ;;  %vm1973_vm5 = vcmask 97280   ;;  %vm2006_vm6 = vcmask 130048   ;;  %vm2039_vm7 = vcmask 162816   ;;  %s4052_s9 = sshll.u32 %s6908_s12, 8 }
   0xe   : > { %vm2072_vm8 = vcmask 195584   ;;  %vm2105_vm9 = vcmask 228352   ;;  %vm2138_vm10 = vcmask 261120   ;;  %vm2195_vm11 = vcmask 293888   ;;  %s5744_s12 = scalar_lea.vmem %s6862_s3, %s4052_s9 }
   0xf   : > { %s4509_s19 = scalar_lea.vmem %s6859_s0, %s4255_s16 }
  0x10   : > { %v4512_v0 = vld [vmem:[%s4509_s19 + $0x30] sm:$0xff]   ;;  %v237_v1 = vld [vmem:[%s4509_s19 + $0x38] sm:$0x1]  ;;  %v235_v6 = vld [vmem:[%s4509_s19 + $0x20] sm:$0x1] }
  0x11   : > { %v4516_v2 = vld [vmem:[%s4509_s19 + $0x18] sm:$0xff]   ;;  %v501_v3 = vunpack.c.l.b16 %v237_v1  ;;  %v579_v4 = vshrl.u32 %v4512_v0, 16  ;;  %v581_v5 = vshll.u32 %v4512_v0, 16  ;;  %v4056_v8 = vld [vmem:[%s4509_s19] sm:$0xff]   ;;  %v499_v9 = vunpack.c.l.b16 %v235_v6  ;;  %v233_v11 = vld [vmem:[%s4509_s19 + $0x8] sm:$0x1] }
  0x12   : > { %v555_v7 = vshrl.u32 %v4516_v2, 16  ;;  %v557_v10 = vshll.u32 %v4516_v2, 16  ;;  %v531_v12 = vshrl.u32 %v4056_v8, 16  ;;  %v533_v13 = vshll.u32 %v4056_v8, 16  ;;  %v4154_v14 = vld [vmem:[%s4509_s19 + $0x60] sm:$0xff]   ;;  %v4550_v42 = vld [vmem:[%s4509_s19 + $0x48] sm:$0xff]  }
  0x13   : > { %v4526_v15 = vpack.c.b16 %v501_v3, %v501_v3  ;;  %v583_v16 = vrot.slane %v581_v5, 1  ;;  %v497_v17 = vunpack.c.l.b16 %v233_v11  ;;  %v241_v18 = vld [vmem:[%s4509_s19 + $0x68] sm:$0x1]  ;;  %v627_v19 = vshrl.u32 %v4154_v14, 16  ;;  %v236_v30 = vld [vmem:[%s4509_s19 + $0x2c] sm:$0x1] }
  0x14   : > { %v4529_v20 = vpack.c.b16 %v499_v9, %v499_v9  ;;  %v559_v21 = vrot.slane %v557_v10, 1  ;;  %v535_v22 = vrot.slane %v533_v13, 1  ;;  %v505_v23 = vunpack.c.l.b16 %v241_v18  ;;  %v4532_v24 = vld [vmem:[%s4509_s19 + $0x24] sm:$0xff]   ;;  %v239_v35 = vld [vmem:[%s4509_s19 + $0x50] sm:$0x1]  ;;  %v4559_v50 = vld [vmem:[%s4509_s19 + $0x3c] sm:$0xff]  }
  0x15   : > { %v4535_v25 = vld [vmem:[%s4509_s19 + $0x24] sm:$0xf0]  ;;  %v584_v26 = vor.u32 %v583_v16, %v579_v4  ;;  %v586_v27 = vshll.u32 %v4526_v15, 16  ;;  %v4538_v28 = vpack.c.b16 %v497_v17, %v497_v17  ;;  %v629_v29 = vshll.u32 %v4154_v14, 16  ;;  %v4562_v51 = vld [vmem:[%s4509_s19 + $0x3c] sm:$0xf0] }
  0x16   : > { %v4541_v31 = vor.u32 %v559_v21, %v555_v7  ;;  %v562_v32 = vshll.u32 %v4529_v20, 16  ;;  %v536_v33 = vor.u32 %v535_v22, %v531_v12  ;;  %v4544_v34 = vpack.c.b16 %v505_v23, %v505_v23  ;;  %v238_v56 = vld [vmem:[%s4509_s19 + $0x44] sm:$0x1]  ;;  %v4572_v57 = vld [vmem:[%s4509_s19 + $0x54] sm:$0xff]   ;;  %v240_v3 = vld [vmem:[%s4509_s19 + $0x5c] sm:$0x1] }
  0x17   : > { %v588_v36 = vrot.slane %v586_v27, 1  ;;  %v538_v37 = vshll.u32 %v4538_v28, 16  ;;  %v631_v38 = vrot.slane %v629_v29, 1  ;;  %v500_v41 = vunpack.c.l.b16 %v236_v30  ;;  %v4575_v58 = vld [vmem:[%s4509_s19 + $0x54] sm:$0xf0]  ;;  %v4585_v4 = vld [vmem:[%s4509_s19 + $0xc] sm:$0xff]  }
  0x18   : > { %v564_v39 = vrot.slane %v562_v32, 1  ;;  %v634_v40 = vshll.u32 %v4544_v34, 16  ;;  %v503_v46 = vunpack.c.l.b16 %v239_v35  ;;  %v603_v54 = vshrl.u32 %v4550_v42, 16  ;;  %v4588_v5 = vld [vmem:[%s4509_s19 + $0xc] sm:$0xf0] }
  0x19   : > { %v589_v43 = vsel %vm529_vm0, %v584_v26, %v588_v36  ;;  %v540_v44 = vrot.slane %v538_v37, 1  ;;  %v632_v45 = vor.u32 %v631_v38, %v627_v19  ;;  %v4556_v49 = vpack.c.b16 %v500_v41, %v500_v41  ;;  %v234_v14 = vld [vmem:[%s4509_s19 + $0x14] sm:$0x1]  ;;  %v4600_v19 = vld [vmem:[%s4509_s19 + $0x84] sm:$0xff]  }
  0x1a   : > { %730 = vrot.lane.b32.xlu2 %v589_v43, %s4457_s20  ;;  %v565_v47 = vsel %vm529_vm0, %v4541_v31, %v564_v39  ;;  %v636_v48 = vrot.slane %v634_v40, 1  ;;  %v4566_v53 = vpack.c.b16 %v503_v46, %v503_v46  ;;  %v605_v55 = vshll.u32 %v4550_v42, 16  ;;  %v4603_v21 = vld [vmem:[%s4509_s19 + $0x84] sm:$0xf0]  ;;  %v243_v40 = vld [vmem:[%s4509_s19 + $0x80] sm:$0x1] }
  0x1b   : > { %726 = vrot.lane.b32.xlu1 %v565_v47, %s4457_s20  ;;  %v541_v52 = vsel %vm529_vm0, %v536_v33, %v540_v44  ;;  %v567_v60 = vshrl.u32 %v4532_v24, 16  ;;  %v569_v61 = vshll.u32 %v4532_v24, 16  ;;  %v574_v62 = vshll.u32 %v4556_v49, 16  ;;  %v244_v33 = vld [vmem:[%s4509_s19 + $0x8c] sm:$0x1] }
  0x1c   : > { %722 = vrot.lane.b32.xlu0 %v541_v52, %s4457_s20  ;;  %v637_v59 = vsel %vm529_vm0, %v632_v45, %v636_v48  ;;  %v607_v63 = vrot.slane %v605_v55, 1  ;;  %v610_v1 = vshll.u32 %v4566_v53, 16  ;;  %v502_v8 = vunpack.c.l.b16 %v238_v56  ;;  %v4624_v52 = vld [vmem:[%s4509_s19 + $0x78] sm:$0xff]  }
  0x1d   : > { %v571_v6 = vrot.slane %v569_v61, 1  ;;  %v576_v7 = vrot.slane %v574_v62, 1  ;;  %v504_v13 = vunpack.c.l.b16 %v240_v3  ;;  %v591_v17 = vshrl.u32 %v4559_v50, 16  ;;  %v4633_v61 = vld [vmem:[%s4509_s19 + $0x6c] sm:$0xf0] }
  0x1e   : > { %v4590_v9 = vor.u32 %v607_v63, %v603_v54  ;;  %v612_v10 = vrot.slane %v610_v1, 1  ;;  %v4592_v12 = vpack.c.b16 %v502_v8, %v502_v8  ;;  %v593_v18 = vshll.u32 %v4559_v50, 16  ;;  %v242_v62 = vld [vmem:[%s4509_s19 + $0x74] sm:$0x1] }
  0x1f   : > { %v572_v11 = vor.u32 %v571_v6, %v567_v60  ;;  %v4608_v26 = vpack.c.b16 %v504_v13, %v504_v13  ;;  %v615_v29 = vshrl.u32 %v4572_v57, 16  ;;  %v617_v30 = vshll.u32 %v4572_v57, 16  ;;  %v4630_v60 = vld [vmem:[%s4509_s19 + $0x6c] sm:$0xff]  }
  0x20   : > { %v613_v16 = vsel %vm529_vm0, %v4590_v9, %v612_v10  ;;  %v598_v23 = vshll.u32 %v4592_v12, 16  ;;  %v595_v27 = vrot.slane %v593_v18, 1  ;;  %v498_v32 = vunpack.c.l.b16 %v234_v14  ;;  %v247_v13 = vld [vmem:[%s4509_s19 + $0xb0] sm:$0x1] }
  0x21   : > { %v577_v22 = vsel %vm529_vm0, %v572_v11, %v576_v7  ;;  %v622_v36 = vshll.u32 %v4608_v26, 16  ;;  %v619_v38 = vrot.slane %v617_v30, 1  ;;  %v543_v43 = vshrl.u32 %v4585_v4, 16 }
  0x22   : > { %738 = vrot.lane.b32.xlu2 %v637_v59, %s4457_s20  ;;  %v600_v35 = vrot.slane %v598_v23, 1  ;;  %v596_v37 = vor.u32 %v595_v27, %v591_v17  ;;  %v4616_v39 = vpack.c.b16 %v498_v32, %v498_v32  ;;  %v545_v44 = vshll.u32 %v4585_v4, 16  ;;  %v4647_v17 = vld [vmem:[%s4509_s19 + $0xa8] sm:$0xff]  }
  0x23   : > { %728 = vrot.lane.b32.xlu1 %v577_v22, %s4457_s20  ;;  %v624_v41 = vrot.slane %v622_v36, 1  ;;  %v508_v45 = vunpack.c.l.b16 %v244_v33  ;;  %v620_v47 = vor.u32 %v619_v38, %v615_v29  ;;  %v507_v56 = vunpack.c.l.b16 %v243_v40  ;;  %v4655_v33 = vld [vmem:[%s4509_s19 + $0x9c] sm:$0xff]  }
  0x24   : > { %734 = vrot.lane.b32.xlu0 %v613_v16, %s4457_s20  ;;  %v601_v46 = vsel %vm529_vm0, %v596_v37, %v600_v35  ;;  %v550_v48 = vshll.u32 %v4616_v39, 16  ;;  %v547_v54 = vrot.slane %v545_v44, 1  ;;  %v651_v59 = vshrl.u32 %v4624_v52, 16  ;;  %v4658_v35 = vld [vmem:[%s4509_s19 + $0x9c] sm:$0xf0] }
  0x25   : > { %v4626_v55 = vpack.c.b16 %v508_v45, %v508_v45  ;;  %v625_v63 = vsel %vm529_vm0, %v620_v47, %v624_v41  ;;  %v663_v3 = vshrl.u32 %v4600_v19, 16  ;;  %v665_v6 = vshll.u32 %v4600_v19, 16  ;;  %v246_v41 = vld [vmem:[%s4509_s19 + $0xa4] sm:$0x1]  ;;  %v245_v47 = vld [vmem:[%s4509_s19 + $0x98] sm:$0x1] }
  0x26   : > { %v552_v1 = vrot.slane %v550_v48, 1  ;;  %v548_v7 = vor.u32 %v547_v54, %v543_v43  ;;  %v4641_v10 = vpack.c.b16 %v507_v56, %v507_v56  ;;  %v653_v11 = vshll.u32 %v4624_v52, 16 }
  0x27   : > { %v670_v8 = vshll.u32 %v4626_v55, 16  ;;  %v667_v14 = vrot.slane %v665_v6, 1  ;;  %v506_v16 = vunpack.c.l.b16 %v242_v62  ;;  %v511_v32 = vunpack.c.l.b16 %v247_v13 }
  0x28   : > { %v553_v18 = vsel %vm529_vm0, %v548_v7, %v552_v1  ;;  %v655_v23 = vrot.slane %v653_v11, 1  ;;  %v658_v27 = vshll.u32 %v4641_v10, 16  ;;  %v699_v38 = vshrl.u32 %v4647_v17, 16 }
  0x29   : > { %v672_v22 = vrot.slane %v670_v8, 1  ;;  %v668_v29 = vor.u32 %v667_v14, %v663_v3  ;;  %v4652_v30 = vpack.c.b16 %v506_v16, %v506_v16  ;;  %v701_v40 = vshll.u32 %v4647_v17, 16  ;;  %v4362_v3 = vld [vmem:[%s4509_s19 + $0xc] sm:$0xe] }
  0x2a   : > { %732 = vrot.lane.b32.xlu2 %v601_v46, %s4457_s20  ;;  %v4660_v36 = vor.u32 %v655_v23, %v651_v59  ;;  %v660_v37 = vrot.slane %v658_v27, 1  ;;  %v639_v44 = vshrl.u32 %v4630_v60, 16  ;;  %v641_v45 = vshll.u32 %v4630_v60, 16  ;;  %v4156_v59 = vld [vmem:[%s4509_s19 + $0x90] sm:$0xff]  }
  0x2b   : > { %736 = vrot.lane.b32.xlu1 %v625_v63, %s4457_s20  ;;  %v673_v43 = vsel %vm529_vm0, %v668_v29, %v672_v22  ;;  %v646_v46 = vshll.u32 %v4652_v30, 16  ;;  %v4672_v54 = vpack.c.b16 %v511_v32, %v511_v32  ;;  %v703_v56 = vrot.slane %v701_v40, 1 }
  0x2c   : > { %724 = vrot.lane.b32.xlu0 %v553_v18, %s4457_s20  ;;  %v661_v48 = vsel %vm529_vm0, %v4660_v36, %v660_v37  ;;  %v643_v62 = vrot.slane %v641_v45, 1  ;;  %v510_v1 = vunpack.c.l.b16 %v246_v41  ;;  %v509_v8 = vunpack.c.l.b16 %v245_v47  ;;  %v4690_v37 = vld [vmem:[%s4509_s19 + $0xb4] sm:$0xff]  }
  0x2d   : > { %v648_v63 = vrot.slane %v646_v46, 1  ;;  %v4677_v6 = vor.u32 %v703_v56, %v699_v38  ;;  %v706_v7 = vshll.u32 %v4672_v54, 16  ;;  %v677_v14 = vshll.u32 %v4156_v59, 16  ;;  %v4693_v38 = vld [vmem:[%s4509_s19 + $0xb4] sm:$0xf0] }
  0x2e   : > { %v644_v11 = vor.u32 %v643_v62, %v639_v44  ;;  %v4681_v13 = vpack.c.b16 %v510_v1, %v510_v1  ;;  %v4683_v18 = vpack.c.b16 %v509_v8, %v509_v8  ;;  %v675_v22 = vshrl.u32 %v4156_v59, 16  ;;  %v4175_v44 = vld [vmem:[%s4509_s19] sm:$0xe]  ;;  %v248_v56 = vld [vmem:[%s4509_s19 + $0xbc] sm:$0x1] }
  0x2f   : > { %v708_v16 = vrot.slane %v706_v7, 1  ;;  %v687_v27 = vshrl.u32 %v4655_v33, 16  ;;  %v689_v29 = vshll.u32 %v4655_v33, 16  ;;  %v679_v40 = vrot.slane %v677_v14, 1 }
  0x30   : > { %v649_v23 = vsel %vm529_vm0, %v644_v11, %v648_v63  ;;  %v694_v32 = vshll.u32 %v4681_v13, 16  ;;  %v682_v41 = vshll.u32 %v4683_v18, 16  ;;  %v807_v7 = vrot.slane %v4616_v39, 1  ;;  %v4365_v11 = vld [vmem:[%s4509_s19 + $0x24] sm:$0xe] }
  0x31   : > { %v709_v45 = vsel %vm529_vm0, %v4677_v6, %v708_v16  ;;  %v691_v46 = vrot.slane %v689_v29, 1  ;;  %v680_v59 = vor.u32 %v679_v40, %v675_v22  ;;  %v512_v8 = vunpack.c.l.b16 %v248_v56  ;;  %v4180_v22 = vld [vmem:[%s4509_s19 + $0x30] sm:$0xf0] }
  0x32   : > { %744 = vrot.lane.b32.xlu2 %v673_v43, %s4457_s20  ;;  %v4174_v43 = vld [vmem:[%s4509_s19] sm:$0xf0]  ;;  %v696_v47 = vrot.slane %v694_v32, 1  ;;  %v684_v62 = vrot.slane %v682_v41, 1  ;;  %v711_v29 = vshrl.u32 %v4690_v37, 16  ;;  %v713_v32 = vshll.u32 %v4690_v37, 16 }
  0x33   : > { %742 = vrot.lane.b32.xlu1 %v661_v48, %s4457_s20  ;;  %v4363_v48 = vor.u32 %v4362_v3, %v4588_v5  ;;  %v692_v63 = vor.u32 %v691_v46, %v687_v27  ;;  %v4176_v1 = vor.u32 %v4175_v44, %v4174_v43  ;;  %v804_v5 = vrot.slane %v4538_v28, 1  ;;  %v4181_v27 = vld [vmem:[%s4509_s19 + $0x30] sm:$0xe]  ;;  %v4178_v46 = vld [vmem:[%s4509_s19 + $0x18] sm:$0xe] }
  0x34   : > { %740 = vrot.lane.b32.xlu0 %v649_v23, %s4457_s20  ;;  %v685_v16 = vsel %vm529_vm0, %v680_v59, %v684_v62  ;;  %v4710_v3 = vpack.c.b16 %v512_v8, %v512_v8  ;;  %v715_v43 = vrot.slane %v713_v32, 1  ;;  %v4182_v44 = vor.u32 %v4181_v27, %v4180_v22  ;;  %v4371_v8 = vld [vmem:[%s4509_s19 + $0x3c] sm:$0xe] }
  0x35   : > { %v697_v14 = vsel %vm529_vm0, %v692_v63, %v696_v47  ;;  %v806_v23 = vrot.slane %v4363_v48, 1  ;;  %v803_v39 = vrot.slane %v4176_v1, 1  ;;  %v4368_v47 = vld [vmem:[%s4509_s19 + $0x54] sm:$0xe]  ;;  %v4366_v59 = vor.u32 %v4365_v11, %v4535_v25  ;;  %v4183_v11 = vld [vmem:[%s4509_s19 + $0x48] sm:$0xf0] }
  0x36   : > { %v718_v40 = vshll.u32 %v4710_v3, 16  ;;  %v716_v56 = vor.u32 %v715_v43, %v711_v29  ;;  %v816_v62 = vrot.slane %v4526_v15, 1  ;;  %v815_v1 = vrot.slane %v4182_v44, 1 }
  0x37   : > { %v808_v41 = vsel %vm802_vm1, %v806_v23, %v807_v7  ;;  %v805_v48 = vsel %vm802_vm1, %v803_v39, %v804_v5  ;;  %v810_v25 = vrot.slane %v4529_v20, 1  ;;  %v4184_v23 = vld [vmem:[%s4509_s19 + $0x48] sm:$0xe]  ;;  %v4369_v22 = vor.u32 %v4368_v47, %v4575_v58  ;;  %v4190_v58 = vld [vmem:[%s4509_s19 + $0x78] sm:$0xe] }
  0x38   : > { %v720_v28 = vrot.slane %v718_v40, 1  ;;  %v817_v15 = vsel %vm802_vm1, %v815_v1, %v816_v62  ;;  %v4185_v39 = vor.u32 %v4184_v23, %v4183_v11  ;;  %v825_v32 = vrot.slane %v4608_v26, 1  ;;  %v4187_v26 = vld [vmem:[%s4509_s19 + $0x60] sm:$0xe]  ;;  %v4380_v1 = vld [vmem:[%s4509_s19 + $0x84] sm:$0xe] }
  0x39   : > { %v824_v20 = vrot.slane %v4369_v22, 1  ;;  %v4372_v40 = vor.u32 %v4371_v8, %v4562_v51  ;;  %v822_v44 = vrot.slane %v4566_v53, 1  ;;  %v4377_v51 = vld [vmem:[%s4509_s19 + $0x9c] sm:$0xe]  ;;  %v831_v8 = vrot.slane %v4652_v30, 1 }
  0x3a   : > { %750 = vrot.lane.b32.xlu2 %v709_v45, %s4457_s20  ;;  %v4177_v45 = vld [vmem:[%s4509_s19 + $0x18] sm:$0xf0]  ;;  %v721_v63 = vsel %vm529_vm0, %v716_v56, %v720_v28  ;;  %v821_v43 = vrot.slane %v4185_v39, 1  ;;  %v4378_v23 = vor.u32 %v4377_v51, %v4658_v35  ;;  %v843_v22 = vrot.slane %v4681_v13, 1 }
  0x3b   : > { %748 = vrot.lane.b32.xlu1 %v697_v14, %s4457_s20  ;;  %v4179_v7 = vor.u32 %v4178_v46, %v4177_v45  ;;  %v812_v14 = vrot.slane %v4366_v59, 1  ;;  %v826_v45 = vsel %vm802_vm1, %v824_v20, %v825_v32  ;;  %v818_v28 = vrot.slane %v4372_v40, 1 }
  0x3c   : > { %746 = vrot.lane.b32.xlu0 %v685_v16, %s4457_s20  ;;  %v813_v16 = vrot.slane %v4556_v49, 1  ;;  %v4374_v49 = vld [vmem:[%s4509_s19 + $0x6c] sm:$0xe]  ;;  %v819_v46 = vrot.slane %v4592_v12, 1  ;;  %v823_v56 = vsel %vm802_vm1, %v821_v43, %v822_v44  ;;  %v834_v12 = vrot.slane %v4641_v10, 1 }
  0x3d   : > { %v809_v5 = vrot.slane %v4179_v7, 1  ;;  %v4375_v59 = vor.u32 %v4374_v49, %v4633_v61  ;;  %v4767_v10 = vld [vmem:[%s4509_s19 + $0x6c] sm:$0xff]   ;;  %v842_v39 = vrot.slane %v4378_v23, 1  ;;  %v4381_v35 = vor.u32 %v4380_v1, %v4603_v21  ;;  %v3906_v49 = vld [vmem:[%s4509_s19 + $0x74] sm:$0x1] }
  0x3e   : > { %v814_v27 = vsel %vm802_vm1, %v812_v14, %v813_v16  ;;  %v820_v62 = vsel %vm802_vm1, %v818_v28, %v819_v46  ;;  %v828_v14 = vrot.slane %v4544_v34, 1  ;;  %v4192_v16 = vld [vmem:[%s4509_s19 + $0x90] sm:$0xf0]  ;;  %v840_v20 = vrot.slane %v4683_v18, 1  ;;  %v4195_v43 = vld [vmem:[%s4509_s19 + $0xa8] sm:$0xf0] }
  0x3f   : > { %v811_v29 = vsel %vm802_vm1, %v809_v5, %v810_v25  ;;  %v830_v7 = vrot.slane %v4375_v59, 1  ;;  %v4193_v25 = vld [vmem:[%s4509_s19 + $0x90] sm:$0xe]  ;;  %v837_v32 = vrot.slane %v4626_v55, 1  ;;  %v844_v40 = vsel %vm802_vm1, %v842_v39, %v843_v22  ;;  %v4196_v44 = vld [vmem:[%s4509_s19 + $0xa8] sm:$0xe] }
  0x40   : > { %v4194_v30 = vor.u32 %v4193_v25, %v4192_v16  ;;  %v836_v13 = vrot.slane %v4381_v35, 1  ;;  %v1019_v21 = vunpack.c.l.b16 %v3906_v49  ;;  %v4197_v28 = vor.u32 %v4196_v44, %v4195_v43  ;;  %v4386_v1 = vld [vmem:[%s4509_s19 + $0x9c] sm:$0xe]  ;;  %v3970_v16 = vld [vmem:[%s4509_s19 + $0x80] sm:$0x1] }
  0x41   : > { %v832_v5 = vsel %vm802_vm1, %v830_v7, %v831_v8  ;;  %v3974_v44 = vld [vmem:[%s4509_s19 + $0xb0] sm:$0x1] }
  0x42   : > { %853 = vrot.lane.b32.xlu2 %v808_v41, %s4458_s21  ;;  %v4189_v41 = vld [vmem:[%s4509_s19 + $0x78] sm:$0xf0]  ;;  %v838_v55 = vsel %vm802_vm1, %v836_v13, %v837_v32  ;;  %v1035_v46 = vpack.c.b16 %v1019_v21, %v1019_v21  ;;  %v845_v59 = vrot.slane %v4197_v28, 1 }
  0x43   : > { %851 = vrot.lane.b32.xlu1 %v805_v48, %s4458_s21  ;;  %v4191_v47 = vor.u32 %v4190_v58, %v4189_v41  ;;  %v4186_v48 = vld [vmem:[%s4509_s19 + $0x60] sm:$0xf0]  ;;  %v4785_v41 = vld [vmem:[%s4509_s19 + $0xc] sm:$0xff]  }
  0x44   : > { %752 = vrot.lane.b32.xlu0 %v721_v63, %s4457_s20  ;;  %v4188_v53 = vor.u32 %v4187_v26, %v4186_v48  ;;  %v4788_v58 = vld [vmem:[%s4509_s19 + $0xc] sm:$0xf0]  ;;  %v3890_v48 = vld [vmem:[%s4509_s19 + $0x9c] sm:$0xff]  }
  0x45   : > { %v833_v63 = vrot.slane %v4191_v47, 1  ;;  %v1142_v47 = vshll.u32 %v4767_v10, 16  ;;  %v4385_v26 = vld [vmem:[%s4509_s19 + $0x9c] sm:$0xf0]  ;;  %v1190_v25 = vshll.u32 %v3890_v48, 16  ;;  %v1188_v22 = vshrl.u32 %v3890_v48, 16 }
  0x46   : > { %v827_v61 = vrot.slane %v4188_v53, 1  ;;  %v1140_v53 = vshrl.u32 %v4767_v10, 16 }
  0x47   : > { %v835_v11 = vsel %vm802_vm1, %v833_v63, %v834_v12  ;;  %v1147_v63 = vshll.u32 %v1035_v46, 16  ;;  %v3910_v12 = vld [vmem:[%s4509_s19 + $0xa4] sm:$0x1] }
  0x48   : > { %v829_v34 = vsel %vm802_vm1, %v827_v61, %v828_v14  ;;  %v1023_v8 = vunpack.c.l.b16 %v3910_v12 }
  0x4a   : > { %859 = vrot.lane.b32.xlu2 %v817_v15, %s4458_s21  ;;  %v4770_v15 = vld [vmem:[%s4509_s19 + $0x6c] sm:$0xf0] }
  0x4b   : > { %857 = vrot.lane.b32.xlu1 %v814_v27, %s4458_s21  ;;  %v4383_v27 = vld [vmem:[%s4509_s19 + $0xb4] sm:$0xe] }
  0x4c   : > { %855 = vrot.lane.b32.xlu0 %v811_v29, %s4458_s21  ;;  %v839_v29 = vrot.slane %v4194_v30, 1  ;;  %v4384_v18 = vor.u32 %v4383_v27, %v4693_v38  ;;  %v846_v38 = vrot.slane %v4672_v54, 1  ;;  %v1149_v54 = vrot.slane %v1147_v63, 1 }
  0x4d   : > { %v1531_v30 = vunpack.c.l.b16 %v3970_v16  ;;  %v1192_v27 = vrot.slane %v1190_v25, 1  ;;  %v1046_v25 = vshll.u32 %v4785_v41, 16 }
  0x4e   : > { %v848_v51 = vrot.slane %v4384_v18, 1  ;;  %v847_v61 = vsel %vm802_vm1, %v845_v59, %v846_v38  ;;  %v4828_v18 = vld [vmem:[%s4509_s19 + $0x3c] sm:$0xf0]  ;;  %v4234_v38 = vld [vmem:[%s4509_s19 + $0x78] sm:$0xf0] }
  0x4f   : > { %v4235_v59 = vld [vmem:[%s4509_s19 + $0x78] sm:$0xe] }
  0x52   : > { %865 = vrot.lane.b32.xlu2 %v826_v45, %s4458_s21  ;;  %v841_v45 = vsel %vm802_vm1, %v839_v29, %v840_v20  ;;  %v1547_v29 = vpack.c.b16 %v1531_v30, %v1531_v30 }
  0x53   : > { %863 = vrot.lane.b32.xlu1 %v823_v56, %s4458_s21  ;;  %v849_v56 = vrot.slane %v4710_v3, 1  ;;  %v4389_v3 = vld [vmem:[%s4509_s19 + $0x6c] sm:$0xe] }
  0x54   : > { %861 = vrot.lane.b32.xlu0 %v820_v62, %s4458_s21  ;;  %v1144_v62 = vrot.slane %v1142_v47, 1  ;;  %v1659_v43 = vshll.u32 %v1547_v29, 16  ;;  %v4241_v47 = vld [vmem:[%s4509_s19 + $0xa8] sm:$0xe] }
  0x55   : > { %v850_v7 = vsel %vm802_vm1, %v848_v51, %v849_v56  ;;  %v3902_v51 = vld [vmem:[%s4509_s19 + $0x44] sm:$0x1] }
  0x56   : > { %v1145_v14 = vor.u32 %v1144_v62, %v1140_v53  ;;  %v1661_v28 = vrot.slane %v1659_v43, 1  ;;  %v3898_v53 = vld [vmem:[%s4509_s19 + $0x14] sm:$0x1]  ;;  %v1015_v12 = vunpack.c.l.b16 %v3902_v51 }
  0x58   : > { %v1150_v23 = vsel %vm529_vm0, %v1145_v14, %v1149_v54  ;;  %v1662_v62 = vsel %vm529_vm0, %v4660_v36, %v1661_v28  ;;  %v1031_v14 = vpack.c.b16 %v1015_v12, %v1015_v12 }
  0x5a   : > { %871 = vrot.lane.b32.xlu2 %v835_v11, %s4458_s21  ;;  %v1039_v11 = vpack.c.b16 %v1023_v8, %v1023_v8 }
  0x5b   : > { %869 = vrot.lane.b32.xlu1 %v832_v5, %s4458_s21  ;;  %v4387_v5 = vor.u32 %v4386_v1, %v4385_v26  ;;  %v4236_v1 = vor.u32 %v4235_v59, %v4234_v38 }
  0x5c   : > { %867 = vrot.lane.b32.xlu0 %v829_v34, %s4458_s21  ;;  %v4390_v34 = vor.u32 %v4389_v3, %v4770_v15  ;;  %v1195_v39 = vshll.u32 %v1039_v11, 16  ;;  %v1352_v49 = vrot.slane %v1039_v11, 1  ;;  %v1340_v15 = vrot.slane %v1035_v46, 1  ;;  %v4240_v46 = vld [vmem:[%s4509_s19 + $0xa8] sm:$0xf0] }
  0x5d   : > { %v1351_v35 = vrot.slane %v4387_v5, 1  ;;  %v4242_v56 = vor.u32 %v4241_v47, %v4240_v46  ;;  %v1851_v11 = vrot.slane %v4236_v1, 1  ;;  %v3962_v47 = vld [vmem:[%s4509_s19 + $0x20] sm:$0x1] }
  0x5e   : > { %v1339_v32 = vrot.slane %v4390_v34, 1  ;;  %v1197_v13 = vrot.slane %v1195_v39, 1  ;;  %v1099_v39 = vshll.u32 %v1031_v14, 16  ;;  %v1523_v59 = vunpack.c.l.b16 %v3962_v47 }
  0x5f   : > { %v1353_v21 = vsel %vm802_vm1, %v1351_v35, %v1352_v49  ;;  %v1863_v8 = vrot.slane %v4242_v56, 1  ;;  %v1044_v49 = vshrl.u32 %v4785_v41, 16 }
  0x62   : > { %877 = vrot.lane.b32.xlu2 %v844_v40, %s4458_s21  ;;  %v1193_v40 = vor.u32 %v1192_v27, %v1188_v22 }
  0x63   : > { %875 = vrot.lane.b32.xlu1 %v841_v45, %s4458_s21  ;;  %v4825_v45 = vld [vmem:[%s4509_s19 + $0x3c] sm:$0xff]  }
  0x64   : > { %873 = vrot.lane.b32.xlu0 %v838_v55, %s4458_s21  ;;  %v1341_v55 = vsel %vm802_vm1, %v1339_v32, %v1340_v15  ;;  %v1094_v54 = vshll.u32 %v4825_v45, 16  ;;  %v1092_v22 = vshrl.u32 %v4825_v45, 16  ;;  %v1048_v32 = vrot.slane %v1046_v25, 1 }
  0x66   : > { %v1096_v27 = vrot.slane %v1094_v54, 1 }
  0x6a   : > { %963 = vrot.lane.b32.xlu2 %v4785_v41, %s4459_s22  ;;  %v1049_v41 = vor.u32 %v1048_v32, %v1044_v49  ;;  %v4222_v32 = vld [vmem:[%s4509_s19 + $0x18] sm:$0xf0] }
  0x6b   : > { %881 = vrot.lane.b32.xlu1 %v850_v7, %s4458_s21  ;;  %v1011_v7 = vunpack.c.l.b16 %v3898_v53 }
  0x6c   : > { %879 = vrot.lane.b32.xlu0 %v847_v61, %s4458_s21 }
  0x6d   : > { %v1027_v5 = vpack.c.b16 %v1011_v7, %v1011_v7  ;;  %v1328_v7 = vrot.slane %v1031_v14, 1 }
  0x6f   : > { %v1051_v15 = vshll.u32 %v1027_v5, 16 }
  0x71   : > { %v1053_v28 = vrot.slane %v1051_v15, 1  ;;  %v4223_v15 = vld [vmem:[%s4509_s19 + $0x18] sm:$0xe] }
  0x72   : > { %1251 = vrot.lane.b32.xlu2 %v1150_v23, %s4460_s23  ;;  %v1852_v23 = vrot.slane %v1547_v29, 1  ;;  %v4392_v29 = vld [vmem:[%s4509_s19 + $0x3c] sm:$0xe] }
  0x73   : > { %987 = vrot.lane.b32.xlu1 %v3890_v48, %s4459_s22  ;;  %v1535_v48 = vunpack.c.l.b16 %v3974_v44  ;;  %v4395_v44 = vld [vmem:[%s4509_s19 + $0xc] sm:$0xe]  ;;  %v1054_v56 = vsel %vm529_vm0, %v1049_v41, %v1053_v28  ;;  %v4393_v38 = vor.u32 %v4392_v29, %v4828_v18 }
  0x74   : > { %v4818_v20 = vpop.permute.xlu2 %730  ;;  %979 = vrot.lane.b32.xlu0 %v4767_v10, %s4459_s22  ;;  %v1198_v10 = vsel %vm529_vm0, %v1193_v40, %v1197_v13  ;;  %v1853_v35 = vsel %vm802_vm1, %v1851_v11, %v1852_v23  ;;  %v1097_v13 = vor.u32 %v1096_v27, %v1092_v22  ;;  %v4396_v53 = vor.u32 %v4395_v44, %v4788_v58  ;;  %v3911_v23 = vld [vmem:[%s4509_s19 + $0xb0] sm:$0x1]  ;;  %v4229_v22 = vld [vmem:[%s4509_s19 + $0x48] sm:$0xe]  ;;  %v3907_v27 = vld [vmem:[%s4509_s19 + $0x80] sm:$0x1] }
  0x75   : > { %v1551_v63 = vpack.c.b16 %v1535_v48, %v1535_v48  ;;  %v1327_v1 = vrot.slane %v4393_v38, 1  ;;  %v1316_v58 = vrot.slane %v1027_v5, 1  ;;  %v4228_v5 = vld [vmem:[%s4509_s19 + $0x48] sm:$0xf0]  ;;  %v4224_v44 = vor.u32 %v4223_v15, %v4222_v32  ;;  %v4926_v38 = vld [vmem:[%s4509_s19 + $0xb4] sm:$0xff]  }
  0x76   : > { %v1714_v32 = vshll.u32 %v4926_v38, 16 }
  0x77   : > { %v1864_v3 = vrot.slane %v1551_v63, 1  ;;  %v1707_v61 = vshll.u32 %v1551_v63, 16  ;;  %v1329_v54 = vsel %vm802_vm1, %v1327_v1, %v1328_v7  ;;  %v4937_v1 = vld [vmem:[%s4509_s19 + $0x84] sm:$0xf0] }
  0x79   : > { %v1865_v30 = vsel %vm802_vm1, %v1863_v8, %v1864_v3  ;;  %v1709_v34 = vrot.slane %v1707_v61, 1  ;;  %v1539_v8 = vpack.c.b16 %v1523_v59, %v1523_v59  ;;  %v1315_v3 = vrot.slane %v4396_v53, 1  ;;  %v4929_v59 = vld [vmem:[%s4509_s19 + $0xb4] sm:$0xf0] }
  0x7a   : > { %1387 = vrot.lane.b32.xlu2 %v1353_v21, %s4461_s24  ;;  %v1101_v21 = vrot.slane %v1099_v39, 1 }
  0x7b   : > { %1379 = vrot.lane.b32.xlu1 %v1341_v55, %s4461_s24  ;;  %v1710_v40 = vsel %vm529_vm0, %v4677_v6, %v1709_v34  ;;  %v3966_v55 = vld [vmem:[%s4509_s19 + $0x50] sm:$0x1]  ;;  %v1563_v25 = vshll.u32 %v1539_v8, 16  ;;  %v1317_v14 = vsel %vm802_vm1, %v1315_v3, %v1316_v58 }
  0x7c   : > { %v4836_v26 = vpop.permute.xlu2 %738  ;;  %1259 = vrot.lane.b32.xlu0 %v1198_v10, %s4460_s23  ;;  %v1102_v48 = vsel %vm529_vm0, %v1097_v13, %v1101_v21  ;;  %v1527_v51 = vunpack.c.l.b16 %v3966_v55  ;;  %v1020_v13 = vunpack.c.l.b16 %v3907_v27 }
  0x7d   : > { %v1565_v34 = vrot.slane %v1563_v25, 1 }
  0x7f   : > { %v1566_v29 = vsel %vm529_vm0, %v4541_v31, %v1565_v34 }
  0x82   : > { %1763 = vrot.lane.b32.xlu2 %v1662_v62, %s4462_s25  ;;  %v1543_v62 = vpack.c.b16 %v1527_v51, %v1527_v51  ;;  %v1827_v51 = vrot.slane %v4224_v44, 1 }
  0x83   : > { %1499 = vrot.lane.b32.xlu1 %v4647_v17, %s4463_s26 }
  0x84   : > { %v4849_v16 = vpop.permute.xlu2 %732  ;;  %1491 = vrot.lane.b32.xlu0 %v4624_v52, %s4463_s26  ;;  %v1611_v61 = vshll.u32 %v1543_v62, 16  ;;  %v1840_v47 = vrot.slane %v1543_v62, 1 }
  0x86   : > { %v1613_v11 = vrot.slane %v1611_v61, 1  ;;  %v3975_v61 = vld [vmem:[%s4509_s19 + $0xbc] sm:$0x1] }
  0x8a   : > { %1899 = vrot.lane.b32.xlu2 %v1865_v30, %s4464_s27 }
  0x8b   : > { %1891 = vrot.lane.b32.xlu1 %v1853_v35, %s4464_s27  ;;  %v1024_v35 = vunpack.c.l.b16 %v3911_v23  ;;  %v3971_v23 = vld [vmem:[%s4509_s19 + $0x8c] sm:$0x1] }
  0x8c   : > { %v4863_v43 = vpop.permute.xlu2 %744  ;;  %1771 = vrot.lane.b32.xlu0 %v1710_v40, %s4462_s25  ;;  %v4230_v40 = vor.u32 %v4229_v22, %v4228_v5  ;;  %v4210_v5 = vld [vmem:[%s4509_s19 + $0x78] sm:$0xf0]  ;;  %v4211_v22 = vld [vmem:[%s4509_s19 + $0x78] sm:$0xe] }
  0x8d   : > { %v4867_v10 = vpop.permute.xlu1 %726 }
  0x8e   : > { %v4870_v46 = vpop.permute.xlu0 %722  ;;  %v1839_v28 = vrot.slane %v4230_v40, 1 }
  0x90   : > { %v1841_v53 = vsel %vm802_vm1, %v1839_v28, %v1840_v47  ;;  %v1712_v47 = vshrl.u32 %v4926_v38, 16 }
  0x92   : > { %1243 = vrot.lane.b32.xlu2 %v1102_v48, %s4460_s23  ;;  %v4918_v48 = vpack.c.b16 %v1020_v13, %v1020_v13 }
  0x93   : > { %1235 = vrot.lane.b32.xlu1 %v1054_v56, %s4460_s23  ;;  %v1828_v56 = vrot.slane %v1539_v8, 1 }
  0x94   : > { %v4879_v63 = vpop.permute.xlu2 %750  ;;  %971 = vrot.lane.b32.xlu0 %v4825_v45, %s4459_s22  ;;  %v1159_v62 = vshll.u32 %v4918_v48, 16 }
  0x95   : > { %v4881_v12 = vpop.permute.xlu1 %728  ;;  %v1829_v7 = vsel %vm802_vm1, %v1827_v51, %v1828_v56  ;;  %v1716_v51 = vrot.slane %v1714_v32, 1 }
  0x96   : > { %v4885_v18 = vpop.permute.xlu0 %734  ;;  %v1161_v25 = vrot.slane %v1159_v62, 1 }
  0x98   : > { %v1162_v27 = vsel %vm529_vm0, %v4660_v36, %v1161_v25 }
  0x9a   : > { %1475 = vrot.lane.b32.xlu2 %v4516_v2, %s4463_s26  ;;  %v1614_v2 = vsel %vm529_vm0, %v4590_v9, %v1613_v11  ;;  %v4909_v9 = vpack.c.b16 %v1024_v35, %v1024_v35  ;;  %v4216_v11 = vld [vmem:[%s4509_s19 + $0xa8] sm:$0xf0]  ;;  %v4212_v35 = vor.u32 %v4211_v22, %v4210_v5  ;;  %v3899_v22 = vld [vmem:[%s4509_s19 + $0x20] sm:$0x1] }
  0x9b   : > { %1371 = vrot.lane.b32.xlu1 %v1329_v54, %s4461_s24 }
  0x9c   : > { %v854_v45 = vpop.permute.xlu2 %853  ;;  %1363 = vrot.lane.b32.xlu0 %v1317_v14, %s4461_s24 }
  0x9d   : > { %v737_v30 = vpop.permute.xlu1 %736 }
  0x9e   : > { %v725_v39 = vpop.permute.xlu0 %724  ;;  %v1923_v3 = vsel %vm1907_vm2, %v4572_v57, %v737_v30  ;;  %v1536_v57 = vunpack.c.l.b16 %v3975_v61 }
  0x9f   : > { %v1911_v49 = vsel %vm1907_vm2, %v4585_v4, %v725_v39  ;;  %v1917_v4 = vsel %vm1907_vm2, %v4512_v0, %v4818_v20  ;;  %v1207_v0 = vshll.u32 %v4909_v9, 16 }
  0xa0   : > { %v4907_v21 = vsel %vm1940_vm3, %v1911_v49, %v854_v45  ;;  %v4217_v45 = vld [vmem:[%s4509_s19 + $0xa8] sm:$0xe]  ;;  %v4960_v49 = vpack.c.b16 %v1536_v57, %v1536_v57 }
  0xa1   : > { %v1209_v8 = vrot.slane %v1207_v0, 1  ;;  %v4218_v39 = vor.u32 %v4217_v45, %v4216_v11  ;;  %v3903_v11 = vld [vmem:[%s4509_s19 + $0x50] sm:$0x1] }
  0xa2   : > { %1755 = vrot.lane.b32.xlu2 %v1614_v2, %s4462_s25  ;;  %v1532_v2 = vunpack.c.l.b16 %v3971_v23  ;;  %v1719_v56 = vshll.u32 %v4960_v49, 16  ;;  %v1016_v57 = vunpack.c.l.b16 %v3903_v11 }
  0xa3   : > { %1747 = vrot.lane.b32.xlu1 %v1566_v29, %s4462_s25  ;;  %v1210_v34 = vsel %vm529_vm0, %v4677_v6, %v1209_v8  ;;  %v1355_v29 = vrot.slane %v4909_v9, 1  ;;  %v1354_v13 = vrot.slane %v4218_v39, 1  ;;  %v1343_v9 = vrot.slane %v4918_v48, 1  ;;  %v4398_v48 = vld [vmem:[%s4509_s19 + $0xb4] sm:$0xe] }
  0xa4   : > { %v860_v55 = vpop.permute.xlu2 %859  ;;  %1483 = vrot.lane.b32.xlu0 %v4550_v42, %s4463_s26  ;;  %v3948_v42 = vld [vmem:[%s4509_s19 + $0x84] sm:$0xff]   ;;  %v4970_v44 = vpack.c.b16 %v1532_v2, %v1532_v2  ;;  %v1717_v8 = vor.u32 %v1716_v51, %v1712_v47  ;;  %v4399_v32 = vor.u32 %v4398_v48, %v4929_v59  ;;  %v5048_v48 = vld [vmem:[%s4509_s19 + $0x54] sm:$0xf0] }
  0xa5   : > { %v743_v31 = vpop.permute.xlu1 %742  ;;  %v4916_v41 = vsel %vm1940_vm3, %v1917_v4, %v860_v55  ;;  %v1666_v36 = vshll.u32 %v3948_v42, 16  ;;  %v4353_v4 = vld [vmem:[%s4509_s19] sm:$0xff]  }
  0xa6   : > { %v4923_v20 = vpop.permute.xlu0 %740  ;;  %v1929_v6 = vsel %vm1907_vm2, %v4624_v52, %v743_v31  ;;  %v1909_v55 = vsel %vm1907_vm2, %v4353_v4, %v4870_v46  ;;  %v1342_v31 = vrot.slane %v4212_v35, 1  ;;  %v1356_v46 = vsel %vm802_vm1, %v1354_v13, %v1355_v29  ;;  %v5011_v35 = vld [vmem:[%s4509_s19 + $0x48] sm:$0xff]  }
  0xa7   : > { %v1671_v62 = vshll.u32 %v4970_v44, 16  ;;  %v1855_v51 = vrot.slane %v4970_v44, 1 }
  0xa9   : > { %v1673_v23 = vrot.slane %v1671_v62, 1  ;;  %v5045_v62 = vld [vmem:[%s4509_s19 + $0x54] sm:$0xff]  }
  0xaa   : > { %981 = vrot.lane.b32.xlu2 %v4624_v52, %s4459_s22 }
  0xab   : > { %1883 = vrot.lane.b32.xlu1 %v1841_v53, %s4464_s27  ;;  %v1664_v53 = vshrl.u32 %v3948_v42, 16 }
  0xac   : > { %v866_v58 = vpop.permute.xlu2 %865  ;;  %1875 = vrot.lane.b32.xlu0 %v1829_v7, %s4464_s27  ;;  %v1344_v7 = vsel %vm802_vm1, %v1342_v31, %v1343_v9  ;;  %v4355_v31 = vld [vmem:[%s4509_s19 + $0x48] sm:$0xff]  }
  0xad   : > { %v4945_v54 = vsel %vm1940_vm3, %v1923_v3, %v866_v58  ;;  %v749_v14 = vpop.permute.xlu1 %748  ;;  %v1721_v3 = vrot.slane %v1719_v56, 1  ;;  %v4401_v58 = vld [vmem:[%s4509_s19 + $0x84] sm:$0xe] }
  0xae   : > { %v4955_v30 = vpop.permute.xlu0 %746  ;;  %v1935_v61 = vsel %vm1907_vm2, %v4655_v33, %v749_v14  ;;  %v4402_v29 = vor.u32 %v4401_v58, %v4937_v1  ;;  %v1921_v1 = vsel %vm1907_vm2, %v4355_v31, %v4885_v18  ;;  %v1919_v18 = vsel %vm1907_vm2, %v4559_v50, %v4849_v16  ;;  %v5056_v58 = vld [vmem:[%s4509_s19 + $0x24] sm:$0xff]  }
  0xaf   : > { %v1722_v14 = vsel %vm529_vm0, %v1717_v8, %v1721_v3  ;;  %v5059_v50 = vld [vmem:[%s4509_s19 + $0x24] sm:$0xf0]  ;;  %v1618_v31 = vshll.u32 %v5045_v62, 16 }
  0xb0   : > { %v1854_v47 = vrot.slane %v4402_v29, 1 }
  0xb2   : > { %1261 = vrot.lane.b32.xlu2 %v1210_v34, %s4460_s23  ;;  %v1915_v34 = vsel %vm1907_vm2, %v4532_v24, %v4881_v12  ;;  %v1856_v16 = vsel %vm802_vm1, %v1854_v47, %v1855_v51 }
  0xb3   : > { %1253 = vrot.lane.b32.xlu1 %v1162_v27, %s4460_s23  ;;  %v4354_v27 = vld [vmem:[%s4509_s19 + $0x18] sm:$0xff]  }
  0xb4   : > { %v872_v15 = vpop.permute.xlu2 %871  ;;  %989 = vrot.lane.b32.xlu0 %v4647_v17, %s4459_s22  ;;  %v1668_v17 = vrot.slane %v1666_v36, 1  ;;  %v1913_v39 = vsel %vm1907_vm2, %v4354_v27, %v4867_v10  ;;  %v5021_v36 = vpack.c.b16 %v1016_v57, %v1016_v57  ;;  %v1106_v10 = vshll.u32 %v5011_v35, 16  ;;  %v4204_v57 = vld [vmem:[%s4509_s19 + $0x48] sm:$0xf0]  ;;  %v4205_v27 = vld [vmem:[%s4509_s19 + $0x48] sm:$0xe] }
  0xb5   : > { %v4968_v40 = vsel %vm1940_vm3, %v1929_v6, %v872_v15  ;;  %v852_v52 = vpop.permute.xlu1 %851  ;;  %v1012_v6 = vunpack.c.l.b16 %v3899_v22  ;;  %v4158_v15 = vld [vmem:[%s4509_s19 + $0x18] sm:$0xff]   ;;  %v1927_v22 = vsel %vm1907_vm2, %v4630_v60, %v4923_v20  ;;  %v2175_v60 = vld [vmem:[%s6860_s1 + $0x10] sm:$0x3] }
  0xb6   : > { %v4979_v28 = vsel %vm1940_vm3, %v1909_v55, %v852_v52  ;;  %v4983_v0 = vpop.permute.xlu0 %752  ;;  %v1058_v4 = vshll.u32 %v4158_v15, 16  ;;  %v1866_v55 = vrot.slane %v4399_v32, 1  ;;  %v1867_v52 = vrot.slane %v4960_v49, 1  ;;  %v4199_v32 = vld [vmem:[%s4509_s19 + $0x18] sm:$0xe] }
  0xb7   : > { %v5028_v59 = vpack.c.b16 %v1012_v6, %v1012_v6  ;;  %v1104_v49 = vshrl.u32 %v5011_v35, 16 }
  0xb8   : > { %v1868_v8 = vsel %vm802_vm1, %v1866_v55, %v1867_v52  ;;  %v2189_v55 = vunpack.c.l.b16 %v2175_v60  ;;  %v3908_v60 = vld [vmem:[%s4509_s19 + $0x8c] sm:$0x1] }
  0xb9   : > { %v1063_v3 = vshll.u32 %v5028_v59, 16 }
  0xba   : > { %1493 = vrot.lane.b32.xlu2 %v3948_v42, %s4463_s26  ;;  %v1669_v42 = vor.u32 %v1668_v17, %v1664_v53  ;;  %v1111_v53 = vshll.u32 %v5021_v36, 16  ;;  %v2192_v51 = vpack.c.b16 %v2189_v55, %v2189_v55 }
  0xbb   : > { %1389 = vrot.lane.b32.xlu1 %v1356_v46, %s4461_s24  ;;  %v1108_v46 = vrot.slane %v1106_v10, 1 }
  0xbc   : > { %v878_v25 = vpop.permute.xlu2 %877  ;;  %1381 = vrot.lane.b32.xlu0 %v1344_v7, %s4461_s24  ;;  %v1674_v12 = vsel %vm529_vm0, %v1669_v42, %v1673_v23  ;;  %v1060_v7 = vrot.slane %v1058_v4, 1  ;;  %v3967_v42 = vld [vmem:[%s4509_s19 + $0x5c] sm:$0x1]  ;;  %v4206_v4 = vor.u32 %v4205_v27, %v4204_v57 }
  0xbd   : > { %v4996_v45 = vsel %vm1940_vm3, %v1935_v61, %v878_v25  ;;  %v858_v5 = vpop.permute.xlu1 %857  ;;  %v1109_v61 = vor.u32 %v1108_v46, %v1104_v49  ;;  %v1113_v25 = vrot.slane %v1111_v53, 1  ;;  %v1528_v6 = vunpack.c.l.b16 %v3967_v42  ;;  %v5113_v42 = vld [vmem:[%s4509_s19 + $0xb4] sm:$0xf0] }
  0xbe   : > { %v5004_v33 = vsel %vm1940_vm3, %v1915_v34, %v858_v5  ;;  %v856_v2 = vpop.permute.xlu0 %855  ;;  %v1065_v34 = vrot.slane %v1063_v3, 1  ;;  %v3963_v5 = vld [vmem:[%s4509_s19 + $0x2c] sm:$0x1]  ;;  %v1330_v49 = vrot.slane %v4206_v4, 1  ;;  %v1331_v46 = vrot.slane %v5021_v36, 1 }
  0xbf   : > { %v5014_v24 = vsel %vm1940_vm3, %v1913_v39, %v856_v2  ;;  %v1114_v2 = vsel %vm529_vm0, %v1109_v61, %v1113_v25  ;;  %v1524_v29 = vunpack.c.l.b16 %v3963_v5  ;;  %v5087_v52 = vpack.c.b16 %v1528_v6, %v1528_v6  ;;  %v5110_v25 = vld [vmem:[%s4509_s19 + $0xb4] sm:$0xff]   ;;  %v5126_v5 = vld [vmem:[%s4509_s19 + $0x84] sm:$0xff]   ;;  %v3912_v6 = vld [vmem:[%s4509_s19 + $0xbc] sm:$0x1] }
  0xc1   : > { %v5094_v47 = vpack.c.b16 %v1524_v29, %v1524_v29  ;;  %v1623_v3 = vshll.u32 %v5087_v52, 16  ;;  %v4053_v29 = vld [vmem:[%s6860_s1] sm:$0xff] }
  0xc2   : > { %1773 = vrot.lane.b32.xlu2 %v1722_v14, %s4462_s25 }
  0xc3   : > { %1765 = vrot.lane.b32.xlu1 %v1674_v12, %s4462_s25  ;;  %v4198_v12 = vld [vmem:[%s4509_s19 + $0x18] sm:$0xf0]  ;;  %v1625_v27 = vrot.slane %v1623_v3, 1  ;;  %v1843_v3 = vrot.slane %v5087_v52, 1 }
  0xc4   : > { %v5025_v13 = vpop.permute.xlu2 %963  ;;  %1501 = vrot.lane.b32.xlu0 %v4926_v38, %s4463_s26  ;;  %v1056_v38 = vshrl.u32 %v4158_v15, 16  ;;  %v4200_v20 = vor.u32 %v4199_v32, %v4198_v12 }
  0xc5   : > { %v864_v9 = vpop.permute.xlu1 %863 }
  0xc6   : > { %v5037_v56 = vsel %vm1940_vm3, %v1921_v1, %v864_v9  ;;  %v862_v17 = vpop.permute.xlu0 %861  ;;  %v1061_v23 = vor.u32 %v1060_v7, %v1056_v38  ;;  %v1570_v9 = vshll.u32 %v5056_v58, 16  ;;  %v2230_v38 = vsel %vm2228_vm4, %v2192_v51, 0 }
  0xc7   : > { %v5051_v44 = vsel %vm1940_vm3, %v1919_v18, %v862_v17  ;;  %v1318_v18 = vrot.slane %v4200_v20, 1  ;;  %v1319_v17 = vrot.slane %v5028_v59, 1  ;;  %v1616_v7 = vshrl.u32 %v5045_v62, 16  ;;  %4247 = vmatpush.bf16.msra.mxu2 %v2230_v38  ;;  %4248 = vmatpush.bf16.msra.mxu3 %v2230_v38 }
  0xc8   : > { %v1066_v10 = vsel %vm529_vm0, %v1061_v23, %v1065_v34  ;;  %v1572_v61 = vrot.slane %v1570_v9, 1  ;;  %v1575_v59 = vshll.u32 %v5094_v47, 16  ;;  %2237 = vmatpush.bf16.msra.mxu0 %v2230_v38  ;;  %4246 = vmatpush.bf16.msra.mxu1 %v2230_v38  ;;  %v4356_v9 = vld [vmem:[%s4509_s19 + $0xa8] sm:$0xff]  }
  0xc9   : > { %v1320_v34 = vsel %vm802_vm1, %v1318_v18, %v1319_v17  ;;  %v1937_v51 = vsel %vm1907_vm2, %v4356_v9, %v4879_v63  ;;  %v1021_v18 = vunpack.c.l.b16 %v3908_v60  ;;  %v1166_v63 = vshll.u32 %v5126_v5, 16 }
  0xca   : > { %965 = vrot.lane.b32.xlu2 %v4158_v15, %s4459_s22  ;;  %v1577_v32 = vrot.slane %v1575_v59, 1 }
  0xcb   : > { %1901 = vrot.lane.b32.xlu1 %v1868_v8, %s4464_s27  ;;  %v1620_v8 = vrot.slane %v1618_v31, 1  ;;  %v1025_v31 = vunpack.c.l.b16 %v3912_v6 }
  0xcc   : > { %v5064_v11 = vpop.permute.xlu2 %1251  ;;  %1893 = vrot.lane.b32.xlu0 %v1856_v16, %s4464_s27  ;;  %v1568_v16 = vshrl.u32 %v5056_v58, 16 }
  0xcd   : > { %v870_v14 = vpop.permute.xlu1 %869  ;;  %v1621_v57 = vor.u32 %v1620_v8, %v1616_v7  ;;  %v5159_v38 = vpack.c.b16 %v1025_v31, %v1025_v31  ;;  %v1214_v7 = vshll.u32 %v5110_v25, 16 }
  0xce   : > { %v5075_v39 = vsel %vm1940_vm3, %v1927_v22, %v870_v14  ;;  %v5080_v15 = vpop.permute.xlu0 %867  ;;  %v5129_v22 = vld [vmem:[%s4509_s19 + $0x84] sm:$0xf0]  ;;  %v4404_v14 = vld [vmem:[%s4509_s19 + $0x54] sm:$0xe]  ;;  %v1573_v12 = vor.u32 %v1572_v61, %v1568_v16  ;;  %v1831_v16 = vrot.slane %v5094_v47, 1  ;;  %v1212_v61 = vshrl.u32 %v5110_v25, 16 }
  0xcf   : > { %v1626_v55 = vsel %vm529_vm0, %v1621_v57, %v1625_v27  ;;  %v1216_v59 = vrot.slane %v1214_v7, 1  ;;  %v1219_v52 = vshll.u32 %v5159_v38, 16  ;;  %v4410_v57 = vld [vmem:[%s4509_s19 + $0xb4] sm:$0xe]  ;;  %v4413_v47 = vld [vmem:[%s4509_s19 + $0x84] sm:$0xe] }
  0xd2   : > { %1245 = vrot.lane.b32.xlu2 %v1114_v2, %s4460_s23  ;;  %v4407_v2 = vld [vmem:[%s4509_s19 + $0x24] sm:$0xe] }
  0xd3   : > { %1237 = vrot.lane.b32.xlu1 %v1066_v10, %s4460_s23  ;;  %v1939_v10 = vsel %vm1907_vm2, %v4690_v37, %v4983_v0  ;;  %v4405_v0 = vor.u32 %v4404_v14, %v5048_v48  ;;  %v4408_v17 = vor.u32 %v4407_v2, %v5059_v50  ;;  %v1217_v2 = vor.u32 %v1216_v59, %v1212_v61 }
  0xd4   : > { %v5091_v1 = vpop.permute.xlu2 %1387  ;;  %973 = vrot.lane.b32.xlu0 %v5011_v35, %s4459_s22  ;;  %v1931_v35 = vsel %vm1907_vm2, %v4600_v19, %v4863_v43  ;;  %v1332_v19 = vsel %vm802_vm1, %v1330_v49, %v1331_v46  ;;  %v4054_v43 = vld [vmem:[%s6860_s1 + $0x8] sm:$0xff]  ;;  %v1578_v46 = vsel %vm529_vm0, %v1573_v12, %v1577_v32  ;;  %v1221_v12 = vrot.slane %v1219_v52, 1 }
  0xd5   : > { %v5099_v53 = vpop.permute.xlu1 %875  ;;  %4250 = vmatpush.bf16.msra.mxu2 %v4054_v43  ;;  %4251 = vmatpush.bf16.msra.mxu3 %v4054_v43  ;;  %v1842_v8 = vrot.slane %v4405_v0, 1  ;;  %v1830_v50 = vrot.slane %v4408_v17, 1  ;;  %v3976_v32 = vld [vmem:[%s4509_s19 + $0xc8] sm:$0x1]  ;;  %v4411_v0 = vor.u32 %v4410_v57, %v5113_v42  ;;  %v5226_v57 = vld [vmem:[%s4509_s19 + $0x54] sm:$0xff]  }
  0xd6   : > { %v874_v36 = vpop.permute.xlu0 %873  ;;  %2238 = vmatpush.bf16.msra.mxu0 %v4054_v43  ;;  %4249 = vmatpush.bf16.msra.mxu1 %v4054_v43  ;;  %v1537_v60 = vunpack.c.l.b16 %v3976_v32 }
  0xd7   : > { %v5116_v23 = vsel %vm1940_vm3, %v1931_v35, %v874_v36  ;;  %v5165_v35 = vpack.c.b16 %v1021_v18, %v1021_v18  ;;  %v1844_v43 = vsel %vm802_vm1, %v1842_v8, %v1843_v3  ;;  %v1832_v27 = vsel %vm802_vm1, %v1830_v50, %v1831_v16 }
  0xd8   : > { %v4414_v18 = vor.u32 %v4413_v47, %v5129_v22  ;;  %v5201_v17 = vpack.c.b16 %v1537_v60, %v1537_v60  ;;  %v1357_v50 = vrot.slane %v4411_v0, 1  ;;  %v1358_v16 = vrot.slane %v5159_v38, 1  ;;  %v5229_v47 = vld [vmem:[%s4509_s19 + $0x54] sm:$0xf0]  ;;  %v3904_v0 = vld [vmem:[%s4509_s19 + $0x5c] sm:$0x1] }
  0xd9   : > { %4253 = vmatpush.bf16.msra.mxu2 %v4053_v29  ;;  %4254 = vmatpush.bf16.msra.mxu3 %v4053_v29  ;;  %v1171_v14 = vshll.u32 %v5165_v35, 16  ;;  %v1346_v59 = vrot.slane %v5165_v35, 1 }
  0xda   : > { %1477 = vrot.lane.b32.xlu2 %v5056_v58, %s4463_s26  ;;  %2239 = vmatpush.bf16.msra.mxu0 %v4053_v29  ;;  %v1345_v61 = vrot.slane %v4414_v18, 1 }
  0xdb   : > { %1373 = vrot.lane.b32.xlu1 %v1332_v19, %s4461_s24  ;;  %4252 = vmatpush.bf16.msra.mxu1 %v4053_v29  ;;  %v1173_v29 = vrot.slane %v1171_v14, 1 }
  0xdc   : > { %v5135_v58 = vpop.permute.xlu2 %1763  ;;  %1365 = vrot.lane.b32.xlu0 %v1320_v34, %s4461_s24  ;;  %v1164_v34 = vshrl.u32 %v5126_v5, 16  ;;  %v1347_v32 = vsel %vm802_vm1, %v1345_v61, %v1346_v59  ;;  %v4237_v59 = vld [vmem:[%s4509_s19 + $0x90] sm:$0xf0] }
  0xdd   : > { %v882_v4 = vpop.permute.xlu1 %881 }
  0xde   : > { %v5146_v20 = vsel %vm1940_vm3, %v1939_v10, %v882_v4  ;;  %v880_v49 = vpop.permute.xlu0 %879  ;;  %v3972_v10 = vld [vmem:[%s4509_s19 + $0x98] sm:$0x1] }
  0xdf   : > { %v5154_v37 = vsel %vm1940_vm3, %v1937_v51, %v880_v49  ;;  %v1533_v9 = vunpack.c.l.b16 %v3972_v10  ;;  %v5243_v10 = vld [vmem:[%s4509_s19 + $0x24] sm:$0xff]  }
  0xe1   : > { %v5211_v22 = vpack.c.b16 %v1533_v9, %v1533_v9 }
  0xe2   : > { %1757 = vrot.lane.b32.xlu2 %v1626_v55, %s4462_s25  ;;  %v5190_v55 = vld [vmem:[%s4509_s19 + $0xc0] sm:$0xff]  }
  0xe3   : > { %1749 = vrot.lane.b32.xlu1 %v1578_v46, %s4462_s25  ;;  %v5196_v46 = vld [vmem:[%s4509_s19 + $0x90] sm:$0xff]   ;;  %v1726_v7 = vshll.u32 %v5190_v55, 16  ;;  %v1724_v52 = vshrl.u32 %v5190_v55, 16 }
  0xe4   : > { %1485 = vrot.lane.b32.xlu0 %v5045_v62, %s4463_s26  ;;  %v5171_v36 = vpop.permute.xlu2 %1899  ;;  %v1168_v62 = vrot.slane %v1166_v63, 1  ;;  %v4357_v63 = vld [vmem:[%s4509_s19 + $0x60] sm:$0xff]   ;;  %v1678_v42 = vshll.u32 %v5196_v46, 16 }
  0xe5   : > { %v5169_v48 = vpop.permute.xlu1 %987  ;;  %v1925_v8 = vsel %vm1907_vm2, %v4357_v63, %v4836_v26  ;;  %v4244_v63 = vld [vmem:[%s4509_s19 + $0xc0] sm:$0xe] }
  0xe6   : > { %v980_v19 = vpop.permute.xlu0 %979  ;;  %v1169_v6 = vor.u32 %v1168_v62, %v1164_v34  ;;  %v1958_v3 = vsel %vm1940_vm3, %v1925_v8, %v5080_v15  ;;  %v1731_v34 = vshll.u32 %v5201_v17, 16  ;;  %v4358_v62 = vld [vmem:[%s4509_s19 + $0x90] sm:$0xff]   ;;  %v1680_v14 = vrot.slane %v1678_v42, 1  ;;  %v3900_v8 = vld [vmem:[%s4509_s19 + $0x2c] sm:$0x1] }
  0xe7   : > { %v1991_v26 = vsel %vm1973_vm5, %v1958_v3, %v980_v19  ;;  %v1933_v38 = vsel %vm1907_vm2, %v4358_v62, %v4955_v30  ;;  %v1676_v19 = vshrl.u32 %v5196_v46, 16 }
  0xe8   : > { %v1174_v49 = vsel %vm529_vm0, %v1169_v6, %v1173_v29  ;;  %v2024_v30 = vsel %vm2006_vm6, %v1991_v26, %v5064_v11  ;;  %v1733_v29 = vrot.slane %v1731_v34, 1  ;;  %v4238_v26 = vld [vmem:[%s4509_s19 + $0x90] sm:$0xe]  ;;  %v1013_v34 = vunpack.c.l.b16 %v3900_v8 }
  0xe9   : > { %v5254_v9 = vor.u32 %v1680_v14, %v1676_v19  ;;  %v1070_v19 = vshll.u32 %v5243_v10, 16 }
  0xea   : > { %983 = vrot.lane.b32.xlu2 %v5126_v5, %s4459_s22  ;;  %v1222_v5 = vsel %vm529_vm0, %v1217_v2, %v1221_v12  ;;  %v1359_v2 = vsel %vm802_vm1, %v1357_v50, %v1358_v16  ;;  %v1017_v50 = vunpack.c.l.b16 %v3904_v0 }
  0xeb   : > { %1885 = vrot.lane.b32.xlu1 %v1844_v43, %s4464_s27  ;;  %v1728_v43 = vrot.slane %v1726_v7, 1 }
  0xec   : > { %1877 = vrot.lane.b32.xlu0 %v1832_v27, %s4464_s27  ;;  %v5192_v51 = vpop.permute.xlu2 %1243  ;;  %v1966_v27 = vsel %vm1940_vm3, %v1933_v38, %v5099_v53  ;;  %v5246_v53 = vld [vmem:[%s4509_s19 + $0x24] sm:$0xf0]  ;;  %v5280_v62 = vpack.c.b16 %v1017_v50, %v1017_v50  ;;  %v1118_v38 = vshll.u32 %v5226_v57, 16 }
  0xed   : > { %v1380_v4 = vpop.permute.xlu1 %1379  ;;  %v5240_v6 = vor.u32 %v1728_v43, %v1724_v52  ;;  %v1999_v11 = vsel %vm1973_vm5, %v1966_v27, %v5169_v48 }
  0xee   : > { %v1260_v31 = vpop.permute.xlu0 %1259  ;;  %v2057_v12 = vsel %vm2039_vm7, %v2024_v30, %v1380_v4  ;;  %v1858_v30 = vrot.slane %v5211_v22, 1 }
  0xef   : > { %v1734_v7 = vsel %vm529_vm0, %v5240_v6, %v1733_v29  ;;  %v1123_v29 = vshll.u32 %v5280_v62, 16 }
  0xf2   : > { %1263 = vrot.lane.b32.xlu2 %v1222_v5, %s4460_s23  ;;  %v2032_v5 = vsel %vm2006_vm6, %v1999_v11, %v1260_v31  ;;  %v4243_v31 = vld [vmem:[%s4509_s19 + $0xc0] sm:$0xf0] }
  0xf3   : > { %1255 = vrot.lane.b32.xlu1 %v1174_v49, %s4460_s23  ;;  %v2065_v3 = vsel %vm2039_vm7, %v2032_v5, %v5091_v1  ;;  %v4245_v43 = vor.u32 %v4244_v63, %v4243_v31  ;;  %v1072_v5 = vrot.slane %v1070_v19, 1  ;;  %v3968_v31 = vld [vmem:[%s4509_s19 + $0x68] sm:$0x1] }
  0xf4   : > { %991 = vrot.lane.b32.xlu0 %v5110_v25, %s4459_s22  ;;  %v1683_v25 = vshll.u32 %v5211_v22, 16  ;;  %v5250_v60 = vpop.permute.xlu2 %1475  ;;  %v4416_v22 = vld [vmem:[%s4509_s19 + $0x54] sm:$0xe] }
  0xf5   : > { %v1500_v15 = vpop.permute.xlu1 %1499  ;;  %v1869_v14 = vrot.slane %v4245_v43, 1  ;;  %v5317_v43 = vld [vmem:[%s4509_s19 + $0x30] sm:$0xff]  }
  0xf6   : > { %v1492_v35 = vpop.permute.xlu0 %1491  ;;  %v1685_v49 = vrot.slane %v1683_v25, 1  ;;  %v2098_v16 = vsel %vm2072_vm8, %v2065_v3, %v1500_v15  ;;  %v4239_v15 = vor.u32 %v4238_v26, %v4237_v59  ;;  %v1870_v25 = vrot.slane %v5201_v17, 1 }
  0xf7   : > { %v2090_v4 = vsel %vm2072_vm8, %v2057_v12, %v1492_v35  ;;  %v1116_v12 = vshrl.u32 %v5226_v57, 16  ;;  %v1068_v17 = vshrl.u32 %v5243_v10, 16  ;;  %v4417_v26 = vor.u32 %v4416_v22, %v5229_v47 }
  0xf8   : > { %v2123_v18 = vsel %vm2105_vm9, %v2090_v4, %v5135_v58  ;;  %v1686_v58 = vsel %vm529_vm0, %v5254_v9, %v1685_v49  ;;  %v1871_v4 = vsel %vm802_vm1, %v1869_v14, %v1870_v25  ;;  %v1334_v14 = vrot.slane %v5280_v62, 1 }
  0xf9   : > { %v1073_v63 = vor.u32 %v1072_v5, %v1068_v17  ;;  %v1333_v19 = vrot.slane %v4417_v26, 1  ;;  %v1580_v62 = vshrl.u32 %v5317_v43, 16 }
  0xfa   : > { %1495 = vrot.lane.b32.xlu2 %v5196_v46, %s4463_s26 }
  0xfb   : > { %1391 = vrot.lane.b32.xlu1 %v1359_v2, %s4461_s24  ;;  %v1857_v2 = vrot.slane %v4239_v15, 1 }
  0xfc   : > { %1383 = vrot.lane.b32.xlu0 %v1347_v32, %s4461_s24  ;;  %v5284_v35 = vpop.permute.xlu2 %1755  ;;  %v1120_v32 = vrot.slane %v1118_v38, 1  ;;  %v1582_v38 = vshll.u32 %v5317_v43, 16 }
  0xfd   : > { %v1892_v48 = vpop.permute.xlu1 %1891  ;;  %v1859_v0 = vsel %vm802_vm1, %v1857_v2, %v1858_v30 }
  0xfe   : > { %v2156_v42 = vsel %vm2138_vm10, %v2123_v18, %v1892_v48  ;;  %v1772_v61 = vpop.permute.xlu0 %1771  ;;  %v1121_v48 = vor.u32 %v1120_v32, %v1116_v12  ;;  %v1125_v18 = vrot.slane %v1123_v29, 1 }
  0xff   : > { %4010 = vmatmul.msk.bf16.vlgmr.msra.gmra.mxu2 %vm2195_vm11, %v2156_v42  ;;  %v2131_v52 = vsel %vm2105_vm9, %v2098_v16, %v1772_v61  ;;  %v3964_v42 = vld [vmem:[%s4509_s19 + $0x38] sm:$0x1]  ;;  %v1529_v16 = vunpack.c.l.b16 %v3968_v31 }
 0x100   : > { %v2164_v1 = vsel %vm2138_vm10, %v2131_v52, %v5171_v36  ;;  %v5288_v36 = vpack.c.b16 %v1013_v34, %v1013_v34  ;;  %v1525_v52 = vunpack.c.l.b16 %v3964_v42  ;;  %v3909_v42 = vld [vmem:[%s4509_s19 + $0x98] sm:$0x1] }
 0x101   : > { %4014 = vmatmul.msk.bf16.vlgmr.msra.gmra.mxu3 %vm2195_vm11, %v2164_v1  ;;  %v5320_v1 = vpack.c.b16 %v1529_v16, %v1529_v16 }
 0x102   : > { %1775 = vrot.lane.b32.xlu2 %v1734_v7, %s4462_s25  ;;  %v1075_v49 = vshll.u32 %v5288_v36, 16  ;;  %v4419_v7 = vld [vmem:[%s4509_s19 + $0x24] sm:$0xe]  ;;  %v5326_v25 = vpack.c.b16 %v1525_v52, %v1525_v52  ;;  %v1322_v2 = vrot.slane %v5288_v36, 1  ;;  %v1975_v36 = vsel %vm1973_vm5, %v4979_v28, %v5025_v13  ;;  %v3913_v28 = vld [vmem:[%s4509_s19 + $0xc8] sm:$0x1] }
 0x103   : > { %1767 = vrot.lane.b32.xlu1 %v1686_v58, %s4462_s25  ;;  %v5311_v58 = vld [vmem:[%s4509_s19 + $0x60] sm:$0xff]   ;;  %v4420_v34 = vor.u32 %v4419_v7, %v5246_v53  ;;  %v1635_v29 = vshll.u32 %v5320_v1, 16 }
 0x104   : > { %1503 = vrot.lane.b32.xlu0 %v5190_v55, %s4463_s26  ;;  %v1077_v8 = vrot.slane %v1075_v49, 1  ;;  %v5307_v50 = vpop.permute.xlu2 %981  ;;  %v1630_v15 = vshll.u32 %v5311_v58, 16  ;;  %v1628_v12 = vshrl.u32 %v5311_v58, 16  ;;  %v1587_v5 = vshll.u32 %v5326_v25, 16 }
 0x105   : > { %v1236_v27 = vpop.permute.xlu1 %1235  ;;  %v1321_v30 = vrot.slane %v4420_v34, 1  ;;  %v4225_v34 = vld [vmem:[%s4509_s19 + $0x30] sm:$0xf0] }
 0x106   : > { %v972_v11 = vpop.permute.xlu0 %971  ;;  %v1078_v59 = vsel %vm529_vm0, %v1073_v63, %v1077_v8  ;;  %v1632_v32 = vrot.slane %v1630_v15, 1  ;;  %v1589_v31 = vrot.slane %v1587_v5, 1  ;;  %v4231_v8 = vld [vmem:[%s4509_s19 + $0x60] sm:$0xf0]  ;;  %v4226_v15 = vld [vmem:[%s4509_s19 + $0x30] sm:$0xe] }
 0x107   : > { %v1983_v47 = vsel %vm1973_vm5, %v4916_v41, %v972_v11  ;;  %v1584_v11 = vrot.slane %v1582_v38, 1  ;;  %v1323_v22 = vsel %vm802_vm1, %v1321_v30, %v1322_v2  ;;  %v1846_v2 = vrot.slane %v5320_v1, 1 }
 0x108   : > { %v2016_v41 = vsel %vm2006_vm6, %v1983_v47, %v5192_v51  ;;  %v2008_v51 = vsel %vm2006_vm6, %v1975_v36, %v1236_v27  ;;  %v4227_v47 = vor.u32 %v4226_v15, %v4225_v34  ;;  %v3952_v36 = vld [vmem:[%s4509_s19 + $0x9c] sm:$0xff]  }
 0x109   : > { %v5356_v13 = vor.u32 %v1584_v11, %v1580_v62  ;;  %v5386_v11 = vld [vmem:[%s4509_s19 + $0xcc] sm:$0xff]   ;;  %v1690_v15 = vshll.u32 %v3952_v36, 16 }
 0x10a   : > { %967 = vrot.lane.b32.xlu2 %v5243_v10, %s4459_s22  ;;  %v1126_v10 = vsel %vm529_vm0, %v1121_v48, %v1125_v18  ;;  %v5351_v48 = vor.u32 %v1632_v32, %v1628_v12  ;;  %v1637_v18 = vrot.slane %v1635_v29, 1  ;;  %v1833_v29 = vrot.slane %v4227_v47, 1 }
 0x10b   : > { %1903 = vrot.lane.b32.xlu1 %v1871_v4, %s4464_s27  ;;  %v1590_v38 = vsel %vm529_vm0, %v5356_v13, %v1589_v31 }
 0x10c   : > { %1895 = vrot.lane.b32.xlu0 %v1859_v0, %s4464_s27  ;;  %v5336_v17 = vpop.permute.xlu2 %1261 }
 0x10d   : > { %v1372_v3 = vpop.permute.xlu1 %1371 }
 0x10e   : > { %v1364_v61 = vpop.permute.xlu0 %1363  ;;  %v2049_v49 = vsel %vm2039_vm7, %v2016_v41, %v1372_v3  ;;  %v4232_v3 = vld [vmem:[%s4509_s19 + $0x60] sm:$0xe] }
 0x10f   : > { %v2041_v7 = vsel %vm2039_vm7, %v2008_v51, %v1364_v61  ;;  %v1638_v61 = vsel %vm529_vm0, %v5351_v48, %v1637_v18  ;;  %v3977_v51 = vld [vmem:[%s4509_s19 + $0xd4] sm:$0x1] }
 0x112   : > { %1247 = vrot.lane.b32.xlu2 %v1126_v10, %s4460_s23  ;;  %v2074_v10 = vsel %vm2072_vm8, %v2041_v7, %v5250_v60  ;;  %v1022_v60 = vunpack.c.l.b16 %v3909_v42  ;;  %v4219_v7 = vld [vmem:[%s4509_s19 + $0xc0] sm:$0xf0] }
 0x113   : > { %1239 = vrot.lane.b32.xlu1 %v1078_v59, %s4460_s23  ;;  %v1026_v59 = vunpack.c.l.b16 %v3913_v28  ;;  %v4220_v28 = vld [vmem:[%s4509_s19 + $0xc0] sm:$0xe] }
 0x114   : > { %975 = vrot.lane.b32.xlu0 %v5226_v57, %s4459_s22  ;;  %v1335_v57 = vsel %vm802_vm1, %v1333_v19, %v1334_v14  ;;  %v4233_v19 = vor.u32 %v4232_v3, %v4231_v8  ;;  %v5378_v14 = vpop.permute.xlu2 %1493  ;;  %v1038_v12 = vpack.c.b16 %v1022_v60, %v1022_v60  ;;  %v4214_v8 = vld [vmem:[%s4509_s19 + $0x90] sm:$0xe]  ;;  %v1538_v3 = vunpack.c.l.b16 %v3977_v51 }
 0x115   : > { %v1748_v53 = vpop.permute.xlu1 %1747 }
 0x116   : > { %v1484_v4 = vpop.permute.xlu0 %1483  ;;  %v2107_v26 = vsel %vm2105_vm9, %v2074_v10, %v1748_v53  ;;  %v1042_v53 = vpack.c.b16 %v1026_v59, %v1026_v59  ;;  %v1845_v30 = vrot.slane %v4233_v19, 1  ;;  %v1183_v5 = vshll.u32 %v1038_v12, 16 }
 0x117   : > { %v2082_v0 = vsel %vm2072_vm8, %v2049_v49, %v1484_v4  ;;  %v1834_v4 = vrot.slane %v5326_v25, 1  ;;  %v5396_v49 = vld [vmem:[%s4509_s19 + $0x9c] sm:$0xf0]  ;;  %v4221_v10 = vor.u32 %v4220_v28, %v4219_v7  ;;  %v1349_v60 = vrot.slane %v1038_v12, 1  ;;  %v4425_v28 = vld [vmem:[%s4509_s19 + $0x9c] sm:$0xe] }
 0x118   : > { %v2115_v27 = vsel %vm2105_vm9, %v2082_v0, %v5284_v35  ;;  %v1231_v62 = vshll.u32 %v1042_v53, 16  ;;  %v1847_v1 = vsel %vm802_vm1, %v1845_v30, %v1846_v2  ;;  %v1185_v18 = vrot.slane %v1183_v5, 1 }
 0x119   : > { %v1835_v25 = vsel %vm802_vm1, %v1833_v29, %v1834_v4  ;;  %v1360_v34 = vrot.slane %v4221_v10, 1  ;;  %v1736_v30 = vshrl.u32 %v5386_v11, 16  ;;  %v1993_v12 = vsel %vm1973_vm5, %v5075_v39, %v5307_v50  ;;  %v3901_v50 = vld [vmem:[%s4509_s19 + $0x38] sm:$0x1] }
 0x11a   : > { %1479 = vrot.lane.b32.xlu2 %v5317_v43, %s4463_s26 }
 0x11b   : > { %1375 = vrot.lane.b32.xlu1 %v1335_v57, %s4461_s24  ;;  %v5389_v57 = vld [vmem:[%s4509_s19 + $0xcc] sm:$0xf0] }
 0x11c   : > { %1367 = vrot.lane.b32.xlu0 %v1323_v22, %s4461_s24  ;;  %v1233_v22 = vrot.slane %v1231_v62, 1  ;;  %v1774_v0 = vpop.permute.xlu2 %1773  ;;  %v1688_v62 = vshrl.u32 %v3952_v36, 16 }
 0x11d   : > { %v1884_v63 = vpop.permute.xlu1 %1883 }
 0x11e   : > { %v2148_v16 = vsel %vm2138_vm10, %v2115_v27, %v1884_v63  ;;  %v1876_v52 = vpop.permute.xlu0 %1875  ;;  %v3973_v63 = vld [vmem:[%s4509_s19 + $0xa4] sm:$0x1]  ;;  %v4213_v27 = vld [vmem:[%s4509_s19 + $0x90] sm:$0xf0] }
 0x11f   : > { %4006 = vmatmul.msk.bf16.vlgmr.msra.gmra.mxu1 %vm2195_vm11, %v2148_v16  ;;  %v2140_v35 = vsel %vm2138_vm10, %v2107_v26, %v1876_v52  ;;  %v1186_v16 = vsel %vm529_vm0, %v5254_v9, %v1185_v18  ;;  %v4215_v59 = vor.u32 %v4214_v8, %v4213_v27  ;;  %v5412_v26 = vpack.c.b16 %v1538_v3, %v1538_v3 }
 0x120   : > { %4002 = vmatmul.msk.bf16.vlgmr.msra.gmra.mxu0 %vm2195_vm11, %v2140_v35  ;;  %v1738_v52 = vshll.u32 %v5386_v11, 16 }
 0x121   : > { %v1348_v19 = vrot.slane %v4215_v59, 1  ;;  %v3905_v59 = vld [vmem:[%s4509_s19 + $0x68] sm:$0x1] }
 0x122   : > { %1759 = vrot.lane.b32.xlu2 %v1638_v61, %s4462_s25  ;;  %v1534_v61 = vunpack.c.l.b16 %v3973_v63  ;;  %v1740_v2 = vrot.slane %v1738_v52, 1 }
 0x123   : > { %1751 = vrot.lane.b32.xlu1 %v1590_v38, %s4462_s25  ;;  %v1350_v5 = vsel %vm802_vm1, %v1348_v19, %v1349_v60 }
 0x124   : > { %1487 = vrot.lane.b32.xlu0 %v5311_v58, %s4463_s26  ;;  %v5416_v35 = vpack.c.b16 %v1534_v61, %v1534_v61  ;;  %v5422_v47 = vpop.permute.xlu2 %965  ;;  %v1741_v51 = vor.u32 %v1740_v2, %v1736_v30  ;;  %v3936_v2 = vld [vmem:[%s4509_s19 + $0x3c] sm:$0xff]  }
 0x125   : > { %v1254_v32 = vpop.permute.xlu1 %1253 }
 0x126   : > { %v990_v41 = vpop.permute.xlu0 %989 }
 0x127   : > { %v2001_v38 = vsel %vm1973_vm5, %v4996_v45, %v990_v41  ;;  %v1695_v41 = vshll.u32 %v5416_v35, 16 }
 0x128   : > { %v2034_v45 = vsel %vm2006_vm6, %v2001_v38, %v5336_v17 }
 0x129   : > { %v1697_v39 = vrot.slane %v1695_v41, 1  ;;  %v4208_v41 = vld [vmem:[%s4509_s19 + $0x60] sm:$0xe] }
 0x12a   : > { %985 = vrot.lane.b32.xlu2 %v5196_v46, %s4459_s22  ;;  %v1234_v46 = vsel %vm529_vm0, %v5240_v6, %v1233_v22  ;;  %v1361_v6 = vrot.slane %v1042_v53, 1  ;;  %v1743_v53 = vshll.u32 %v5412_v26, 16  ;;  %v2026_v22 = vsel %vm2006_vm6, %v1993_v12, %v1254_v32  ;;  %v3965_v12 = vld [vmem:[%s4509_s19 + $0x44] sm:$0x1] }
 0x12b   : > { %1887 = vrot.lane.b32.xlu1 %v1847_v1, %s4464_s27 }
 0x12c   : > { %1879 = vrot.lane.b32.xlu0 %v1835_v25, %s4464_s27  ;;  %v1362_v4 = vsel %vm802_vm1, %v1360_v34, %v1361_v6  ;;  %v4422_v25 = vld [vmem:[%s4509_s19 + $0xcc] sm:$0xe]  ;;  %v1745_v18 = vrot.slane %v1743_v53, 1  ;;  %v5451_v10 = vpop.permute.xlu2 %1245  ;;  %v1018_v34 = vunpack.c.l.b16 %v3905_v59 }
 0x12d   : > { %v1390_v31 = vpop.permute.xlu1 %1389 }
 0x12e   : > { %v1382_v42 = vpop.permute.xlu0 %1381  ;;  %v2067_v1 = vsel %vm2039_vm7, %v2034_v45, %v1390_v31  ;;  %v1746_v27 = vsel %vm529_vm0, %v1741_v51, %v1745_v18  ;;  %v1034_v60 = vpack.c.b16 %v1018_v34, %v1018_v34  ;;  %v5483_v45 = vld [vmem:[%s4509_s19 + $0x6c] sm:$0xf0]  ;;  %v1526_v51 = vunpack.c.l.b16 %v3965_v12  ;;  %v3969_v18 = vld [vmem:[%s4509_s19 + $0x74] sm:$0x1] }
 0x12f   : > { %v2059_v7 = vsel %vm2039_vm7, %v2026_v22, %v1382_v42  ;;  %v1014_v42 = vunpack.c.l.b16 %v3901_v50 }
 0x130   : > { %v2092_v32 = vsel %vm2072_vm8, %v2059_v7, %v5378_v14  ;;  %v4426_v14 = vor.u32 %v4425_v28, %v5396_v49  ;;  %v1337_v50 = vrot.slane %v1034_v60, 1 }
 0x131   : > { %v5461_v52 = vpack.c.b16 %v1014_v42, %v1014_v42 }
 0x132   : > { %1265 = vrot.lane.b32.xlu2 %v1234_v46, %s4460_s23  ;;  %v1860_v38 = vrot.slane %v4426_v14, 1 }
 0x133   : > { %1257 = vrot.lane.b32.xlu1 %v1186_v16, %s4460_s23  ;;  %v1087_v49 = vshll.u32 %v5461_v52, 16 }
 0x134   : > { %993 = vrot.lane.b32.xlu0 %v5190_v55, %s4459_s22  ;;  %v1692_v55 = vrot.slane %v1690_v15, 1  ;;  %v1873_v15 = vrot.slane %v5412_v26, 1  ;;  %v5471_v26 = vld [vmem:[%s4509_s19 + $0x3c] sm:$0xf0]  ;;  %v5475_v53 = vpop.permute.xlu2 %1477 }
 0x135   : > { %v1766_v9 = vpop.permute.xlu1 %1765 }
 0x136   : > { %v1502_v29 = vpop.permute.xlu0 %1501  ;;  %v1693_v63 = vor.u32 %v1692_v55, %v1688_v62  ;;  %v2125_v8 = vsel %vm2105_vm9, %v2092_v32, %v1766_v9  ;;  %v1861_v9 = vrot.slane %v5416_v35, 1  ;;  %v4207_v55 = vld [vmem:[%s4509_s19 + $0x60] sm:$0xf0] }
 0x137   : > { %v2100_v17 = vsel %vm2072_vm8, %v2067_v1, %v1502_v29  ;;  %v1089_v29 = vrot.slane %v1087_v49, 1  ;;  %v4201_v1 = vld [vmem:[%s4509_s19 + $0x30] sm:$0xf0] }
 0x138   : > { %v2133_v31 = vsel %vm2105_vm9, %v2100_v17, %v1774_v0  ;;  %v1698_v61 = vsel %vm529_vm0, %v1693_v63, %v1697_v39  ;;  %v4423_v0 = vor.u32 %v4422_v25, %v5389_v57  ;;  %v1862_v35 = vsel %vm802_vm1, %v1860_v38, %v1861_v9  ;;  %v4428_v38 = vld [vmem:[%s4509_s19 + $0x6c] sm:$0xe] }
 0x139   : > { %v4209_v17 = vor.u32 %v4208_v41, %v4207_v55  ;;  %v1090_v7 = vsel %vm529_vm0, %v5356_v13, %v1089_v29  ;;  %v1530_v63 = vunpack.c.l.b16 %v3969_v18 }
 0x13a   : > { %1497 = vrot.lane.b32.xlu2 %v3952_v36, %s4463_s26  ;;  %v1872_v6 = vrot.slane %v4423_v0, 1 }
 0x13b   : > { %1393 = vrot.lane.b32.xlu1 %v1362_v4, %s4461_s24  ;;  %v5480_v4 = vld [vmem:[%s4509_s19 + $0x6c] sm:$0xff]   ;;  %v1336_v39 = vrot.slane %v4209_v17, 1 }
 0x13c   : > { %1385 = vrot.lane.b32.xlu0 %v1350_v5, %s4461_s24  ;;  %v1874_v30 = vsel %vm802_vm1, %v1872_v6, %v1873_v15  ;;  %v4202_v5 = vld [vmem:[%s4509_s19 + $0x30] sm:$0xe]  ;;  %v1758_v32 = vpop.permute.xlu2 %1757  ;;  %v1977_v6 = vsel %vm1973_vm5, %v4907_v21, %v5422_v47 }
 0x13d   : > { %v1902_v36 = vpop.permute.xlu1 %1901  ;;  %v4203_v28 = vor.u32 %v4202_v5, %v4201_v1  ;;  %v4429_v1 = vor.u32 %v4428_v38, %v5483_v45 }
 0x13e   : > { %v2166_v46 = vsel %vm2138_vm10, %v2133_v31, %v1902_v36  ;;  %v1894_v3 = vpop.permute.xlu0 %1893  ;;  %v1542_v36 = vpack.c.b16 %v1526_v51, %v1526_v51  ;;  %v1594_v31 = vshll.u32 %v3936_v2, 16 }
 0x13f   : > { %4015 = vmatmul.msk.bf16.gmra.mxu3 %vm2195_vm11, %v2166_v46  ;;  %v2158_v16 = vsel %vm2138_vm10, %v2125_v8, %v1894_v3  ;;  %v1325_v8 = vrot.slane %v5461_v52, 1  ;;  %v1546_v3 = vpack.c.b16 %v1530_v63, %v1530_v63  ;;  %v1848_v5 = vrot.slane %v4429_v1, 1 }
 0x140   : > { %4011 = vmatmul.msk.bf16.gmra.mxu2 %vm2195_vm11, %v2158_v16  ;;  %v1338_v16 = vsel %vm802_vm1, %v1336_v39, %v1337_v50  ;;  %v1596_v0 = vrot.slane %v1594_v31, 1  ;;  %v1599_v59 = vshll.u32 %v1542_v36, 16  ;;  %v1837_v51 = vrot.slane %v1542_v36, 1 }
 0x142   : > { %1777 = vrot.lane.b32.xlu2 %v1746_v27, %s4462_s25  ;;  %v1324_v27 = vrot.slane %v4203_v28, 1  ;;  %v1601_v21 = vrot.slane %v1599_v59, 1 }
 0x143   : > { %1769 = vrot.lane.b32.xlu1 %v1698_v61, %s4462_s25  ;;  %v1592_v61 = vshrl.u32 %v3936_v2, 16 }
 0x144   : > { %1505 = vrot.lane.b32.xlu0 %v5386_v11, %s4463_s26  ;;  %v1135_v11 = vshll.u32 %v1034_v60, 16  ;;  %v1326_v15 = vsel %vm802_vm1, %v1324_v27, %v1325_v8  ;;  %v984_v29 = vpop.permute.xlu2 %983 }
 0x145   : > { %v1238_v57 = vpop.permute.xlu1 %1237 }
 0x146   : > { %v974_v19 = vpop.permute.xlu0 %973  ;;  %v1137_v62 = vrot.slane %v1135_v11, 1  ;;  %v2010_v9 = vsel %vm2006_vm6, %v1977_v6, %v1238_v57  ;;  %v1597_v11 = vor.u32 %v1596_v0, %v1592_v61 }
 0x147   : > { %v1985_v46 = vsel %vm1973_vm5, %v5051_v44, %v974_v19  ;;  %v1640_v44 = vshrl.u32 %v5480_v4, 16 }
 0x148   : > { %v1138_v25 = vsel %vm529_vm0, %v5351_v48, %v1137_v62  ;;  %v1642_v48 = vshll.u32 %v5480_v4, 16  ;;  %v2018_v14 = vsel %vm2006_vm6, %v1985_v46, %v5451_v10 }
 0x14a   : > { %969 = vrot.lane.b32.xlu2 %v5317_v43, %s4459_s22  ;;  %v1644_v34 = vrot.slane %v1642_v48, 1 }
 0x14b   : > { %1905 = vrot.lane.b32.xlu1 %v1874_v30, %s4464_s27  ;;  %v4431_v30 = vld [vmem:[%s4509_s19 + $0x3c] sm:$0xe] }
 0x14c   : > { %1897 = vrot.lane.b32.xlu0 %v1862_v35, %s4464_s27  ;;  %v1645_v10 = vor.u32 %v1644_v34, %v1640_v44 }
 0x14d   : > { %v1374_v43 = vpop.permute.xlu1 %1373 }
 0x14e   : > { %v1366_v22 = vpop.permute.xlu0 %1365  ;;  %v2051_v52 = vsel %vm2039_vm7, %v2018_v14, %v1374_v43  ;;  %v1602_v43 = vsel %vm529_vm0, %v1597_v11, %v1601_v21 }
 0x14f   : > { %v2043_v60 = vsel %vm2039_vm7, %v2010_v9, %v1366_v22 }
 0x150   : > { %v2076_v57 = vsel %vm2072_vm8, %v2043_v60, %v5475_v53  ;;  %v4432_v53 = vor.u32 %v4431_v30, %v5471_v26 }
 0x152   : > { %1249 = vrot.lane.b32.xlu2 %v1138_v25, %s4460_s23  ;;  %v1849_v25 = vrot.slane %v1546_v3, 1  ;;  %v1836_v17 = vrot.slane %v4432_v53, 1 }
 0x153   : > { %1241 = vrot.lane.b32.xlu1 %v1090_v7, %s4460_s23  ;;  %v1264_v7 = vpop.permute.xlu2 %1263 }
 0x154   : > { %977 = vrot.lane.b32.xlu0 %v5311_v58, %s4459_s22  ;;  %v1647_v58 = vshll.u32 %v1546_v3, 16  ;;  %v1850_v45 = vsel %vm802_vm1, %v1848_v5, %v1849_v25  ;;  %v1838_v28 = vsel %vm802_vm1, %v1836_v17, %v1837_v51 }
 0x155   : > { %v1750_v13 = vpop.permute.xlu1 %1749 }
 0x156   : > { %v1486_v42 = vpop.permute.xlu0 %1485  ;;  %v1649_v49 = vrot.slane %v1647_v58, 1  ;;  %v2109_v55 = vsel %vm2105_vm9, %v2076_v57, %v1750_v13 }
 0x157   : > { %v2084_v19 = vsel %vm2072_vm8, %v2051_v52, %v1486_v42 }
 0x158   : > { %v2117_v35 = vsel %vm2105_vm9, %v2084_v19, %v1758_v32  ;;  %v1650_v62 = vsel %vm529_vm0, %v1645_v10, %v1649_v49  ;;  %v1995_v32 = vsel %vm1973_vm5, %v4968_v40, %v984_v29  ;;  %v5558_v40 = vld [vmem:[%s6861_s2] ss:$0 sm:$0xff] }
 0x15a   : > { %1481 = vrot.lane.b32.xlu2 %v3936_v2, %s4463_s26 }
 0x15b   : > { %1377 = vrot.lane.b32.xlu1 %v1338_v16, %s4461_s24  ;;  %v1496_v39 = vpop.permute.xlu2 %1495 }
 0x15c   : > { %1369 = vrot.lane.b32.xlu0 %v1326_v15, %s4461_s24 }
 0x15d   : > { %v1886_v47 = vpop.permute.xlu1 %1885 }
 0x15e   : > { %v2150_v2 = vsel %vm2138_vm10, %v2117_v35, %v1886_v47  ;;  %v1878_v41 = vpop.permute.xlu0 %1877 }
 0x15f   : > { %4007 = vmatmul.msk.bf16.gmra.mxu1 %vm2195_vm11, %v2150_v2  ;;  %v2142_v12 = vsel %vm2138_vm10, %v2109_v55, %v1878_v41 }
 0x160   : > { %4003 = vmatmul.msk.bf16.gmra.mxu0 %vm2195_vm11, %v2142_v12 }
 0x162   : > { %1761 = vrot.lane.b32.xlu2 %v1650_v62, %s4462_s25 }
 0x163   : > { %1753 = vrot.lane.b32.xlu1 %v1602_v43, %s4462_s25  ;;  %v1776_v8 = vpop.permute.xlu2 %1775 }
 0x164   : > { %1489 = vrot.lane.b32.xlu0 %v5480_v4, %s4463_s26 }
 0x165   : > { %v1256_v22 = vpop.permute.xlu1 %1255 }
 0x166   : > { %v992_v18 = vpop.permute.xlu0 %991  ;;  %v2028_v46 = vsel %vm2006_vm6, %v1995_v32, %v1256_v22 }
 0x167   : > { %v2003_v50 = vsel %vm1973_vm5, %v5154_v37, %v992_v18 }
 0x168   : > { %v2036_v36 = vsel %vm2006_vm6, %v2003_v50, %v1264_v7 }
 0x16b   : > { %1889 = vrot.lane.b32.xlu1 %v1850_v45, %s4464_s27  ;;  %v968_v21 = vpop.permute.xlu2 %967 }
 0x16c   : > { %1881 = vrot.lane.b32.xlu0 %v1838_v28, %s4464_s27 }
 0x16d   : > { %v1392_v26 = vpop.permute.xlu1 %1391 }
 0x16e   : > { %v1384_v63 = vpop.permute.xlu0 %1383  ;;  %v2069_v48 = vsel %vm2039_vm7, %v2036_v36, %v1392_v26 }
 0x16f   : > { %v2061_v27 = vsel %vm2039_vm7, %v2028_v46, %v1384_v63 }
 0x170   : > { %v2094_v37 = vsel %vm2072_vm8, %v2061_v27, %v1496_v39 }
 0x175   : > { %v1768_v4 = vpop.permute.xlu1 %1767 }
 0x176   : > { %v1504_v31 = vpop.permute.xlu0 %1503  ;;  %v2127_v61 = vsel %vm2105_vm9, %v2094_v37, %v1768_v4 }
 0x177   : > { %v2102_v13 = vsel %vm2072_vm8, %v2069_v48, %v1504_v31  ;;  %v1979_v31 = vsel %vm1973_vm5, %v5014_v24, %v968_v21 }
 0x178   : > { %v2135_v42 = vsel %vm2105_vm9, %v2102_v13, %v1776_v8 }
 0x17d   : > { %v1904_v3 = vpop.permute.xlu1 %1903 }
 0x17e   : > { %v2168_v16 = vsel %vm2138_vm10, %v2135_v42, %v1904_v3  ;;  %v1896_v0 = vpop.permute.xlu0 %1895  ;;  %v1248_v42 = vpop.permute.xlu2 %1247 }
 0x17f   : > { %4016 = vmatmul.msk.bf16.gmra.mxu3 %vm2195_vm11, %v2168_v16  ;;  %v2160_v59 = vsel %vm2138_vm10, %v2127_v61, %v1896_v0 }
 0x180   : > { %4012 = vmatmul.msk.bf16.gmra.mxu2 %vm2195_vm11, %v2160_v59 }
 0x182   : > { %v2281_v14 = vpop.f32.mrf.mxu2 }
 0x183   : > { %v2282_v44 = vadd.f32 %v5558_v40, %v2281_v14 }
 0x184   : > { %v2301_v58 = vpop.f32.mrf.mxu3 }
 0x185   : > { %v5563_v34 = vmul.f32 0.70710677, %v2282_v44  ;;  %v5566_v6 = vadd.f32 %v5558_v40, %v2301_v58  ;;  %v5584_v11 = vpop.permute.xlu1 %1239  ;;  %v5605_v45 = vmul.f32 0.5, %v2282_v44 }
 0x186   : > { %v976_v62 = vpop.permute.xlu0 %975 }
 0x187   : > { %v3025_v52 = vmul.f32 %v5563_v34, %v5563_v34  ;;  %v5571_v15 = vmul.f32 0.70710677, %v5566_v6  ;;  %v1987_v24 = vsel %vm1973_vm5, %v5037_v56, %v976_v62 }
 0x189   : > { %v5573_v38 = vmin.f32 %v3025_v52, 16.0  ;;  %v3345_v9 = vmul.f32 %v5571_v15, %v5571_v15 }
 0x18a   : > { %v2283_v19 = vpop.f32.mrf.mxu2 }
 0x18b   : > { %v3027_v10 = vmul.f32 2.1237322e-06, %v5573_v38  ;;  %v3038_v49 = vmul.f32 3.8918573e-05, %v5573_v38  ;;  %v5580_v60 = vadd.f32 %v5558_v40, %v2283_v19  ;;  %v5582_v30 = vmin.f32 %v3345_v9, 16.0 }
 0x18c   : > { %v2303_v29 = vpop.f32.mrf.mxu3 }
 0x18d   : > { %v3028_v47 = vadd.f32 0.00028619796, %v3027_v10  ;;  %v3039_v35 = vadd.f32 0.001143296, %v3038_v49  ;;  %v3347_v57 = vmul.f32 2.1237322e-06, %v5582_v30  ;;  %v5592_v41 = vadd.f32 %v5558_v40, %v2303_v29  ;;  %v1376_v3 = vpop.permute.xlu1 %1375 }
 0x18e   : > { %v3358_v2 = vmul.f32 3.8918573e-05, %v5582_v30  ;;  %v5589_v55 = vmul.f32 0.70710677, %v5580_v60  ;;  %v1368_v58 = vpop.permute.xlu0 %1367 }
 0x18f   : > { %v3029_v12 = vmul.f32 %v3028_v47, %v5573_v38  ;;  %v3040_v43 = vmul.f32 %v3039_v35, %v5573_v38  ;;  %v3348_v1 = vadd.f32 0.00028619796, %v3347_v57  ;;  %v5599_v17 = vmul.f32 0.70710677, %v5592_v41 }
 0x190   : > { %v3359_v53 = vadd.f32 0.001143296, %v3358_v2  ;;  %v3065_v5 = vmul.f32 %v5589_v55, %v5589_v55 }
 0x191   : > { %v3030_v25 = vadd.f32 0.0036580483, %v3029_v12  ;;  %v3041_v22 = vadd.f32 0.014752088, %v3040_v43  ;;  %v3349_v51 = vmul.f32 %v3348_v1, %v5582_v30  ;;  %v3385_v63 = vmul.f32 %v5599_v17, %v5599_v17 }
 0x192   : > { %v3360_v18 = vmul.f32 %v3359_v53, %v5582_v30  ;;  %v5603_v7 = vmin.f32 %v3065_v5, 16.0  ;;  %v2012_v5 = vsel %vm2006_vm6, %v1979_v31, %v5584_v11 }
 0x193   : > { %v3031_v28 = vmul.f32 %v3030_v25, %v5573_v38  ;;  %v3042_v26 = vmul.f32 %v3041_v22, %v5573_v38  ;;  %v3350_v39 = vadd.f32 0.0036580483, %v3349_v51  ;;  %v5617_v8 = vmin.f32 %v3385_v63, 16.0 }
 0x194   : > { %v3361_v50 = vadd.f32 0.014752088, %v3360_v18  ;;  %v3067_v4 = vmul.f32 2.1237322e-06, %v5603_v7  ;;  %v3078_v48 = vmul.f32 3.8918573e-05, %v5603_v7  ;;  %v2020_v63 = vsel %vm2006_vm6, %v1987_v24, %v1248_v42 }
 0x195   : > { %v3032_v36 = vadd.f32 0.05243302, %v3031_v28  ;;  %v3043_v32 = vadd.f32 0.112945676, %v3042_v26  ;;  %v3351_v46 = vmul.f32 %v3350_v39, %v5582_v30  ;;  %v3387_v44 = vmul.f32 2.1237322e-06, %v5617_v8 }
 0x196   : > { %v3362_v13 = vmul.f32 %v3361_v50, %v5582_v30  ;;  %v3068_v27 = vadd.f32 0.00028619796, %v3067_v4  ;;  %v3079_v61 = vadd.f32 0.001143296, %v3078_v48  ;;  %v3398_v10 = vmul.f32 3.8918573e-05, %v5617_v8 }
 0x197   : > { %v3033_v37 = vmul.f32 %v3032_v36, %v5573_v38  ;;  %v3044_v16 = vmul.f32 %v3043_v32, %v5573_v38  ;;  %v3352_v0 = vadd.f32 0.05243302, %v3351_v46  ;;  %v3388_v56 = vadd.f32 0.00028619796, %v3387_v44  ;;  %v1480_v36 = vpop.permute.xlu2 %1479 }
 0x198   : > { %v3363_v59 = vadd.f32 0.112945676, %v3362_v13  ;;  %v3069_v14 = vmul.f32 %v3068_v27, %v5603_v7  ;;  %v3080_v19 = vmul.f32 %v3079_v61, %v5603_v7  ;;  %v3399_v2 = vadd.f32 0.001143296, %v3398_v10 }
 0x199   : > { %v3034_v52 = vadd.f32 0.18741608, %v3033_v37  ;;  %v3045_v9 = vadd.f32 0.4994258, %v3044_v16  ;;  %v3353_v49 = vmul.f32 %v3352_v0, %v5582_v30  ;;  %v3389_v1 = vmul.f32 %v3388_v56, %v5617_v8 }
 0x19a   : > { %v3364_v21 = vmul.f32 %v3363_v59, %v5582_v30  ;;  %v3070_v47 = vadd.f32 0.0036580483, %v3069_v14  ;;  %v3081_v57 = vadd.f32 0.014752088, %v3080_v19  ;;  %v3400_v22 = vmul.f32 %v3399_v2, %v5617_v8 }
 0x19b   : > { %v3035_v35 = vmul.f32 %v3034_v52, %v5573_v38  ;;  %v3046_v29 = vmul.f32 %v3045_v9, %v5573_v38  ;;  %v3354_v62 = vadd.f32 0.18741608, %v3353_v49  ;;  %v3390_v28 = vadd.f32 0.0036580483, %v3389_v1 }
 0x19c   : > { %v3365_v12 = vadd.f32 0.4994258, %v3364_v21  ;;  %v3071_v43 = vmul.f32 %v3070_v47, %v5603_v7  ;;  %v3082_v25 = vmul.f32 %v3081_v57, %v5603_v7  ;;  %v5643_v26 = vmul.f32 0.5, %v5566_v6 }
 0x19d   : > { %v5633_v53 = vadd.f32 1.0, %v3046_v29  ;;  %v3355_v51 = vmul.f32 %v3354_v62, %v5582_v30  ;;  %v2045_v39 = vsel %vm2039_vm7, %v2012_v5, %v1368_v58  ;;  %v3036_v11 = vadd.f32 1.1283791, %v3035_v35  ;;  %v2241_v13 = vpop.f32.mrf.mxu0 }
 0x19e   : > { %v3366_v38 = vmul.f32 %v3365_v12, %v5582_v30  ;;  %v3072_v18 = vadd.f32 0.05243302, %v3071_v43  ;;  %v5650_v4 = vmul.f32 0.5, %v5580_v60  ;;  %v1752_v30 = vpop.permute.xlu1 %1751  ;;  %v3083_v48 = vadd.f32 0.112945676, %v3082_v25  ;;  %v1488_v60 = vpop.permute.xlu0 %1487 }
 0x19f   : > { %4289 = vrcp.f32 %v5633_v53  ;;  %v3059_v32 = vand.u32 2147483648, %v5633_v53  ;;  %v3391_v6 = vmul.f32 %v3390_v28, %v5617_v8  ;;  %v3401_v46 = vadd.f32 0.014752088, %v3400_v22  ;;  %v2261_v22 = vpop.f32.mrf.mxu1 }
 0x1a0   : > { %v5647_v50 = vadd.f32 1.0, %v3366_v38  ;;  %v3073_v31 = vmul.f32 %v3072_v18, %v5603_v7  ;;  %v3057_v27 = vand.u32 2147483647, %v5633_v53  ;;  %v3356_v42 = vadd.f32 1.1283791, %v3355_v51 }
 0x1a1   : > { %v2078_v37 = vsel %vm2072_vm8, %v2045_v39, %v1480_v36  ;;  %v3084_v24 = vmul.f32 %v3083_v48, %v5603_v7  ;;  %v2053_v61 = vsel %vm2039_vm7, %v2020_v63, %v1376_v3  ;;  %v3037_v59 = vmul.f32 %v3036_v11, %v5563_v34 }
 0x1a2   : > { %4291 = vrcp.f32 %v5647_v50  ;;  %v3074_v16 = vadd.f32 0.18741608, %v3073_v31  ;;  %v5661_v0 = vsel %vm2105_vm9, %v2078_v37, %v1752_v30  ;;  %v3392_v14 = vadd.f32 0.05243302, %v3391_v6 }
 0x1a3   : > { %v3402_v44 = vmul.f32 %v3401_v46, %v5617_v8  ;;  %v5666_v58 = vadd.f32 %v5558_v40, %v2241_v13  ;;  %vm3053_vm12 = vweird.f32 %v5633_v53  ;;  %v3060_v9 = vor.u32 1.1754944e-38, %v3059_v32 }
 0x1a4   : > { %v3075_v19 = vmul.f32 %v3074_v16, %v5603_v7  ;;  %v3085_v10 = vadd.f32 0.4994258, %v3084_v24  ;;  %vm5671_vm13 = vcmp.eq.f32.partialorder %v3057_v27, 8.507059e+37  ;;  %v3357_v34 = vmul.f32 %v3356_v42, %v5571_v15 }
 0x1a5   : > { %v4290_v52 = vpop.eup %4289  ;;  %v3393_v21 = vmul.f32 %v3392_v14, %v5617_v8  ;;  %v3403_v47 = vadd.f32 0.112945676, %v3402_v44  ;;  %vm3373_vm14 = vweird.f32 %v5647_v50  ;;  %v3377_v56 = vand.u32 2147483647, %v5647_v50 }
 0x1a6   : > { %v3049_v3 = vmul.f32 %v4290_v52, %v5633_v53  ;;  %v3379_v35 = vand.u32 2147483648, %v5647_v50  ;;  %v3086_v29 = vmul.f32 %v3085_v10, %v5603_v7  ;;  %v5682_v57 = vmul.f32 0.70710677, %v5666_v58  ;;  %v1880_v32 = vpop.permute.xlu0 %1879  ;;  %v1888_v37 = vpop.permute.xlu1 %1887 }
 0x1a7   : > { %v3394_v12 = vadd.f32 0.18741608, %v3393_v21  ;;  %v3404_v43 = vmul.f32 %v3403_v47, %v5617_v8  ;;  %v5686_v15 = vsel %vm2072_vm8, %v2053_v61, %v1488_v60  ;;  %vm3054_vm15 = vweird.f32 %v4290_v52  ;;  %v1760_v60 = vpop.permute.xlu2 %1759 }
 0x1a8   : > { %v4292_v2 = vpop.eup %4291  ;;  %v3050_v62 = vsub.f32 1.0, %v3049_v3  ;;  %v3076_v5 = vadd.f32 1.1283791, %v3075_v19  ;;  %v5689_v25 = vadd.f32 1.0, %v3086_v29  ;;  %v2385_v18 = vmul.f32 %v5682_v57, %v5682_v57  ;;  %vm3055_vm1 = vmor %vm3053_vm12, %vm3054_vm15 }
 0x1a9   : > { %v3369_v1 = vmul.f32 %v4292_v2, %v5647_v50  ;;  %v3395_v7 = vmul.f32 %v3394_v12, %v5617_v8  ;;  %v3405_v38 = vadd.f32 0.4994258, %v3404_v43  ;;  %vm5694_vm0 = vcmp.eq.f32.partialorder %v3377_v56, 8.507059e+37 }
 0x1aa   : > { %v3051_v51 = vmul.f32 %v4290_v52, %v3050_v62  ;;  %v3380_v39 = vor.u32 1.1754944e-38, %v3379_v35  ;;  %4293 = vrcp.f32 %v5689_v25  ;;  %v3099_v31 = vand.u32 2147483648, %v5689_v25 }
 0x1ab   : > { %v3370_v28 = vsub.f32 1.0, %v3369_v1  ;;  %v3406_v30 = vmul.f32 %v3405_v38, %v5617_v8  ;;  %v5702_v36 = vadd.f32 %v5558_v40, %v2261_v22  ;;  %vm3374_vm2 = vweird.f32 %v4292_v2 }
 0x1ac   : > { %v3052_v11 = vadd.f32 %v4290_v52, %v3051_v51  ;;  %v5708_v6 = vmul.f32 %v3076_v5, %v5589_v55  ;;  %v5710_v46 = vmin.f32 %v2385_v18, 16.0  ;;  %v3097_v27 = vand.u32 2147483647, %v5689_v25  ;;  %vm3375_vm4 = vmor %vm3373_vm14, %vm3374_vm2  ;;  %v2243_v18 = vpop.f32.mrf.mxu0 }
 0x1ad   : > { %v3371_v48 = vmul.f32 %v4292_v2, %v3370_v28  ;;  %v3396_v42 = vadd.f32 1.1283791, %v3395_v7  ;;  %v5713_v8 = vadd.f32 1.0, %v3406_v30  ;;  %vm3093_vm12 = vweird.f32 %v5689_v25 }
 0x1ae   : > { %v3056_v13 = vsel %vm3055_vm1, %v4290_v52, %v3052_v11  ;;  %v2387_v24 = vmul.f32 2.1237322e-06, %v5710_v46  ;;  %v2398_v55 = vmul.f32 3.8918573e-05, %v5710_v46  ;;  %v3100_v14 = vor.u32 1.1754944e-38, %v3099_v31  ;;  %v5753_v28 = vpop.permute.xlu0 %993 }
 0x1af   : > { %v3061_v53 = vsel %vm5671_vm13, %v3060_v9, %v3056_v13  ;;  %v3372_v16 = vadd.f32 %v4292_v2, %v3371_v48  ;;  %4295 = vrcp.f32 %v5713_v8  ;;  %v3419_v19 = vand.u32 2147483648, %v5713_v8  ;;  %v5765_v48 = vpop.permute.xlu1 %1257 }
 0x1b0   : > { %v3062_v61 = vmul.f32 %v3061_v53, %v3037_v59  ;;  %v4294_v44 = vpop.eup %4293  ;;  %v2388_v10 = vadd.f32 0.00028619796, %v2387_v24  ;;  %v2399_v9 = vadd.f32 0.001143296, %v2398_v55  ;;  %vm5728_vm13 = vcmp.eq.f32.partialorder %v3097_v27, 8.507059e+37  ;;  %v5768_v27 = vpop.permute.xlu2 %985 }
 0x1b1   : > { %v3376_v52 = vsel %vm3375_vm4, %v4292_v2, %v3372_v16  ;;  %v3089_v59 = vmul.f32 %v4294_v44, %v5689_v25  ;;  %v5733_v21 = vmul.f32 %v3396_v42, %v5599_v17  ;;  %vm3094_vm14 = vweird.f32 %v4294_v44 }
 0x1b2   : > { %v4034_v3 = vclamps-f32 %v3062_v61, 1.0  ;;  %v3381_v49 = vsel %vm5694_vm0, %v3380_v39, %v3376_v52  ;;  %v3417_v56 = vand.u32 2147483647, %v5713_v8  ;;  %v2389_v35 = vmul.f32 %v2388_v10, %v5710_v46  ;;  %vm3095_vm0 = vmor %vm3093_vm12, %vm3094_vm14 }
 0x1b3   : > { %v3382_v47 = vmul.f32 %v3381_v49, %v3357_v34  ;;  %v3090_v2 = vsub.f32 1.0, %v3089_v59  ;;  %v2400_v62 = vmul.f32 %v2399_v9, %v5710_v46  ;;  %v5739_v12 = vmul.f32 0.70710677, %v5702_v36 }
 0x1b4   : > { %v3681_v29 = vadd.f32 1.0, %v4034_v3  ;;  %vm3413_vm15 = vweird.f32 %v5713_v8  ;;  %v3420_v34 = vor.u32 1.1754944e-38, %v3419_v19  ;;  %v2390_v43 = vadd.f32 0.0036580483, %v2389_v35 }
 0x1b5   : > { %v4042_v17 = vclamps-f32 %v3382_v47, 1.0  ;;  %v2144_v1 = vsel %vm2138_vm10, %v5661_v0, %v1880_v32  ;;  %v4296_v5 = vpop.eup %4295  ;;  %v3091_v51 = vmul.f32 %v4294_v44, %v3090_v2  ;;  %v2401_v7 = vadd.f32 0.014752088, %v2400_v62 }
 0x1b6   : > { %v3713_v22 = vmul.f32 %v3681_v29, %v5605_v45  ;;  %v2705_v38 = vmul.f32 %v5739_v12, %v5739_v12  ;;  %4004 = vmatmul.msk.bf16.gmra.mxu0 %vm2195_vm11, %v2144_v1  ;;  %v3409_v39 = vmul.f32 %v4296_v5, %v5713_v8  ;;  %v2391_v11 = vmul.f32 %v2390_v43, %v5710_v46  ;;  %v5800_v8 = vpop.permute.xlu0 %1385 }
 0x1b7   : > { %v3689_v63 = vadd.f32 1.0, %v4042_v17  ;;  %v2119_v0 = vsel %vm2105_vm9, %v5686_v15, %v1760_v60  ;;  %v3092_v45 = vadd.f32 %v4294_v44, %v3091_v51  ;;  %v2402_v31 = vmul.f32 %v2401_v7, %v5710_v46 }
 0x1b8   : > { %3745 = vst.msk [vmem:[%s5744_s12 + $0x80] sm:$0xff] %vm1940_vm3, %v3713_v22  ;;  %v5762_v30 = vmin.f32 %v2705_v38, 16.0  ;;  %v2152_v32 = vsel %vm2138_vm10, %v2119_v0, %v1888_v37  ;;  %v3410_v15 = vsub.f32 1.0, %v3409_v39  ;;  %v2392_v42 = vadd.f32 0.05243302, %v2391_v11 }
 0x1b9   : > { %v3721_v13 = vmul.f32 %v3689_v63, %v5643_v26  ;;  %4008 = vmatmul.msk.bf16.gmra.mxu1 %vm2195_vm11, %v2152_v32  ;;  %v5775_v60 = vadd.f32 %v5558_v40, %v2243_v18  ;;  %v3096_v53 = vsel %vm3095_vm0, %v4294_v44, %v3092_v45  ;;  %v2403_v16 = vadd.f32 0.112945676, %v2402_v31  ;;  %v2263_v26 = vpop.f32.mrf.mxu1  ;;  %v5814_v63 = vpop.permute.xlu2 %1265 }
 0x1ba   : > { %v2707_v37 = vmul.f32 2.1237322e-06, %v5762_v30  ;;  %v2718_v24 = vmul.f32 3.8918573e-05, %v5762_v30  ;;  %v3101_v25 = vsel %vm5728_vm13, %v3100_v14, %v3096_v53  ;;  %v3411_v55 = vmul.f32 %v4296_v5, %v3410_v15 }
 0x1bb   : > { %3753 = vst.msk [vmem:[%s5744_s12 + $0xc0] sm:$0xff] %vm1940_vm3, %v3721_v13  ;;  %vm3414_vm1 = vweird.f32 %v4296_v5  ;;  %v2393_v61 = vmul.f32 %v2392_v42, %v5710_v46  ;;  %v3102_v52 = vmul.f32 %v3101_v25, %v5708_v6  ;;  %v2404_v19 = vmul.f32 %v2403_v16, %v5710_v46 }
 0x1bc   : > { %v2708_v44 = vadd.f32 0.00028619796, %v2707_v37  ;;  %v2719_v10 = vadd.f32 0.001143296, %v2718_v24  ;;  %v3412_v9 = vadd.f32 %v4296_v5, %v3411_v55  ;;  %v5787_v49 = vmul.f32 0.70710677, %v5775_v60  ;;  %vm3415_vm2 = vmor %vm3413_vm15, %vm3414_vm1 }
 0x1bd   : > { %v2394_v3 = vadd.f32 0.18741608, %v2393_v61  ;;  %v5790_v59 = vadd.f32 %v5558_v40, %v2263_v26  ;;  %v4035_v50 = vclamps-f32 %v3102_v52, 1.0  ;;  %v2405_v14 = vadd.f32 0.4994258, %v2404_v19 }
 0x1be   : > { %v2709_v47 = vmul.f32 %v2708_v44, %v5762_v30  ;;  %v2720_v6 = vmul.f32 %v2719_v10, %v5762_v30  ;;  %v3416_v35 = vsel %vm3415_vm2, %v4296_v5, %v3412_v9  ;;  %vm3418_vm4 = vcmp.eq.f32.partialorder %v3417_v56, 8.507059e+37 }
 0x1bf   : > { %v2395_v29 = vmul.f32 %v2394_v3, %v5710_v46  ;;  %v2425_v2 = vmul.f32 %v5787_v49, %v5787_v49  ;;  %v3682_v62 = vadd.f32 1.0, %v4035_v50  ;;  %v3421_v17 = vsel %vm3418_vm4, %v3420_v34, %v3416_v35  ;;  %v5812_v34 = vpop.permute.xlu1 %1393 }
 0x1c0   : > { %v2406_v43 = vmul.f32 %v2405_v14, %v5710_v46  ;;  %v2710_v1 = vadd.f32 0.0036580483, %v2709_v47  ;;  %v3422_v22 = vmul.f32 %v3421_v17, %v5733_v21  ;;  %v2721_v51 = vadd.f32 0.014752088, %v2720_v6 }
 0x1c1   : > { %v5803_v7 = vmin.f32 %v2425_v2, 16.0  ;;  %v3714_v56 = vmul.f32 %v3682_v62, %v5650_v4  ;;  %v5810_v18 = vmul.f32 0.70710677, %v5790_v59  ;;  %v2346_v4 = vmul.f32 0.5, %v5592_v41 }
 0x1c2   : > { %v5806_v5 = vadd.f32 1.0, %v2406_v43  ;;  %v2711_v38 = vmul.f32 %v2710_v1, %v5762_v30  ;;  %v4043_v46 = vclamps-f32 %v3422_v22, 1.0  ;;  %v2722_v39 = vmul.f32 %v2721_v51, %v5762_v30 }
 0x1c3   : > { %v2427_v21 = vmul.f32 2.1237322e-06, %v5803_v7  ;;  %3746 = vst.msk [vmem:[%s5744_s12 + $0x88] sm:$0xff] %vm1940_vm3, %v3714_v56  ;;  %v2396_v11 = vadd.f32 1.1283791, %v2395_v29  ;;  %v2745_v32 = vmul.f32 %v5810_v18, %v5810_v18  ;;  %v1997_v41 = vsel %vm1973_vm5, %v5116_v23, %v5768_v27  ;;  %v1506_v27 = vpop.permute.xlu0 %1505  ;;  %v1498_v29 = vpop.permute.xlu2 %1497 }
 0x1c4   : > { %4297 = vrcp.f32 %v5806_v5  ;;  %v3690_v0 = vadd.f32 1.0, %v4043_v46  ;;  %v2712_v45 = vadd.f32 0.05243302, %v2711_v38  ;;  %v2723_v31 = vadd.f32 0.112945676, %v2722_v39 }
 0x1c5   : > { %v2428_v13 = vadd.f32 0.00028619796, %v2427_v21  ;;  %v2438_v15 = vmul.f32 3.8918573e-05, %v5803_v7  ;;  %v5827_v37 = vmin.f32 %v2745_v32, 16.0  ;;  %v5833_v24 = vmul.f32 0.5, %v5666_v58 }
 0x1c6   : > { %v3722_v42 = vmul.f32 %v3690_v0, %v2346_v4  ;;  %v2713_v53 = vmul.f32 %v2712_v45, %v5762_v30  ;;  %v2724_v16 = vmul.f32 %v2723_v31, %v5762_v30  ;;  %v2397_v55 = vmul.f32 %v2396_v11, %v5682_v57 }
 0x1c7   : > { %v2429_v26 = vmul.f32 %v2428_v13, %v5803_v7  ;;  %v2439_v25 = vadd.f32 0.001143296, %v2438_v15  ;;  %v5840_v61 = vmul.f32 0.5, %v5702_v36  ;;  %v2747_v23 = vmul.f32 2.1237322e-06, %v5827_v37  ;;  %v1770_v35 = vpop.permute.xlu1 %1769 }
 0x1c8   : > { %3754 = vst.msk [vmem:[%s5744_s12 + $0xc8] sm:$0xff] %vm1940_vm3, %v3722_v42  ;;  %v2714_v52 = vadd.f32 0.18741608, %v2713_v53  ;;  %v2725_v19 = vadd.f32 0.4994258, %v2724_v16  ;;  %vm2413_vm12 = vweird.f32 %v5806_v5  ;;  %v2419_v62 = vand.u32 2147483648, %v5806_v5 }
 0x1c9   : > { %v2430_v10 = vadd.f32 0.0036580483, %v2429_v26  ;;  %v2440_v9 = vmul.f32 %v2439_v25, %v5803_v7  ;;  %v2758_v58 = vmul.f32 3.8918573e-05, %v5827_v37  ;;  %v2417_v57 = vand.u32 2147483647, %v5806_v5 }
 0x1ca   : > { %v4298_v44 = vpop.eup %4297  ;;  %v2726_v36 = vmul.f32 %v2725_v19, %v5762_v30  ;;  %v2748_v47 = vadd.f32 0.00028619796, %v2747_v23  ;;  %v2715_v17 = vmul.f32 %v2714_v52, %v5762_v30  ;;  %v2005_v46 = vsel %vm1973_vm5, %v5146_v20, %v5753_v28 }
 0x1cb   : > { %v2409_v3 = vmul.f32 %v4298_v44, %v5806_v5  ;;  %v2431_v50 = vmul.f32 %v2430_v10, %v5803_v7  ;;  %v2441_v14 = vadd.f32 0.014752088, %v2440_v9  ;;  %v2759_v6 = vadd.f32 0.001143296, %v2758_v58  ;;  %v1898_v26 = vpop.permute.xlu0 %1897 }
 0x1cc   : > { %v5852_v43 = vadd.f32 1.0, %v2726_v36  ;;  %v2749_v51 = vmul.f32 %v2748_v47, %v5827_v37  ;;  %vm2414_vm13 = vweird.f32 %v4298_v44  ;;  %vm5861_vm14 = vcmp.eq.f32.partialorder %v2417_v57, 8.507059e+37  ;;  %v1778_v36 = vpop.permute.xlu2 %1777 }
 0x1cd   : > { %v2410_v2 = vsub.f32 1.0, %v2409_v3  ;;  %v2432_v1 = vadd.f32 0.05243302, %v2431_v50  ;;  %v2442_v22 = vmul.f32 %v2441_v14, %v5803_v7  ;;  %v2760_v56 = vmul.f32 %v2759_v6, %v5827_v37  ;;  %vm2415_vm15 = vmor %vm2413_vm12, %vm2414_vm13  ;;  %v2286_v3 = vpop.f32.mrf.mxu2 }
 0x1ce   : > { %4299 = vrcp.f32 %v5852_v43  ;;  %v2030_v4 = vsel %vm2006_vm6, %v1997_v41, %v5765_v48  ;;  %v2750_v0 = vadd.f32 0.0036580483, %v2749_v51  ;;  %v2420_v20 = vor.u32 1.1754944e-38, %v2419_v62 }
 0x1cf   : > { %v2411_v38 = vmul.f32 %v4298_v44, %v2410_v2  ;;  %v2433_v30 = vmul.f32 %v2432_v1, %v5803_v7  ;;  %v2443_v21 = vadd.f32 0.112945676, %v2442_v22  ;;  %v2761_v45 = vadd.f32 0.014752088, %v2760_v56  ;;  %v1906_v58 = vpop.permute.xlu1 %1905  ;;  %v2306_v1 = vpop.f32.mrf.mxu3 }
 0x1d0   : > { %v2063_v31 = vsel %vm2039_vm7, %v2030_v4, %v5800_v8  ;;  %v2716_v28 = vadd.f32 1.1283791, %v2715_v17  ;;  %v2038_v13 = vsel %vm2006_vm6, %v2005_v46, %v5814_v63  ;;  %v2751_v42 = vmul.f32 %v2750_v0, %v5827_v37 }
 0x1d1   : > { %v2412_v11 = vadd.f32 %v4298_v44, %v2411_v38  ;;  %v2444_v32 = vmul.f32 %v2443_v21, %v5803_v7  ;;  %v2762_v48 = vmul.f32 %v2761_v45, %v5827_v37  ;;  %v2071_v53 = vsel %vm2039_vm7, %v2038_v13, %v5812_v34 }
 0x1d2   : > { %v2434_v5 = vadd.f32 0.18741608, %v2433_v30  ;;  %v2096_v41 = vsel %vm2072_vm8, %v2063_v31, %v1498_v29  ;;  %v2752_v19 = vadd.f32 0.05243302, %v2751_v42  ;;  %v2739_v9 = vand.u32 2147483648, %v5852_v43 }
 0x1d3   : > { %v2416_v15 = vsel %vm2415_vm15, %v4298_v44, %v2412_v11  ;;  %v2445_v16 = vadd.f32 0.4994258, %v2444_v32  ;;  %v2763_v63 = vadd.f32 0.112945676, %v2762_v48  ;;  %v2104_v44 = vsel %vm2072_vm8, %v2071_v53, %v1506_v27 }
 0x1d4   : > { %v2421_v8 = vsel %vm5861_vm14, %v2420_v20, %v2416_v15  ;;  %v4300_v25 = vpop.eup %4299  ;;  %v2129_v23 = vsel %vm2105_vm9, %v2096_v41, %v1770_v35  ;;  %v2753_v50 = vmul.f32 %v2752_v19, %v5827_v37  ;;  %v2435_v27 = vmul.f32 %v2434_v5, %v5803_v7 }
 0x1d5   : > { %v2422_v52 = vmul.f32 %v2421_v8, %v2397_v55  ;;  %v2729_v10 = vmul.f32 %v4300_v25, %v5852_v43  ;;  %v2446_v34 = vmul.f32 %v2445_v16, %v5803_v7  ;;  %v2764_v55 = vmul.f32 %v2763_v63, %v5827_v37  ;;  %v2288_v42 = vpop.f32.mrf.mxu2 }
 0x1d6   : > { %v2162_v14 = vsel %vm2138_vm10, %v2129_v23, %v1898_v26  ;;  %v2137_v29 = vsel %vm2105_vm9, %v2104_v44, %v1778_v36  ;;  %v2754_v2 = vadd.f32 0.18741608, %v2753_v50  ;;  %vm2734_vm0 = vweird.f32 %v4300_v25 }
 0x1d7   : > { %v4018_v57 = vclamps-f32 %v2422_v52, 1.0  ;;  %v2730_v47 = vsub.f32 1.0, %v2729_v10  ;;  %v5891_v6 = vadd.f32 1.0, %v2446_v34  ;;  %4013 = vmatmul.msk.bf16.gmra.mxu2 %vm2195_vm11, %v2162_v14  ;;  %v2765_v62 = vadd.f32 0.4994258, %v2764_v55  ;;  %v2308_v63 = vpop.f32.mrf.mxu3  ;;  %v5946_v10 = vpop.permute.xlu2 %969 }
 0x1d8   : > { %v2170_v17 = vsel %vm2138_vm10, %v2137_v29, %v1906_v58  ;;  %v2737_v51 = vand.u32 2147483647, %v5852_v43  ;;  %v2717_v56 = vmul.f32 %v2716_v28, %v5739_v12  ;;  %v2755_v38 = vmul.f32 %v2754_v2, %v5827_v37 }
 0x1d9   : > { %v3665_v35 = vadd.f32 1.0, %v4018_v57  ;;  %v2731_v22 = vmul.f32 %v4300_v25, %v2730_v47  ;;  %4301 = vrcp.f32 %v5891_v6  ;;  %4017 = vmatmul.msk.bf16.gmra.mxu3 %vm2195_vm11, %v2170_v17  ;;  %v2766_v46 = vmul.f32 %v2765_v62, %v5827_v37  ;;  %v5966_v62 = vpop.permute.xlu1 %1241  ;;  %v5968_v17 = vpop.permute.xlu0 %977 }
 0x1da   : > { %vm2733_vm1 = vweird.f32 %v5852_v43  ;;  %v2436_v30 = vadd.f32 1.1283791, %v2435_v27  ;;  %v5905_v21 = vadd.f32 %v5558_v40, %v2286_v3  ;;  %v2740_v4 = vor.u32 1.1754944e-38, %v2739_v9 }
 0x1db   : > { %v3697_v7 = vmul.f32 %v3665_v35, %v5833_v24  ;;  %v2732_v39 = vadd.f32 %v4300_v25, %v2731_v22  ;;  %vm2735_vm2 = vmor %vm2733_vm1, %vm2734_vm0  ;;  %v2457_v11 = vand.u32 2147483647, %v5891_v6  ;;  %v5910_v24 = vadd.f32 1.0, %v2766_v46 }
 0x1dc   : > { %v5913_v12 = vadd.f32 %v5558_v40, %v2306_v1  ;;  %vm2738_vm4 = vcmp.eq.f32.partialorder %v2737_v51, 8.507059e+37  ;;  %v2459_v37 = vand.u32 2147483648, %v5891_v6  ;;  %v5917_v43 = vmul.f32 0.70710677, %v5905_v21 }
 0x1dd   : > { %3729 = vst.msk [vmem:[%s5744_s12] sm:$0xff] %vm1940_vm3, %v3697_v7  ;;  %v2736_v0 = vsel %vm2735_vm2, %v4300_v25, %v2732_v39  ;;  %v5920_v31 = vmul.f32 0.5, %v5775_v60  ;;  %v2756_v20 = vadd.f32 1.1283791, %v2755_v38  ;;  %4303 = vrcp.f32 %v5910_v24 }
 0x1de   : > { %v2741_v45 = vsel %vm2738_vm4, %v2740_v4, %v2736_v0  ;;  %v2437_v13 = vmul.f32 %v2436_v30, %v5787_v49  ;;  %vm2453_vm12 = vweird.f32 %v5891_v6  ;;  %v3105_v15 = vmul.f32 %v5917_v43, %v5917_v43 }
 0x1df   : > { %v4302_v28 = vpop.eup %4301  ;;  %v2742_v32 = vmul.f32 %v2741_v45, %v2717_v56  ;;  %vm5928_vm13 = vcmp.eq.f32.partialorder %v2457_v11, 8.507059e+37  ;;  %v2779_v60 = vand.u32 2147483648, %v5910_v24  ;;  %v5934_v8 = vmul.f32 0.70710677, %v5913_v12 }
 0x1e0   : > { %v2449_v48 = vmul.f32 %v4302_v28, %v5891_v6  ;;  %v2460_v16 = vor.u32 1.1754944e-38, %v2459_v37  ;;  %v2777_v49 = vand.u32 2147483647, %v5910_v24  ;;  %v5937_v41 = vmin.f32 %v3105_v15, 16.0 }
 0x1e1   : > { %v4026_v5 = vclamps-f32 %v2742_v32, 1.0  ;;  %v2757_v25 = vmul.f32 %v2756_v20, %v5810_v18  ;;  %v3425_v52 = vmul.f32 %v5934_v8, %v5934_v8  ;;  %v5943_v19 = vadd.f32 %v5558_v40, %v2288_v42  ;;  %v1250_v20 = vpop.permute.xlu2 %1249  ;;  %v1378_v55 = vpop.permute.xlu1 %1377 }
 0x1e2   : > { %v2450_v26 = vsub.f32 1.0, %v2449_v48  ;;  %vm2454_vm14 = vweird.f32 %v4302_v28  ;;  %vm2773_vm15 = vweird.f32 %v5910_v24  ;;  %v3107_v9 = vmul.f32 2.1237322e-06, %v5937_v41 }
 0x1e3   : > { %v3673_v44 = vadd.f32 1.0, %v4026_v5  ;;  %v3118_v34 = vmul.f32 3.8918573e-05, %v5937_v41  ;;  %v4304_v23 = vpop.eup %4303  ;;  %v2780_v58 = vor.u32 1.1754944e-38, %v2779_v60  ;;  %v5950_v3 = vmin.f32 %v3425_v52, 16.0  ;;  %vm2455_vm1 = vmor %vm2453_vm12, %vm2454_vm14 }
 0x1e4   : > { %v2451_v18 = vmul.f32 %v4302_v28, %v2450_v26  ;;  %v5953_v57 = vmul.f32 0.70710677, %v5943_v19  ;;  %v2769_v50 = vmul.f32 %v4304_v23, %v5910_v24  ;;  %vm5957_vm0 = vcmp.eq.f32.partialorder %v2777_v49, 8.507059e+37 }
 0x1e5   : > { %v3705_v36 = vmul.f32 %v3673_v44, %v5840_v61  ;;  %v3108_v14 = vadd.f32 0.00028619796, %v3107_v9  ;;  %v5962_v47 = vadd.f32 %v5558_v40, %v2308_v63  ;;  %v3119_v29 = vadd.f32 0.001143296, %v3118_v34 }
 0x1e6   : > { %v2452_v27 = vadd.f32 %v4302_v28, %v2451_v18  ;;  %v3427_v35 = vmul.f32 2.1237322e-06, %v5950_v3  ;;  %v3438_v2 = vmul.f32 3.8918573e-05, %v5950_v3  ;;  %v2770_v61 = vsub.f32 1.0, %v2769_v50 }
 0x1e7   : > { %3737 = vst.msk [vmem:[%s5744_s12 + $0x40] sm:$0xff] %vm1940_vm3, %v3705_v36  ;;  %vm2774_vm2 = vweird.f32 %v4304_v23  ;;  %v3109_v40 = vmul.f32 %v3108_v14, %v5937_v41  ;;  %v3145_v1 = vmul.f32 %v5953_v57, %v5953_v57  ;;  %v3120_v51 = vmul.f32 %v3119_v29, %v5937_v41 }
 0x1e8   : > { %v2456_v22 = vsel %vm2455_vm1, %v4302_v28, %v2452_v27  ;;  %v3428_v7 = vadd.f32 0.00028619796, %v3427_v35  ;;  %v3439_v56 = vadd.f32 0.001143296, %v3438_v2  ;;  %v2771_v46 = vmul.f32 %v4304_v23, %v2770_v61  ;;  %vm2775_vm4 = vmor %vm2773_vm15, %vm2774_vm2 }
 0x1e9   : > { %v2461_v38 = vsel %vm5928_vm13, %v2460_v16, %v2456_v22  ;;  %v3110_v39 = vadd.f32 0.0036580483, %v3109_v40  ;;  %v5981_v30 = vmin.f32 %v3145_v1, 16.0  ;;  %v3121_v4 = vadd.f32 0.014752088, %v3120_v51 }
 0x1ea   : > { %v2462_v6 = vmul.f32 %v2461_v38, %v2437_v13  ;;  %v3429_v11 = vmul.f32 %v3428_v7, %v5950_v3  ;;  %v3440_v0 = vmul.f32 %v3439_v56, %v5950_v3  ;;  %v2772_v37 = vadd.f32 %v4304_v23, %v2771_v46 }
 0x1eb   : > { %v3111_v45 = vmul.f32 %v3110_v39, %v5937_v41  ;;  %v3147_v28 = vmul.f32 2.1237322e-06, %v5981_v30  ;;  %v3158_v32 = vmul.f32 3.8918573e-05, %v5981_v30  ;;  %v3122_v13 = vmul.f32 %v3121_v4, %v5937_v41  ;;  %v1482_v4 = vpop.permute.xlu2 %1481 }
 0x1ec   : > { %v4019_v15 = vclamps-f32 %v2462_v6, 1.0  ;;  %v3430_v42 = vadd.f32 0.0036580483, %v3429_v11  ;;  %v3441_v48 = vadd.f32 0.014752088, %v3440_v0  ;;  %v2776_v53 = vsel %vm2775_vm4, %v4304_v23, %v2772_v37 }
 0x1ed   : > { %v3112_v60 = vadd.f32 0.05243302, %v3111_v45  ;;  %v3148_v5 = vadd.f32 0.00028619796, %v3147_v28  ;;  %v3159_v16 = vadd.f32 0.001143296, %v3158_v32  ;;  %v2781_v26 = vsel %vm5957_vm0, %v2780_v58, %v2776_v53  ;;  %v1370_v58 = vpop.permute.xlu0 %1369 }
 0x1ee   : > { %v3666_v49 = vadd.f32 1.0, %v4019_v15  ;;  %v3123_v52 = vadd.f32 0.112945676, %v3122_v13  ;;  %v3431_v63 = vmul.f32 %v3430_v42, %v5950_v3  ;;  %v2782_v44 = vmul.f32 %v2781_v26, %v2757_v25 }
 0x1ef   : > { %v3113_v24 = vmul.f32 %v3112_v60, %v5937_v41  ;;  %v3442_v9 = vmul.f32 %v3441_v48, %v5950_v3  ;;  %v3149_v34 = vmul.f32 %v3148_v5, %v5981_v30  ;;  %v3160_v50 = vmul.f32 %v3159_v16, %v5981_v30  ;;  %v1754_v5 = vpop.permute.xlu1 %1753 }
 0x1f0   : > { %v3698_v23 = vmul.f32 %v3666_v49, %v5920_v31  ;;  %v3124_v18 = vmul.f32 %v3123_v52, %v5937_v41  ;;  %v3432_v36 = vadd.f32 0.05243302, %v3431_v63  ;;  %v4027_v14 = vclamps-f32 %v2782_v44, 1.0  ;;  %v2246_v52 = vpop.f32.mrf.mxu0 }
 0x1f1   : > { %v3114_v27 = vadd.f32 0.18741608, %v3113_v24  ;;  %v3443_v29 = vadd.f32 0.112945676, %v3442_v9  ;;  %v2330_v25 = vmul.f32 0.5, %v5790_v59  ;;  %v1989_v39 = vsel %vm1973_vm5, %v4945_v54, %v5968_v17 }
 0x1f2   : > { %3730 = vst.msk [vmem:[%s5744_s12 + $0x8] sm:$0xff] %vm1940_vm3, %v3698_v23  ;;  %v3125_v35 = vadd.f32 0.4994258, %v3124_v18  ;;  %v3433_v2 = vmul.f32 %v3432_v36, %v5950_v3  ;;  %v3150_v61 = vadd.f32 0.0036580483, %v3149_v34  ;;  %v3674_v40 = vadd.f32 1.0, %v4027_v14 }
 0x1f3   : > { %v3115_v31 = vmul.f32 %v3114_v27, %v5937_v41  ;;  %v3444_v1 = vmul.f32 %v3443_v29, %v5950_v3  ;;  %v3161_v22 = vadd.f32 0.014752088, %v3160_v50  ;;  %v6010_v38 = vmul.f32 0.70710677, %v5962_v47 }
 0x1f4   : > { %v3126_v51 = vmul.f32 %v3125_v35, %v5937_v41  ;;  %v3434_v7 = vadd.f32 0.18741608, %v3433_v2  ;;  %v3151_v56 = vmul.f32 %v3150_v61, %v5981_v30  ;;  %v3706_v59 = vmul.f32 %v3674_v40, %v2330_v25  ;;  %v1762_v2 = vpop.permute.xlu2 %1761 }
 0x1f5   : > { %v3445_v46 = vadd.f32 0.4994258, %v3444_v1  ;;  %v3162_v6 = vmul.f32 %v3161_v22, %v5981_v30  ;;  %v1981_v11 = vsel %vm1973_vm5, %v5004_v33, %v5946_v10  ;;  %v3465_v37 = vmul.f32 %v6010_v38, %v6010_v38 }
 0x1f6   : > { %v6019_v41 = vadd.f32 1.0, %v3126_v51  ;;  %v3152_v0 = vadd.f32 0.05243302, %v3151_v56  ;;  %3738 = vst.msk [vmem:[%s5744_s12 + $0x48] sm:$0xff] %vm1940_vm3, %v3706_v59  ;;  %v3116_v45 = vadd.f32 1.1283791, %v3115_v31  ;;  %v3435_v28 = vmul.f32 %v3434_v7, %v5950_v3  ;;  %v2266_v31 = vpop.f32.mrf.mxu1 }
 0x1f7   : > { %v3446_v54 = vmul.f32 %v3445_v46, %v5950_v3  ;;  %v3163_v17 = vadd.f32 0.112945676, %v3162_v6  ;;  %v2014_v33 = vsel %vm2006_vm6, %v1981_v11, %v5966_v62  ;;  %v2022_v10 = vsel %vm2006_vm6, %v1989_v39, %v1250_v20  ;;  %v1490_v20 = vpop.permute.xlu0 %1489 }
 0x1f8   : > { %4305 = vrcp.f32 %v6019_v41  ;;  %v3139_v32 = vand.u32 2147483648, %v6019_v41  ;;  %v3153_v13 = vmul.f32 %v3152_v0, %v5981_v30  ;;  %v2047_v48 = vsel %vm2039_vm7, %v2014_v33, %v1370_v58 }
 0x1f9   : > { %v6032_v15 = vadd.f32 1.0, %v3446_v54  ;;  %v3164_v42 = vmul.f32 %v3163_v17, %v5981_v30  ;;  %v6038_v3 = vmul.f32 0.5, %v5905_v21  ;;  %v6041_v53 = vmul.f32 0.5, %v5913_v12 }
 0x1fa   : > { %v6043_v60 = vmin.f32 %v3465_v37, 16.0  ;;  %v2055_v62 = vsel %vm2039_vm7, %v2022_v10, %v1378_v55  ;;  %v6047_v16 = vmul.f32 %v3116_v45, %v5917_v43  ;;  %v3137_v49 = vand.u32 2147483647, %v6019_v41  ;;  %v6063_v55 = vld [vmem:[%s6861_s2] ss:$0 sm:$0xff] }
 0x1fb   : > { %v3436_v26 = vadd.f32 1.1283791, %v3435_v28  ;;  %4307 = vrcp.f32 %v6032_v15  ;;  %v3140_v21 = vor.u32 1.1754944e-38, %v3139_v32  ;;  %v3154_v63 = vadd.f32 0.18741608, %v3153_v13  ;;  %v1890_v28 = vpop.permute.xlu1 %1889 }
 0x1fc   : > { %v3165_v44 = vadd.f32 0.4994258, %v3164_v42  ;;  %v2080_v12 = vsel %vm2072_vm8, %v2047_v48, %v1482_v4  ;;  %vm3133_vm5 = vweird.f32 %v6019_v41  ;;  %v3457_v24 = vand.u32 2147483647, %v6032_v15 }
 0x1fd   : > { %v3467_v9 = vmul.f32 2.1237322e-06, %v6043_v60  ;;  %v3478_v43 = vmul.f32 3.8918573e-05, %v6043_v60  ;;  %v2113_v34 = vsel %vm2105_vm9, %v2080_v12, %v1754_v5  ;;  %v3459_v18 = vand.u32 2147483648, %v6032_v15 }
 0x1fe   : > { %v4306_v23 = vpop.eup %4305  ;;  %v3155_v36 = vmul.f32 %v3154_v63, %v5981_v30  ;;  %v3166_v50 = vmul.f32 %v3165_v44, %v5981_v30  ;;  %v6066_v58 = vadd.f32 %v6063_v55, %v2246_v52  ;;  %vm6069_vm6 = vcmp.eq.f32.partialorder %v3137_v49, 8.507059e+37 }
 0x1ff   : > { %v3129_v14 = vmul.f32 %v4306_v23, %v6019_v41  ;;  %v3468_v29 = vadd.f32 0.00028619796, %v3467_v9  ;;  %v3479_v25 = vadd.f32 0.001143296, %v3478_v43  ;;  %v2088_v35 = vsel %vm2072_vm8, %v2055_v62, %v1490_v20  ;;  %v1882_v54 = vpop.permute.xlu0 %1881 }
 0x200   : > { %v3437_v30 = vmul.f32 %v3436_v26, %v5934_v8  ;;  %vm3453_vm7 = vweird.f32 %v6032_v15  ;;  %v6076_v61 = vadd.f32 1.0, %v3166_v50  ;;  %v6079_v40 = vmul.f32 0.70710677, %v6066_v58 }
 0x201   : > { %v4308_v1 = vpop.eup %4307  ;;  %v3130_v22 = vsub.f32 1.0, %v3129_v14  ;;  %v3156_v51 = vadd.f32 1.1283791, %v3155_v36  ;;  %v3469_v7 = vmul.f32 %v3468_v29, %v6043_v60  ;;  %v3480_v56 = vmul.f32 %v3479_v25, %v6043_v60 }
 0x202   : > { %v3449_v59 = vmul.f32 %v4308_v1, %v6032_v15  ;;  %vm6084_vm8 = vcmp.eq.f32.partialorder %v3457_v24, 8.507059e+37  ;;  %v3460_v8 = vor.u32 1.1754944e-38, %v3459_v18  ;;  %4309 = vrcp.f32 %v6076_v61 }
 0x203   : > { %v2121_v39 = vsel %vm2105_vm9, %v2088_v35, %v1762_v2  ;;  %v3131_v6 = vmul.f32 %v4306_v23, %v3130_v22  ;;  %vm3134_vm12 = vweird.f32 %v4306_v23  ;;  %vm3454_vm13 = vweird.f32 %v4308_v1 }
 0x204   : > { %v6091_v4 = vadd.f32 %v6063_v55, %v2266_v31  ;;  %v3450_v11 = vsub.f32 1.0, %v3449_v59  ;;  %v3470_v0 = vadd.f32 0.0036580483, %v3469_v7  ;;  %v3481_v37 = vadd.f32 0.014752088, %v3480_v56  ;;  %vm3135_vm9 = vmor %vm3133_vm5, %vm3134_vm12 }
 0x205   : > { %v2465_v45 = vmul.f32 %v6079_v40, %v6079_v40  ;;  %v3132_v17 = vadd.f32 %v4306_v23, %v3131_v6  ;;  %v6096_v32 = vmul.f32 %v3156_v51, %v5953_v57  ;;  %v3177_v33 = vand.u32 2147483647, %v6076_v61  ;;  %vm3455_vm15 = vmor %vm3453_vm7, %vm3454_vm13 }
 0x206   : > { %v3179_v10 = vand.u32 2147483648, %v6076_v61  ;;  %v3451_v13 = vmul.f32 %v4308_v1, %v3450_v11  ;;  %v3471_v42 = vmul.f32 %v3470_v0, %v6043_v60  ;;  %v3482_v48 = vmul.f32 %v3481_v37, %v6043_v60 }
 0x207   : > { %v6104_v62 = vmin.f32 %v2465_v45, 16.0  ;;  %v3136_v5 = vsel %vm3135_vm9, %v4306_v23, %v3132_v17  ;;  %vm3173_vm14 = vweird.f32 %v6076_v61  ;;  %v6108_v57 = vmul.f32 0.70710677, %v6091_v4 }
 0x208   : > { %v2146_v20 = vsel %vm2138_vm10, %v2113_v34, %v1882_v54  ;;  %v2154_v49 = vsel %vm2138_vm10, %v2121_v39, %v1890_v28  ;;  %v4310_v26 = vpop.eup %4309  ;;  %v3141_v41 = vsel %vm6069_vm6, %v3140_v21, %v3136_v5  ;;  %v3452_v52 = vadd.f32 %v4308_v1, %v3451_v13  ;;  %v2248_v54 = vpop.f32.mrf.mxu0 }
 0x209   : > { %v3472_v63 = vadd.f32 0.05243302, %v3471_v42  ;;  %v3483_v44 = vadd.f32 0.112945676, %v3482_v48  ;;  %4005 = vmatmul.msk.bf16.gmra.mxu0 %vm2195_vm11, %v2146_v20  ;;  %4009 = vmatmul.msk.bf16.gmra.mxu1 %vm2195_vm11, %v2154_v49  ;;  %v3142_v12 = vmul.f32 %v3141_v41, %v6047_v16  ;;  %v3169_v24 = vmul.f32 %v4310_v26, %v6076_v61  ;;  %v2268_v48 = vpop.f32.mrf.mxu1 }
 0x20a   : > { %vm3174_vm10 = vweird.f32 %v4310_v26  ;;  %vm6121_vm0 = vcmp.eq.f32.partialorder %v3177_v33, 8.507059e+37  ;;  %v2467_v21 = vmul.f32 2.1237322e-06, %v6104_v62  ;;  %v3456_v43 = vsel %vm3455_vm15, %v4308_v1, %v3452_v52 }
 0x20b   : > { %v3473_v34 = vmul.f32 %v3472_v63, %v6043_v60  ;;  %v3484_v23 = vmul.f32 %v3483_v44, %v6043_v60  ;;  %v2478_v16 = vmul.f32 3.8918573e-05, %v6104_v62  ;;  %v4036_v18 = vclamps-f32 %v3142_v12, 1.0  ;;  %vm3175_vm11 = vmor %vm3173_vm14, %vm3174_vm10 }
 0x20c   : > { %v3461_v15 = vsel %vm6084_vm8, %v3460_v8, %v3456_v43  ;;  %v3170_v36 = vsub.f32 1.0, %v3169_v24  ;;  %v2468_v50 = vadd.f32 0.00028619796, %v2467_v21  ;;  %v2785_v1 = vmul.f32 %v6108_v57, %v6108_v57 }
 0x20d   : > { %v3462_v14 = vmul.f32 %v3461_v15, %v3437_v30  ;;  %v3474_v27 = vadd.f32 0.18741608, %v3473_v34  ;;  %v3485_v29 = vadd.f32 0.4994258, %v3484_v23  ;;  %v2479_v25 = vadd.f32 0.001143296, %v2478_v16 }
 0x20e   : > { %v3683_v35 = vadd.f32 1.0, %v4036_v18  ;;  %v3171_v2 = vmul.f32 %v4310_v26, %v3170_v36  ;;  %v2469_v31 = vmul.f32 %v2468_v50, %v6104_v62  ;;  %v3180_v51 = vor.u32 1.1754944e-38, %v3179_v10 }
 0x20f   : > { %v4044_v22 = vclamps-f32 %v3462_v14, 1.0  ;;  %v3486_v7 = vmul.f32 %v3485_v29, %v6043_v60  ;;  %v2480_v56 = vmul.f32 %v2479_v25, %v6104_v62  ;;  %v6137_v8 = vmin.f32 %v2785_v1, 16.0 }
 0x210   : > { %v3715_v59 = vmul.f32 %v3683_v35, %v6038_v3  ;;  %v3172_v30 = vadd.f32 %v4310_v26, %v3171_v2  ;;  %v2470_v46 = vadd.f32 0.0036580483, %v2469_v31  ;;  %v3475_v6 = vmul.f32 %v3474_v27, %v6043_v60 }
 0x211   : > { %v3691_v39 = vadd.f32 1.0, %v4044_v22  ;;  %v6143_v11 = vadd.f32 1.0, %v3486_v7  ;;  %v2481_v0 = vadd.f32 0.014752088, %v2480_v56  ;;  %v2787_v45 = vmul.f32 2.1237322e-06, %v6137_v8 }
 0x212   : > { %3747 = vst.msk [vmem:[%s5744_s12 + $0x90] sm:$0xff] %vm1940_vm3, %v3715_v59  ;;  %v3176_v37 = vsel %vm3175_vm11, %v4310_v26, %v3172_v30  ;;  %v2471_v3 = vmul.f32 %v2470_v46, %v6104_v62  ;;  %v2798_v28 = vmul.f32 3.8918573e-05, %v6137_v8  ;;  %v2249_v42 = vadd.f32 %v6063_v55, %v2248_v54 }
 0x213   : > { %v3723_v17 = vmul.f32 %v3691_v39, %v6041_v53  ;;  %v3181_v61 = vsel %vm6121_vm0, %v3180_v51, %v3176_v37  ;;  %4311 = vrcp.f32 %v6143_v11  ;;  %v2482_v10 = vmul.f32 %v2481_v0, %v6104_v62 }
 0x214   : > { %v3182_v60 = vmul.f32 %v3181_v61, %v6096_v32  ;;  %v2472_v33 = vadd.f32 0.05243302, %v2471_v3  ;;  %v2788_v13 = vadd.f32 0.00028619796, %v2787_v45  ;;  %v2340_v5 = vmul.f32 0.5, %v5943_v19 }
 0x215   : > { %3755 = vst.msk [vmem:[%s5744_s12 + $0xd0] sm:$0xff] %vm1940_vm3, %v3723_v17  ;;  %v3476_v53 = vadd.f32 1.1283791, %v3475_v6  ;;  %v2799_v49 = vadd.f32 0.001143296, %v2798_v28  ;;  %v6161_v26 = vmul.f32 0.5, %v5962_v47  ;;  %v6169_v24 = vadd.f32 %v6063_v55, %v2268_v48 }
 0x216   : > { %v4037_v20 = vclamps-f32 %v3182_v60, 1.0  ;;  %v2473_v41 = vmul.f32 %v2472_v33, %v6104_v62  ;;  %v2483_v32 = vadd.f32 0.112945676, %v2482_v10  ;;  %v2789_v52 = vmul.f32 %v2788_v13, %v6137_v8 }
 0x217   : > { %v2800_v44 = vmul.f32 %v2799_v49, %v6137_v8  ;;  %v6166_v12 = vmul.f32 0.70710677, %v2249_v42  ;;  %v6172_v9 = vmul.f32 0.5, %v6066_v58  ;;  %v6176_v21 = vmul.f32 0.5, %v6091_v4 }
 0x218   : > { %v3684_v63 = vadd.f32 1.0, %v4037_v20  ;;  %v2484_v47 = vmul.f32 %v2483_v32, %v6104_v62  ;;  %v2790_v43 = vadd.f32 0.0036580483, %v2789_v52  ;;  %v3477_v23 = vmul.f32 %v3476_v53, %v6010_v38  ;;  %v2291_v32 = vpop.f32.mrf.mxu2 }
 0x219   : > { %v4312_v19 = vpop.eup %4311  ;;  %v2801_v18 = vadd.f32 0.014752088, %v2800_v44  ;;  %v2474_v15 = vadd.f32 0.18741608, %v2473_v41  ;;  %v2505_v58 = vmul.f32 %v6166_v12, %v6166_v12  ;;  %v3497_v4 = vand.u32 2147483647, %v6143_v11 }
 0x21a   : > { %v3716_v34 = vmul.f32 %v3684_v63, %v2340_v5  ;;  %v3489_v16 = vmul.f32 %v4312_v19, %v6143_v11  ;;  %v2485_v36 = vadd.f32 0.4994258, %v2484_v47  ;;  %v2791_v50 = vmul.f32 %v2790_v43, %v6137_v8 }
 0x21b   : > { %v2802_v27 = vmul.f32 %v2801_v18, %v6137_v8  ;;  %v6188_v29 = vmul.f32 0.70710677, %v6169_v24  ;;  %v3499_v38 = vand.u32 2147483648, %v6143_v11  ;;  %v6192_v2 = vmin.f32 %v2505_v58, 16.0 }
 0x21c   : > { %3748 = vst.msk [vmem:[%s5744_s12 + $0x98] sm:$0xff] %vm1940_vm3, %v3716_v34  ;;  %v3490_v14 = vsub.f32 1.0, %v3489_v16  ;;  %v2486_v25 = vmul.f32 %v2485_v36, %v6104_v62  ;;  %v2792_v35 = vadd.f32 0.05243302, %v2791_v50  ;;  %vm3494_vm1 = vweird.f32 %v4312_v19  ;;  %v2311_v34 = vpop.f32.mrf.mxu3 }
 0x21d   : > { %v2803_v1 = vadd.f32 0.112945676, %v2802_v27  ;;  %v2825_v22 = vmul.f32 %v6188_v29, %v6188_v29  ;;  %v2475_v51 = vmul.f32 %v2474_v15, %v6104_v62  ;;  %v2507_v59 = vmul.f32 2.1237322e-06, %v6192_v2 }
 0x21e   : > { %v3491_v31 = vmul.f32 %v4312_v19, %v3490_v14  ;;  %v6197_v7 = vadd.f32 1.0, %v2486_v25  ;;  %v2793_v56 = vmul.f32 %v2792_v35, %v6137_v8  ;;  %vm3493_vm2 = vweird.f32 %v6143_v11 }
 0x21f   : > { %v2804_v46 = vmul.f32 %v2803_v1, %v6137_v8  ;;  %v2518_v39 = vmul.f32 3.8918573e-05, %v6192_v2  ;;  %vm3495_vm4 = vmor %vm3493_vm2, %vm3494_vm1  ;;  %vm3498_vm5 = vcmp.eq.f32.partialorder %v3497_v4, 8.507059e+37  ;;  %v3500_v6 = vor.u32 1.1754944e-38, %v3499_v38 }
 0x220   : > { %v3492_v30 = vadd.f32 %v4312_v19, %v3491_v31  ;;  %4313 = vrcp.f32 %v6197_v7  ;;  %v6205_v0 = vmin.f32 %v2825_v22, 16.0  ;;  %v2794_v37 = vadd.f32 0.18741608, %v2793_v56 }
 0x221   : > { %v2805_v3 = vadd.f32 0.4994258, %v2804_v46  ;;  %v2508_v45 = vadd.f32 0.00028619796, %v2507_v59  ;;  %v2476_v54 = vadd.f32 1.1283791, %v2475_v51  ;;  %vm2493_vm6 = vweird.f32 %v6197_v7 }
 0x222   : > { %v3496_v62 = vsel %vm3495_vm4, %v4312_v19, %v3492_v30  ;;  %v6207_v17 = vmul.f32 0.5, %v2249_v42  ;;  %v2519_v11 = vadd.f32 0.001143296, %v2518_v39  ;;  %v2497_v60 = vand.u32 2147483647, %v6197_v7 }
 0x223   : > { %v3501_v28 = vsel %vm3498_vm5, %v3500_v6, %v3496_v62  ;;  %v2806_v33 = vmul.f32 %v2805_v3, %v6137_v8  ;;  %v2509_v10 = vmul.f32 %v2508_v45, %v6192_v2  ;;  %v2795_v13 = vmul.f32 %v2794_v37, %v6137_v8 }
 0x224   : > { %v3502_v61 = vmul.f32 %v3501_v28, %v3477_v23  ;;  %v2520_v48 = vmul.f32 %v2519_v11, %v6192_v2  ;;  %v2827_v5 = vmul.f32 2.1237322e-06, %v6205_v0  ;;  %v2838_v20 = vmul.f32 3.8918573e-05, %v6205_v0 }
 0x225   : > { %v2499_v42 = vand.u32 2147483648, %v6197_v7  ;;  %v6217_v49 = vadd.f32 1.0, %v2806_v33  ;;  %v2510_v41 = vadd.f32 0.0036580483, %v2509_v10  ;;  %v2477_v8 = vmul.f32 %v2476_v54, %v6079_v40 }
 0x226   : > { %v4045_v53 = vclamps-f32 %v3502_v61, 1.0  ;;  %v4314_v52 = vpop.eup %4313  ;;  %v2521_v63 = vadd.f32 0.014752088, %v2520_v48  ;;  %v2828_v44 = vadd.f32 0.00028619796, %v2827_v5  ;;  %vm6222_vm7 = vcmp.eq.f32.partialorder %v2497_v60, 8.507059e+37 }
 0x227   : > { %v2839_v19 = vadd.f32 0.001143296, %v2838_v20  ;;  %v2489_v43 = vmul.f32 %v4314_v52, %v6197_v7  ;;  %v2796_v16 = vadd.f32 1.1283791, %v2795_v13  ;;  %4315 = vrcp.f32 %v6217_v49 }
 0x228   : > { %v3692_v47 = vadd.f32 1.0, %v4045_v53  ;;  %v6228_v18 = vadd.f32 %v6063_v55, %v2291_v32  ;;  %v2511_v40 = vmul.f32 %v2510_v41, %v6192_v2  ;;  %v2522_v50 = vmul.f32 %v2521_v63, %v6192_v2 }
 0x229   : > { %v2490_v36 = vsub.f32 1.0, %v2489_v43  ;;  %v2500_v58 = vor.u32 1.1754944e-38, %v2499_v42  ;;  %v2829_v14 = vmul.f32 %v2828_v44, %v6205_v0  ;;  %v2840_v4 = vmul.f32 %v2839_v19, %v6205_v0 }
 0x22a   : > { %v3724_v15 = vmul.f32 %v3692_v47, %v6161_v26  ;;  %v6236_v27 = vadd.f32 %v6063_v55, %v2311_v34  ;;  %vm2494_vm8 = vweird.f32 %v4314_v52  ;;  %v2512_v25 = vadd.f32 0.05243302, %v2511_v40 }
 0x22b   : > { %v2491_v38 = vmul.f32 %v4314_v52, %v2490_v36  ;;  %v2523_v35 = vadd.f32 0.112945676, %v2522_v50  ;;  %v2797_v26 = vmul.f32 %v2796_v16, %v6108_v57  ;;  %v2830_v31 = vadd.f32 0.0036580483, %v2829_v14  ;;  %vm2495_vm12 = vmor %vm2493_vm6, %vm2494_vm8  ;;  %v2293_v36 = vpop.f32.mrf.mxu2 }
 0x22c   : > { %3756 = vst.msk [vmem:[%s5744_s12 + $0xd8] sm:$0xff] %vm1940_vm3, %v3724_v15  ;;  %v2841_v1 = vadd.f32 0.014752088, %v2840_v4  ;;  %v6242_v22 = vmul.f32 0.70710677, %v6228_v18  ;;  %v2513_v59 = vmul.f32 %v2512_v25, %v6192_v2  ;;  %v2819_v45 = vand.u32 2147483648, %v6217_v49 }
 0x22d   : > { %v2492_v51 = vadd.f32 %v4314_v52, %v2491_v38  ;;  %v2817_v56 = vand.u32 2147483647, %v6217_v49  ;;  %v2524_v30 = vmul.f32 %v2523_v35, %v6192_v2  ;;  %v4316_v46 = vpop.eup %4315  ;;  %v2831_v39 = vmul.f32 %v2830_v31, %v6205_v0  ;;  %v2313_v35 = vpop.f32.mrf.mxu3 }
 0x22e   : > { %v2842_v57 = vmul.f32 %v2841_v1, %v6205_v0  ;;  %v3185_v6 = vmul.f32 %v6242_v22, %v6242_v22  ;;  %v6254_v62 = vmul.f32 0.70710677, %v6236_v27  ;;  %v2809_v3 = vmul.f32 %v4316_v46, %v6217_v49 }
 0x22f   : > { %v2496_v37 = vsel %vm2495_vm12, %v4314_v52, %v2492_v51  ;;  %v2514_v28 = vadd.f32 0.18741608, %v2513_v59  ;;  %v2525_v54 = vadd.f32 0.4994258, %v2524_v30  ;;  %v2832_v11 = vadd.f32 0.05243302, %v2831_v39 }
 0x230   : > { %v2501_v7 = vsel %vm6222_vm7, %v2500_v58, %v2496_v37  ;;  %v2843_v61 = vadd.f32 0.112945676, %v2842_v57  ;;  %v2810_v33 = vsub.f32 1.0, %v2809_v3  ;;  %v6261_v13 = vmin.f32 %v3185_v6, 16.0 }
 0x231   : > { %v2502_v60 = vmul.f32 %v2501_v7, %v2477_v8  ;;  %v2515_v10 = vmul.f32 %v2514_v28, %v6192_v2  ;;  %v2526_v48 = vmul.f32 %v2525_v54, %v6192_v2  ;;  %v2833_v5 = vmul.f32 %v2832_v11, %v6205_v0 }
 0x232   : > { %v2844_v20 = vmul.f32 %v2843_v61, %v6205_v0  ;;  %v3505_v53 = vmul.f32 %v6254_v62, %v6254_v62  ;;  %v2811_v41 = vmul.f32 %v4316_v46, %v2810_v33  ;;  %vm2814_vm13 = vweird.f32 %v4316_v46 }
 0x233   : > { %v4020_v42 = vclamps-f32 %v2502_v60, 1.0  ;;  %v3187_v32 = vmul.f32 2.1237322e-06, %v6261_v13  ;;  %vm2813_vm9 = vweird.f32 %v6217_v49  ;;  %v6270_v52 = vadd.f32 1.0, %v2526_v48 }
 0x234   : > { %v2834_v63 = vadd.f32 0.18741608, %v2833_v5  ;;  %v2845_v44 = vadd.f32 0.4994258, %v2844_v20  ;;  %v2812_v2 = vadd.f32 %v4316_v46, %v2811_v41  ;;  %vm2818_vm14 = vcmp.eq.f32.partialorder %v2817_v56, 8.507059e+37  ;;  %vm2815_vm15 = vmor %vm2813_vm9, %vm2814_vm13 }
 0x235   : > { %v3667_v19 = vadd.f32 1.0, %v4020_v42  ;;  %v3188_v47 = vadd.f32 0.00028619796, %v3187_v32  ;;  %v2820_v8 = vor.u32 1.1754944e-38, %v2819_v45  ;;  %v2516_v43 = vadd.f32 1.1283791, %v2515_v10  ;;  %v2251_v32 = vpop.f32.mrf.mxu0 }
 0x236   : > { %4317 = vrcp.f32 %v6270_v52  ;;  %v6273_v34 = vmin.f32 %v3505_v53, 16.0  ;;  %v2816_v16 = vsel %vm2815_vm15, %v4316_v46, %v2812_v2  ;;  %v2835_v49 = vmul.f32 %v2834_v63, %v6205_v0 }
 0x237   : > { %v3699_v23 = vmul.f32 %v3667_v19, %v6172_v9  ;;  %v2846_v15 = vmul.f32 %v2845_v44, %v6205_v0  ;;  %v2821_v40 = vsel %vm2818_vm14, %v2820_v8, %v2816_v16  ;;  %v2537_v50 = vand.u32 2147483647, %v6270_v52 }
 0x238   : > { %v2539_v58 = vand.u32 2147483648, %v6270_v52  ;;  %v3189_v14 = vmul.f32 %v3188_v47, %v6261_v13  ;;  %v2822_v4 = vmul.f32 %v2821_v40, %v2797_v26  ;;  %v2836_v38 = vadd.f32 1.1283791, %v2835_v49 }
 0x239   : > { %3731 = vst.msk [vmem:[%s5744_s12 + $0x10] sm:$0xff] %vm1940_vm3, %v3699_v23  ;;  %v6283_v25 = vadd.f32 1.0, %v2846_v15  ;;  %v3198_v9 = vmul.f32 3.8918573e-05, %v6261_v13  ;;  %v2517_v31 = vmul.f32 %v2516_v43, %v6166_v12  ;;  %v3507_v1 = vmul.f32 2.1237322e-06, %v6273_v34 }
 0x23a   : > { %v3190_v0 = vadd.f32 0.0036580483, %v3189_v14  ;;  %v6289_v51 = vadd.f32 %v6063_v55, %v2293_v36  ;;  %v4028_v56 = vclamps-f32 %v2822_v4, 1.0  ;;  %vm2533_vm10 = vweird.f32 %v6270_v52 }
 0x23b   : > { %4319 = vrcp.f32 %v6283_v25  ;;  %v3518_v26 = vmul.f32 3.8918573e-05, %v6273_v34  ;;  %v2540_v30 = vor.u32 1.1754944e-38, %v2539_v58  ;;  %v3199_v39 = vadd.f32 0.001143296, %v3198_v9 }
 0x23c   : > { %v4318_v59 = vpop.eup %4317  ;;  %v3191_v46 = vmul.f32 %v3190_v0, %v6261_v13  ;;  %v6296_v12 = vadd.f32 %v6063_v55, %v2313_v35  ;;  %v3675_v57 = vadd.f32 1.0, %v4028_v56  ;;  %vm6299_vm0 = vcmp.eq.f32.partialorder %v2537_v50, 8.507059e+37 }
 0x23d   : > { %v2529_v6 = vmul.f32 %v4318_v59, %v6270_v52  ;;  %v2837_v3 = vmul.f32 %v2836_v38, %v6188_v29  ;;  %v3508_v45 = vadd.f32 0.00028619796, %v3507_v1  ;;  %v2857_v28 = vand.u32 2147483647, %v6283_v25 }
 0x23e   : > { %v2859_v7 = vand.u32 2147483648, %v6283_v25  ;;  %v3192_v54 = vadd.f32 0.05243302, %v3191_v46  ;;  %v3200_v11 = vmul.f32 %v3199_v39, %v6261_v13  ;;  %v3707_v61 = vmul.f32 %v3675_v57, %v6176_v21 }
 0x23f   : > { %v2530_v60 = vsub.f32 1.0, %v2529_v6  ;;  %v3509_v33 = vmul.f32 %v3508_v45, %v6273_v34  ;;  %v3519_v10 = vadd.f32 0.001143296, %v3518_v26  ;;  %vm2853_vm11 = vweird.f32 %v6283_v25 }
 0x240   : > { %v3193_v48 = vmul.f32 %v3192_v54, %v6261_v13  ;;  %v3201_v5 = vadd.f32 0.014752088, %v3200_v11  ;;  %v6312_v29 = vmul.f32 0.70710677, %v6289_v51  ;;  %3739 = vst.msk [vmem:[%s5744_s12 + $0x50] sm:$0xff] %vm1940_vm3, %v3707_v61  ;;  %vm2534_vm1 = vweird.f32 %v4318_v59 }
 0x241   : > { %v4320_v20 = vpop.eup %4319  ;;  %v2531_v53 = vmul.f32 %v4318_v59, %v2530_v60  ;;  %v3510_v42 = vadd.f32 0.0036580483, %v3509_v33  ;;  %v3520_v21 = vmul.f32 %v3519_v10, %v6273_v34  ;;  %vm6318_vm2 = vcmp.eq.f32.partialorder %v2857_v28, 8.507059e+37  ;;  %vm2535_vm4 = vmor %vm2533_vm10, %vm2534_vm1 }
 0x242   : > { %v2849_v41 = vmul.f32 %v4320_v20, %v6283_v25  ;;  %v2860_v63 = vor.u32 1.1754944e-38, %v2859_v7  ;;  %v3202_v44 = vmul.f32 %v3201_v5, %v6261_v13  ;;  %v3225_v8 = vmul.f32 %v6312_v29, %v6312_v29 }
 0x243   : > { %v2532_v19 = vadd.f32 %v4318_v59, %v2531_v53  ;;  %v3511_v2 = vmul.f32 %v3510_v42, %v6273_v34  ;;  %v3521_v47 = vadd.f32 0.014752088, %v3520_v21  ;;  %vm2854_vm5 = vweird.f32 %v4320_v20 }
 0x244   : > { %v2850_v43 = vsub.f32 1.0, %v2849_v41  ;;  %v3194_v23 = vadd.f32 0.18741608, %v3193_v48  ;;  %v3203_v16 = vadd.f32 0.112945676, %v3202_v44  ;;  %v6329_v40 = vmin.f32 %v3225_v8, 16.0  ;;  %vm2855_vm6 = vmor %vm2853_vm11, %vm2854_vm5 }
 0x245   : > { %v2536_v49 = vsel %vm2535_vm4, %v4318_v59, %v2532_v19  ;;  %v3512_v15 = vadd.f32 0.05243302, %v3511_v2  ;;  %v3522_v36 = vmul.f32 %v3521_v47, %v6273_v34  ;;  %v6335_v4 = vmul.f32 0.70710677, %v6296_v12 }
 0x246   : > { %v2541_v50 = vsel %vm6299_vm0, %v2540_v30, %v2536_v49  ;;  %v2851_v58 = vmul.f32 %v4320_v20, %v2850_v43  ;;  %v3204_v14 = vmul.f32 %v3203_v16, %v6261_v13  ;;  %v3227_v35 = vmul.f32 2.1237322e-06, %v6329_v40 }
 0x247   : > { %v2542_v52 = vmul.f32 %v2541_v50, %v2517_v31  ;;  %v3513_v38 = vmul.f32 %v3512_v15, %v6273_v34  ;;  %v3523_v9 = vadd.f32 0.112945676, %v3522_v36  ;;  %v3195_v1 = vmul.f32 %v3194_v23, %v6261_v13  ;;  %v2271_v23 = vpop.f32.mrf.mxu1 }
 0x248   : > { %v2852_v0 = vadd.f32 %v4320_v20, %v2851_v58  ;;  %v3205_v56 = vadd.f32 0.4994258, %v3204_v14  ;;  %v3238_v26 = vmul.f32 3.8918573e-05, %v6329_v40  ;;  %v3228_v31 = vadd.f32 0.00028619796, %v3227_v35 }
 0x249   : > { %v4021_v59 = vclamps-f32 %v2542_v52, 1.0  ;;  %v3514_v30 = vadd.f32 0.18741608, %v3513_v38  ;;  %v3524_v46 = vmul.f32 %v3523_v9, %v6273_v34  ;;  %v3545_v37 = vmul.f32 %v6335_v4, %v6335_v4 }
 0x24a   : > { %v2856_v39 = vsel %vm2855_vm6, %v4320_v20, %v2852_v0  ;;  %v3206_v57 = vmul.f32 %v3205_v56, %v6261_v13  ;;  %v3239_v6 = vadd.f32 0.001143296, %v3238_v26  ;;  %v3229_v61 = vmul.f32 %v3228_v31, %v6329_v40 }
 0x24b   : > { %v3668_v45 = vadd.f32 1.0, %v4021_v59  ;;  %v2861_v28 = vsel %vm6318_vm2, %v2860_v63, %v2856_v39  ;;  %v3515_v7 = vmul.f32 %v3514_v30, %v6273_v34  ;;  %v3525_v25 = vadd.f32 0.4994258, %v3524_v46 }
 0x24c   : > { %v2862_v54 = vmul.f32 %v2861_v28, %v2837_v3  ;;  %v6351_v11 = vadd.f32 1.0, %v3206_v57  ;;  %v3240_v60 = vmul.f32 %v3239_v6, %v6329_v40  ;;  %v6357_v10 = vmin.f32 %v3545_v37, 16.0 }
 0x24d   : > { %v3700_v13 = vmul.f32 %v3668_v45, %v6207_v17  ;;  %v3526_v33 = vmul.f32 %v3525_v25, %v6273_v34  ;;  %v2332_v48 = vmul.f32 0.5, %v6169_v24  ;;  %v3196_v20 = vadd.f32 1.1283791, %v3195_v1 }
 0x24e   : > { %v4029_v5 = vclamps-f32 %v2862_v54, 1.0  ;;  %4321 = vrcp.f32 %v6351_v11  ;;  %v3516_v3 = vadd.f32 1.1283791, %v3515_v7  ;;  %v3230_v42 = vadd.f32 0.0036580483, %v3229_v61 }
 0x24f   : > { %3732 = vst.msk [vmem:[%s5744_s12 + $0x18] sm:$0xff] %vm1940_vm3, %v3700_v13  ;;  %v6363_v53 = vadd.f32 1.0, %v3526_v33  ;;  %v3219_v41 = vand.u32 2147483648, %v6351_v11  ;;  %v3241_v17 = vadd.f32 0.014752088, %v3240_v60  ;;  %v3197_v44 = vmul.f32 %v3196_v20, %v6242_v22 }
 0x250   : > { %v3676_v21 = vadd.f32 1.0, %v4029_v5  ;;  %v3547_v34 = vmul.f32 2.1237322e-06, %v6357_v10  ;;  %v3217_v24 = vand.u32 2147483647, %v6351_v11  ;;  %v3231_v19 = vmul.f32 %v3230_v42, %v6329_v40 }
 0x251   : > { %4323 = vrcp.f32 %v6363_v53  ;;  %v3242_v2 = vmul.f32 %v3241_v17, %v6329_v40  ;;  %vm3213_vm7 = vweird.f32 %v6351_v11  ;;  %v3558_v8 = vmul.f32 3.8918573e-05, %v6357_v10 }
 0x252   : > { %v3708_v63 = vmul.f32 %v3676_v21, %v2332_v48  ;;  %v3548_v47 = vadd.f32 0.00028619796, %v3547_v34  ;;  %v6375_v43 = vadd.f32 %v6063_v55, %v2251_v32  ;;  %v3220_v49 = vor.u32 1.1754944e-38, %v3219_v41 }
 0x253   : > { %v3517_v15 = vmul.f32 %v3516_v3, %v6254_v62  ;;  %v3232_v22 = vadd.f32 0.05243302, %v3231_v19  ;;  %v3243_v36 = vadd.f32 0.112945676, %v3242_v2  ;;  %vm6381_vm8 = vcmp.eq.f32.partialorder %v3217_v24, 8.507059e+37 }
 0x254   : > { %v4322_v16 = vpop.eup %4321  ;;  %3740 = vst.msk [vmem:[%s5744_s12 + $0x58] sm:$0xff] %vm1940_vm3, %v3708_v63  ;;  %v3537_v14 = vand.u32 2147483647, %v6363_v53  ;;  %v3549_v52 = vmul.f32 %v3548_v47, %v6357_v10  ;;  %v3559_v38 = vadd.f32 0.001143296, %v3558_v8  ;;  %v6393_v62 = vadd.f32 %v6063_v55, %v2271_v23 }
 0x255   : > { %v3209_v50 = vmul.f32 %v4322_v16, %v6351_v11  ;;  %v3233_v9 = vmul.f32 %v3232_v22, %v6329_v40  ;;  %v3244_v35 = vmul.f32 %v3243_v36, %v6329_v40  ;;  %v6390_v0 = vmul.f32 0.70710677, %v6375_v43 }
 0x256   : > { %v3539_v26 = vand.u32 2147483648, %v6363_v53  ;;  %v3550_v59 = vadd.f32 0.0036580483, %v3549_v52  ;;  %v3560_v30 = vmul.f32 %v3559_v38, %v6357_v10  ;;  %vm3214_vm12 = vweird.f32 %v4322_v16 }
 0x257   : > { %v4324_v1 = vpop.eup %4323  ;;  %v3210_v56 = vsub.f32 1.0, %v3209_v50  ;;  %v3234_v31 = vadd.f32 0.18741608, %v3233_v9  ;;  %v3245_v39 = vadd.f32 0.4994258, %v3244_v35  ;;  %v2545_v45 = vmul.f32 %v6390_v0, %v6390_v0  ;;  %vm3215_vm13 = vmor %vm3213_vm7, %vm3214_vm12 }
 0x258   : > { %v3529_v46 = vmul.f32 %v4324_v1, %v6363_v53  ;;  %v3551_v6 = vmul.f32 %v3550_v59, %v6357_v10  ;;  %v3561_v37 = vadd.f32 0.014752088, %v3560_v30  ;;  %v6404_v54 = vmul.f32 0.70710677, %v6393_v62 }
 0x259   : > { %v3211_v57 = vmul.f32 %v4322_v16, %v3210_v56  ;;  %v3235_v7 = vmul.f32 %v3234_v31, %v6329_v40  ;;  %v3246_v25 = vmul.f32 %v3245_v39, %v6329_v40  ;;  %v6407_v33 = vmin.f32 %v2545_v45, 16.0  ;;  %v2253_v56 = vpop.f32.mrf.mxu0 }
 0x25a   : > { %v3530_v28 = vsub.f32 1.0, %v3529_v46  ;;  %v3552_v60 = vadd.f32 0.05243302, %v3551_v6  ;;  %v3562_v13 = vmul.f32 %v3561_v37, %v6357_v10  ;;  %vm3533_vm9 = vweird.f32 %v6363_v53 }
 0x25b   : > { %v3212_v61 = vadd.f32 %v4322_v16, %v3211_v57  ;;  %vm3534_vm14 = vweird.f32 %v4324_v1  ;;  %v6413_v5 = vadd.f32 1.0, %v3246_v25  ;;  %v2547_v42 = vmul.f32 2.1237322e-06, %v6407_v33 }
 0x25c   : > { %v3531_v48 = vmul.f32 %v4324_v1, %v3530_v28  ;;  %v3553_v20 = vmul.f32 %v3552_v60, %v6357_v10  ;;  %v3563_v3 = vadd.f32 0.112945676, %v3562_v13  ;;  %vm3538_vm15 = vcmp.eq.f32.partialorder %v3537_v14, 8.507059e+37  ;;  %vm3535_vm10 = vmor %vm3533_vm9, %vm3534_vm14  ;;  %v2273_v13 = vpop.f32.mrf.mxu1 }
 0x25d   : > { %v3216_v40 = vsel %vm3215_vm13, %v4322_v16, %v3212_v61  ;;  %4325 = vrcp.f32 %v6413_v5  ;;  %v3540_v17 = vor.u32 1.1754944e-38, %v3539_v26  ;;  %v3236_v53 = vadd.f32 1.1283791, %v3235_v7 }
 0x25e   : > { %v3221_v21 = vsel %vm6381_vm8, %v3220_v49, %v3216_v40  ;;  %v3532_v41 = vadd.f32 %v4324_v1, %v3531_v48  ;;  %v2865_v34 = vmul.f32 %v6404_v54, %v6404_v54  ;;  %v3554_v24 = vadd.f32 0.18741608, %v3553_v20 }
 0x25f   : > { %v3222_v11 = vmul.f32 %v3221_v21, %v3197_v44  ;;  %v3564_v63 = vmul.f32 %v3563_v3, %v6357_v10  ;;  %v2548_v19 = vadd.f32 0.00028619796, %v2547_v42  ;;  %v2341_v2 = vmul.f32 0.5, %v6228_v18 }
 0x260   : > { %v3536_v32 = vsel %vm3535_vm10, %v4324_v1, %v3532_v41  ;;  %v2349_v8 = vmul.f32 0.5, %v6236_v27  ;;  %v6426_v44 = vmul.f32 0.5, %v6289_v51  ;;  %v3237_v50 = vmul.f32 %v3236_v53, %v6312_v29 }
 0x261   : > { %v4038_v47 = vclamps-f32 %v3222_v11, 1.0  ;;  %v3541_v23 = vsel %vm3538_vm15, %v3540_v17, %v3536_v32  ;;  %v3565_v49 = vadd.f32 0.4994258, %v3564_v63  ;;  %v2549_v22 = vmul.f32 %v2548_v19, %v6407_v33 }
 0x262   : > { %v3542_v16 = vmul.f32 %v3541_v23, %v3517_v15  ;;  %v2558_v58 = vmul.f32 3.8918573e-05, %v6407_v33  ;;  %v6431_v14 = vmin.f32 %v2865_v34, 16.0  ;;  %v3555_v27 = vmul.f32 %v3554_v24, %v6357_v10 }
 0x263   : > { %v3685_v36 = vadd.f32 1.0, %v4038_v47  ;;  %v4326_v18 = vpop.eup %4325  ;;  %v3566_v15 = vmul.f32 %v3565_v49, %v6357_v10  ;;  %v2550_v38 = vadd.f32 0.0036580483, %v2549_v22  ;;  %v3257_v35 = vand.u32 2147483647, %v6413_v5 }
 0x264   : > { %v4046_v52 = vclamps-f32 %v3542_v16, 1.0  ;;  %v3249_v9 = vmul.f32 %v4326_v18, %v6413_v5  ;;  %v2559_v1 = vadd.f32 0.001143296, %v2558_v58  ;;  %v3259_v26 = vand.u32 2147483648, %v6413_v5 }
 0x265   : > { %v3717_v51 = vmul.f32 %v3685_v36, %v2341_v2  ;;  %v6438_v59 = vadd.f32 1.0, %v3566_v15  ;;  %v2551_v30 = vmul.f32 %v2550_v38, %v6407_v33  ;;  %v2867_v31 = vmul.f32 2.1237322e-06, %v6431_v14 }
 0x266   : > { %v3693_v29 = vadd.f32 1.0, %v4046_v52  ;;  %v3250_v46 = vsub.f32 1.0, %v3249_v9  ;;  %v2560_v10 = vmul.f32 %v2559_v1, %v6407_v33  ;;  %v2878_v39 = vmul.f32 3.8918573e-05, %v6431_v14 }
 0x267   : > { %3749 = vst.msk [vmem:[%s5744_s12 + $0xa0] sm:$0xff] %vm1940_vm3, %v3717_v51  ;;  %v3556_v6 = vadd.f32 1.1283791, %v3555_v27  ;;  %4327 = vrcp.f32 %v6438_v59  ;;  %v6448_v37 = vadd.f32 %v6063_v55, %v2253_v56  ;;  %vm3254_vm0 = vweird.f32 %v4326_v18 }
 0x268   : > { %v3725_v57 = vmul.f32 %v3693_v29, %v2349_v8  ;;  %v3251_v45 = vmul.f32 %v4326_v18, %v3250_v46  ;;  %v2552_v28 = vadd.f32 0.05243302, %v2551_v30  ;;  %v2561_v7 = vadd.f32 0.014752088, %v2560_v10 }
 0x269   : > { %vm3253_vm11 = vweird.f32 %v6413_v5  ;;  %vm6453_vm1 = vcmp.eq.f32.partialorder %v3257_v35, 8.507059e+37  ;;  %v2868_v61 = vadd.f32 0.00028619796, %v2867_v31  ;;  %v2879_v60 = vadd.f32 0.001143296, %v2878_v39 }
 0x26a   : > { %3757 = vst.msk [vmem:[%s5744_s12 + $0xe0] sm:$0xff] %vm1940_vm3, %v3725_v57  ;;  %v3252_v48 = vadd.f32 %v4326_v18, %v3251_v45  ;;  %v3260_v40 = vor.u32 1.1754944e-38, %v3259_v26  ;;  %v3577_v20 = vand.u32 2147483647, %v6438_v59  ;;  %v2562_v3 = vmul.f32 %v2561_v7, %v6407_v33  ;;  %vm3255_vm2 = vmor %vm3253_vm11, %vm3254_vm0 }
 0x26b   : > { %v3557_v42 = vmul.f32 %v3556_v6, %v6335_v4  ;;  %v2869_v21 = vmul.f32 %v2868_v61, %v6431_v14  ;;  %v2880_v5 = vmul.f32 %v2879_v60, %v6431_v14  ;;  %v6463_v41 = vmul.f32 0.70710677, %v6448_v37 }
 0x26c   : > { %v3256_v11 = vsel %vm3255_vm2, %v4326_v18, %v3252_v48  ;;  %v2553_v17 = vmul.f32 %v2552_v28, %v6407_v33  ;;  %v2563_v53 = vadd.f32 0.112945676, %v2562_v3  ;;  %v6467_v34 = vadd.f32 %v6063_v55, %v2273_v13 }
 0x26d   : > { %v4328_v32 = vpop.eup %4327  ;;  %v3261_v24 = vsel %vm6453_vm1, %v3260_v40, %v3256_v11  ;;  %v2870_v63 = vadd.f32 0.0036580483, %v2869_v21  ;;  %v2881_v4 = vadd.f32 0.014752088, %v2880_v5  ;;  %v2585_v19 = vmul.f32 %v6463_v41, %v6463_v41 }
 0x26e   : > { %v3262_v2 = vmul.f32 %v3261_v24, %v3237_v50  ;;  %v3569_v47 = vmul.f32 %v4328_v32, %v6438_v59  ;;  %vm6474_vm4 = vcmp.eq.f32.partialorder %v3577_v20, 8.507059e+37  ;;  %v3579_v23 = vand.u32 2147483648, %v6438_v59 }
 0x26f   : > { %v2564_v55 = vmul.f32 %v2563_v53, %v6407_v33  ;;  %v2871_v16 = vmul.f32 %v2870_v63, %v6431_v14  ;;  %v2882_v49 = vmul.f32 %v2881_v4, %v6431_v14  ;;  %v6482_v22 = vmin.f32 %v2585_v19, 16.0 }
 0x270   : > { %v4039_v36 = vclamps-f32 %v3262_v2, 1.0  ;;  %v3570_v58 = vsub.f32 1.0, %v3569_v47  ;;  %v2554_v18 = vadd.f32 0.18741608, %v2553_v17  ;;  %v6485_v50 = vmul.f32 0.70710677, %v6467_v34  ;;  %v2296_v2 = vpop.f32.mrf.mxu2 }
 0x271   : > { %vm3573_vm5 = vweird.f32 %v6438_v59  ;;  %v2565_v52 = vadd.f32 0.4994258, %v2564_v55  ;;  %v2872_v27 = vadd.f32 0.05243302, %v2871_v16  ;;  %v2883_v15 = vadd.f32 0.112945676, %v2882_v49 }
 0x272   : > { %v3686_v38 = vadd.f32 1.0, %v4039_v36  ;;  %v3571_v51 = vmul.f32 %v4328_v32, %v3570_v58  ;;  %vm3574_vm6 = vweird.f32 %v4328_v32  ;;  %v2587_v9 = vmul.f32 2.1237322e-06, %v6482_v22 }
 0x273   : > { %v2566_v35 = vmul.f32 %v2565_v52, %v6407_v33  ;;  %v2873_v1 = vmul.f32 %v2872_v27, %v6431_v14  ;;  %v2884_v56 = vmul.f32 %v2883_v15, %v6431_v14  ;;  %v2598_v29 = vmul.f32 3.8918573e-05, %v6482_v22  ;;  %vm3575_vm7 = vmor %vm3573_vm5, %vm3574_vm6  ;;  %v6538_v52 = vld [vmem:[%s6861_s2] ss:$0 sm:$0xff] }
 0x274   : > { %v3718_v26 = vmul.f32 %v3686_v38, %v6426_v44  ;;  %v3572_v30 = vadd.f32 %v4328_v32, %v3571_v51  ;;  %v2588_v46 = vadd.f32 0.00028619796, %v2587_v9  ;;  %v2905_v10 = vmul.f32 %v6485_v50, %v6485_v50 }
 0x275   : > { %v3580_v31 = vor.u32 1.1754944e-38, %v3579_v23  ;;  %v2555_v39 = vmul.f32 %v2554_v18, %v6407_v33  ;;  %v6499_v57 = vadd.f32 1.0, %v2566_v35  ;;  %v2885_v6 = vadd.f32 0.4994258, %v2884_v56 }
 0x276   : > { %3750 = vst.msk [vmem:[%s5744_s12 + $0xa8] sm:$0xff] %vm1940_vm3, %v3718_v26  ;;  %v3576_v45 = vsel %vm3575_vm7, %v4328_v32, %v3572_v30  ;;  %v2589_v28 = vmul.f32 %v2588_v46, %v6482_v22  ;;  %v2599_v44 = vadd.f32 0.001143296, %v2598_v29  ;;  %v6504_v7 = vmin.f32 %v2905_v10, 16.0 }
 0x277   : > { %v3581_v25 = vsel %vm6474_vm4, %v3580_v31, %v3576_v45  ;;  %4329 = vrcp.f32 %v6499_v57  ;;  %v2874_v59 = vadd.f32 0.18741608, %v2873_v1  ;;  %v2886_v33 = vmul.f32 %v2885_v6, %v6431_v14 }
 0x278   : > { %v3582_v61 = vmul.f32 %v3581_v25, %v3557_v42  ;;  %v2350_v60 = vmul.f32 0.5, %v6296_v12  ;;  %v2590_v13 = vadd.f32 0.0036580483, %v2589_v28  ;;  %v2600_v48 = vmul.f32 %v2599_v44, %v6482_v22 }
 0x279   : > { %v2907_v40 = vmul.f32 2.1237322e-06, %v6504_v7  ;;  %v6514_v3 = vmul.f32 0.5, %v6375_v43  ;;  %v2556_v21 = vadd.f32 1.1283791, %v2555_v39  ;;  %v6516_v5 = vadd.f32 1.0, %v2886_v33 }
 0x27a   : > { %v4047_v20 = vclamps-f32 %v3582_v61, 1.0  ;;  %v2875_v11 = vmul.f32 %v2874_v59, %v6431_v14  ;;  %v2591_v42 = vmul.f32 %v2590_v13, %v6482_v22  ;;  %v2601_v17 = vadd.f32 0.014752088, %v2600_v48 }
 0x27b   : > { %v2908_v53 = vadd.f32 0.00028619796, %v2907_v40  ;;  %v6521_v12 = vmul.f32 0.5, %v6393_v62  ;;  %4331 = vrcp.f32 %v6516_v5  ;;  %v2918_v24 = vmul.f32 3.8918573e-05, %v6504_v7 }
 0x27c   : > { %v3694_v32 = vadd.f32 1.0, %v4047_v20  ;;  %v2577_v63 = vand.u32 2147483647, %v6499_v57  ;;  %v2579_v4 = vand.u32 2147483648, %v6499_v57  ;;  %v2592_v19 = vadd.f32 0.05243302, %v2591_v42 }
 0x27d   : > { %v4330_v43 = vpop.eup %4329  ;;  %v2602_v14 = vmul.f32 %v2601_v17, %v6482_v22  ;;  %v2557_v8 = vmul.f32 %v2556_v21, %v6390_v0  ;;  %v2909_v23 = vmul.f32 %v2908_v53, %v6504_v7  ;;  %vm2573_vm8 = vweird.f32 %v6499_v57  ;;  %v2298_v17 = vpop.f32.mrf.mxu2 }
 0x27e   : > { %v3726_v47 = vmul.f32 %v3694_v32, %v2350_v60  ;;  %v2569_v62 = vmul.f32 %v4330_v43, %v6499_v57  ;;  %v2876_v55 = vadd.f32 1.1283791, %v2875_v11  ;;  %v2593_v16 = vmul.f32 %v2592_v19, %v6482_v22  ;;  %v2316_v60 = vpop.f32.mrf.mxu3 }
 0x27f   : > { %v2603_v49 = vadd.f32 0.112945676, %v2602_v14  ;;  %v2910_v58 = vadd.f32 0.0036580483, %v2909_v23  ;;  %v2919_v18 = vadd.f32 0.001143296, %v2918_v24  ;;  %v6541_v0 = vadd.f32 %v6538_v52, %v2296_v2 }
 0x280   : > { %3758 = vst.msk [vmem:[%s5744_s12 + $0xe8] sm:$0xff] %vm1940_vm3, %v3726_v47  ;;  %v2570_v36 = vsub.f32 1.0, %v2569_v62  ;;  %vm6543_vm12 = vcmp.eq.f32.partialorder %v2577_v63, 8.507059e+37  ;;  %v2580_v15 = vor.u32 1.1754944e-38, %v2579_v4  ;;  %v2594_v38 = vadd.f32 0.18741608, %v2593_v16 }
 0x281   : > { %v2604_v51 = vmul.f32 %v2603_v49, %v6482_v22  ;;  %v4332_v9 = vpop.eup %4331  ;;  %vm2574_vm13 = vweird.f32 %v4330_v43  ;;  %v2911_v1 = vmul.f32 %v2910_v58, %v6504_v7  ;;  %v2920_v56 = vmul.f32 %v2919_v18, %v6504_v7 }
 0x282   : > { %v2571_v35 = vmul.f32 %v4330_v43, %v2570_v36  ;;  %v2877_v29 = vmul.f32 %v2876_v55, %v6404_v54  ;;  %v2889_v26 = vmul.f32 %v4332_v9, %v6516_v5  ;;  %v2897_v30 = vand.u32 2147483647, %v6516_v5  ;;  %vm2575_vm9 = vmor %vm2573_vm8, %vm2574_vm13 }
 0x283   : > { %v2605_v46 = vadd.f32 0.4994258, %v2604_v51  ;;  %v2912_v31 = vadd.f32 0.05243302, %v2911_v1  ;;  %v2921_v39 = vadd.f32 0.014752088, %v2920_v56  ;;  %v2595_v44 = vmul.f32 %v2594_v38, %v6482_v22 }
 0x284   : > { %v2572_v10 = vadd.f32 %v4330_v43, %v2571_v35  ;;  %v6554_v6 = vmul.f32 0.70710677, %v6541_v0  ;;  %v2890_v45 = vsub.f32 1.0, %v2889_v26  ;;  %v2899_v28 = vand.u32 2147483648, %v6516_v5 }
 0x285   : > { %v2606_v54 = vmul.f32 %v2605_v46, %v6482_v22  ;;  %v2913_v59 = vmul.f32 %v2912_v31, %v6504_v7  ;;  %v2922_v61 = vmul.f32 %v2921_v39, %v6504_v7  ;;  %vm2894_vm14 = vweird.f32 %v4332_v9 }
 0x286   : > { %v2576_v25 = vsel %vm2575_vm9, %v4330_v43, %v2572_v10  ;;  %v3265_v33 = vmul.f32 %v6554_v6, %v6554_v6  ;;  %v2891_v13 = vmul.f32 %v4332_v9, %v2890_v45  ;;  %vm2893_vm15 = vweird.f32 %v6516_v5 }
 0x287   : > { %v2581_v57 = vsel %vm6543_vm12, %v2580_v15, %v2576_v25  ;;  %v6567_v48 = vadd.f32 1.0, %v2606_v54  ;;  %v2923_v22 = vadd.f32 0.112945676, %v2922_v61  ;;  %v2900_v11 = vor.u32 1.1754944e-38, %v2899_v28  ;;  %vm2895_vm10 = vmor %vm2893_vm15, %vm2894_vm14 }
 0x288   : > { %v2582_v40 = vmul.f32 %v2581_v57, %v2557_v8  ;;  %v6570_v20 = vmin.f32 %v3265_v33, 16.0  ;;  %v2892_v21 = vadd.f32 %v4332_v9, %v2891_v13  ;;  %v6574_v42 = vadd.f32 %v6538_v52, %v2316_v60 }
 0x289   : > { %4333 = vrcp.f32 %v6567_v48  ;;  %v2596_v32 = vadd.f32 1.1283791, %v2595_v44  ;;  %v2914_v24 = vadd.f32 0.18741608, %v2913_v59  ;;  %v2924_v43 = vmul.f32 %v2923_v22, %v6504_v7 }
 0x28a   : > { %v4022_v53 = vclamps-f32 %v2582_v40, 1.0  ;;  %v2896_v63 = vsel %vm2895_vm10, %v4332_v9, %v2892_v21  ;;  %vm2898_vm0 = vcmp.eq.f32.partialorder %v2897_v30, 8.507059e+37  ;;  %v3267_v5 = vmul.f32 2.1237322e-06, %v6570_v20 }
 0x28b   : > { %v3278_v4 = vmul.f32 3.8918573e-05, %v6570_v20  ;;  %v2901_v14 = vsel %vm2898_vm0, %v2900_v11, %v2896_v63  ;;  %v6580_v2 = vmul.f32 0.5, %v6448_v37  ;;  %v6583_v47 = vadd.f32 %v6538_v52, %v2298_v17 }
 0x28c   : > { %v3669_v19 = vadd.f32 1.0, %v4022_v53  ;;  %v2902_v8 = vmul.f32 %v2901_v14, %v2877_v29  ;;  %v2925_v62 = vadd.f32 0.4994258, %v2924_v43  ;;  %v3268_v23 = vadd.f32 0.00028619796, %v3267_v5  ;;  %v2318_v29 = vpop.f32.mrf.mxu3 }
 0x28d   : > { %v3279_v55 = vadd.f32 0.001143296, %v3278_v4  ;;  %v2597_v49 = vmul.f32 %v2596_v32, %v6463_v41  ;;  %v2915_v36 = vmul.f32 %v2914_v24, %v6504_v7  ;;  %v6589_v58 = vmul.f32 0.70710677, %v6574_v42 }
 0x28e   : > { %v3701_v16 = vmul.f32 %v3669_v19, %v6514_v3  ;;  %v4030_v27 = vclamps-f32 %v2902_v8, 1.0  ;;  %v2926_v37 = vmul.f32 %v2925_v62, %v6504_v7  ;;  %v3269_v15 = vmul.f32 %v3268_v23, %v6570_v20 }
 0x28f   : > { %v4334_v18 = vpop.eup %4333  ;;  %v3280_v38 = vmul.f32 %v3279_v55, %v6570_v20  ;;  %v2617_v3 = vand.u32 2147483647, %v6567_v48  ;;  %v3585_v41 = vmul.f32 %v6589_v58, %v6589_v58  ;;  %v6601_v9 = vmul.f32 0.70710677, %v6583_v47 }
 0x290   : > { %3733 = vst.msk [vmem:[%s5744_s12 + $0x20] sm:$0xff] %vm1940_vm3, %v3701_v16  ;;  %v2609_v51 = vmul.f32 %v4334_v18, %v6567_v48  ;;  %v3677_v35 = vadd.f32 1.0, %v4030_v27  ;;  %v6603_v1 = vadd.f32 1.0, %v2926_v37  ;;  %v3270_v7 = vadd.f32 0.0036580483, %v3269_v15 }
 0x291   : > { %v3281_v56 = vadd.f32 0.014752088, %v3280_v38  ;;  %v2619_v30 = vand.u32 2147483648, %v6567_v48  ;;  %v2916_v46 = vadd.f32 1.1283791, %v2915_v36  ;;  %v6606_v10 = vmin.f32 %v3585_v41, 16.0 }
 0x292   : > { %v2610_v26 = vsub.f32 1.0, %v2609_v51  ;;  %v3709_v31 = vmul.f32 %v3677_v35, %v6521_v12  ;;  %vm2614_vm11 = vweird.f32 %v4334_v18  ;;  %4335 = vrcp.f32 %v6603_v1 }
 0x293   : > { %v3305_v39 = vmul.f32 %v6601_v9, %v6601_v9  ;;  %v3271_v28 = vmul.f32 %v3270_v7, %v6570_v20  ;;  %v3282_v44 = vmul.f32 %v3281_v56, %v6570_v20  ;;  %v6615_v54 = vadd.f32 %v6538_v52, %v2318_v29 }
 0x294   : > { %v2611_v45 = vmul.f32 %v4334_v18, %v2610_v26  ;;  %3741 = vst.msk [vmem:[%s5744_s12 + $0x60] sm:$0xff] %vm1940_vm3, %v3709_v31  ;;  %vm2613_vm1 = vweird.f32 %v6567_v48  ;;  %vm6620_vm2 = vcmp.eq.f32.partialorder %v2617_v3, 8.507059e+37  ;;  %v3587_v25 = vmul.f32 2.1237322e-06, %v6606_v10 }
 0x295   : > { %v3598_v59 = vmul.f32 3.8918573e-05, %v6606_v10  ;;  %v2620_v33 = vor.u32 1.1754944e-38, %v2619_v30  ;;  %v3272_v60 = vadd.f32 0.05243302, %v3271_v28  ;;  %vm2615_vm4 = vmor %vm2613_vm1, %vm2614_vm11  ;;  %v2917_v13 = vmul.f32 %v2916_v46, %v6485_v50 }
 0x296   : > { %v2612_v61 = vadd.f32 %v4334_v18, %v2611_v45  ;;  %v3283_v57 = vadd.f32 0.112945676, %v3282_v44  ;;  %v3588_v40 = vadd.f32 0.00028619796, %v3587_v25  ;;  %v6628_v21 = vmin.f32 %v3305_v39, 16.0 }
 0x297   : > { %v3599_v22 = vadd.f32 0.001143296, %v3598_v59  ;;  %v3273_v11 = vmul.f32 %v3272_v60, %v6570_v20  ;;  %v6633_v53 = vmul.f32 0.70710677, %v6615_v54  ;;  %v2937_v19 = vand.u32 2147483647, %v6603_v1 }
 0x298   : > { %v2616_v48 = vsel %vm2615_vm4, %v4334_v18, %v2612_v61  ;;  %v3284_v17 = vmul.f32 %v3283_v57, %v6570_v20  ;;  %v4336_v32 = vpop.eup %4335  ;;  %v3589_v43 = vmul.f32 %v3588_v40, %v6606_v10  ;;  %v3307_v63 = vmul.f32 2.1237322e-06, %v6628_v21 }
 0x299   : > { %v2621_v24 = vsel %vm6620_vm2, %v2620_v33, %v2616_v48  ;;  %v3600_v50 = vmul.f32 %v3599_v22, %v6606_v10  ;;  %v2929_v4 = vmul.f32 %v4336_v32, %v6603_v1  ;;  %v2939_v14 = vand.u32 2147483648, %v6603_v1  ;;  %v2256_v33 = vpop.f32.mrf.mxu0 }
 0x29a   : > { %v2622_v5 = vmul.f32 %v2621_v24, %v2597_v49  ;;  %vm2934_vm5 = vweird.f32 %v4336_v32  ;;  %v3285_v8 = vadd.f32 0.4994258, %v3284_v17  ;;  %v3590_v62 = vadd.f32 0.0036580483, %v3589_v43 }
 0x29b   : > { %v3601_v23 = vadd.f32 0.014752088, %v3600_v50  ;;  %v2930_v16 = vsub.f32 1.0, %v2929_v4  ;;  %v3274_v36 = vadd.f32 0.18741608, %v3273_v11  ;;  %v3625_v15 = vmul.f32 %v6633_v53, %v6633_v53 }
 0x29c   : > { %v4023_v55 = vclamps-f32 %v2622_v5, 1.0  ;;  %v3308_v18 = vadd.f32 0.00028619796, %v3307_v63  ;;  %v3286_v27 = vmul.f32 %v3285_v8, %v6570_v20  ;;  %v3591_v37 = vmul.f32 %v3590_v62, %v6606_v10 }
 0x29d   : > { %v3602_v49 = vmul.f32 %v3601_v23, %v6606_v10  ;;  %v2931_v51 = vmul.f32 %v4336_v32, %v2930_v16  ;;  %v3318_v41 = vmul.f32 3.8918573e-05, %v6628_v21  ;;  %vm2933_vm6 = vweird.f32 %v6603_v1 }
 0x29e   : > { %v3670_v38 = vadd.f32 1.0, %v4023_v55  ;;  %v3309_v3 = vmul.f32 %v3308_v18, %v6628_v21  ;;  %v6651_v35 = vadd.f32 1.0, %v3286_v27  ;;  %v3592_v7 = vadd.f32 0.05243302, %v3591_v37  ;;  %vm2935_vm7 = vmor %vm2933_vm6, %vm2934_vm5 }
 0x29f   : > { %v3603_v56 = vadd.f32 0.112945676, %v3602_v49  ;;  %v2932_v26 = vadd.f32 %v4336_v32, %v2931_v51  ;;  %v3275_v30 = vmul.f32 %v3274_v36, %v6570_v20  ;;  %vm2938_vm8 = vcmp.eq.f32.partialorder %v2937_v19, 8.507059e+37  ;;  %v2276_v19 = vpop.f32.mrf.mxu1 }
 0x2a0   : > { %v3702_v29 = vmul.f32 %v3670_v38, %v6580_v2  ;;  %v3310_v46 = vadd.f32 0.0036580483, %v3309_v3  ;;  %v2940_v31 = vor.u32 1.1754944e-38, %v2939_v14  ;;  %4337 = vrcp.f32 %v6651_v35 }
 0x2a1   : > { %v6657_v39 = vmin.f32 %v3625_v15, 16.0  ;;  %v2936_v1 = vsel %vm2935_vm7, %v4336_v32, %v2932_v26  ;;  %v3593_v45 = vmul.f32 %v3592_v7, %v6606_v10  ;;  %v3604_v28 = vmul.f32 %v3603_v56, %v6606_v10 }
 0x2a2   : > { %3734 = vst.msk [vmem:[%s5744_s12 + $0x28] sm:$0xff] %vm1940_vm3, %v3702_v29  ;;  %v3311_v2 = vmul.f32 %v3310_v46, %v6628_v21  ;;  %v2941_v44 = vsel %vm2938_vm8, %v2940_v31, %v2936_v1  ;;  %v3319_v20 = vadd.f32 0.001143296, %v3318_v41  ;;  %v2334_v12 = vmul.f32 0.5, %v6467_v34 }
 0x2a3   : > { %v2942_v25 = vmul.f32 %v2941_v44, %v2917_v13  ;;  %v3276_v59 = vadd.f32 1.1283791, %v3275_v30  ;;  %v3605_v61 = vadd.f32 0.4994258, %v3604_v28  ;;  %v6666_v60 = vmul.f32 0.5, %v6541_v0 }
 0x2a4   : > { %v3320_v57 = vmul.f32 %v3319_v20, %v6628_v21  ;;  %v3627_v40 = vmul.f32 2.1237322e-06, %v6657_v39  ;;  %v3638_v22 = vmul.f32 3.8918573e-05, %v6657_v39  ;;  %v3594_v11 = vadd.f32 0.18741608, %v3593_v45 }
 0x2a5   : > { %v4031_v48 = vclamps-f32 %v2942_v25, 1.0  ;;  %v3606_v17 = vmul.f32 %v3605_v61, %v6606_v10  ;;  %v3312_v32 = vadd.f32 0.05243302, %v3311_v2  ;;  %v6673_v50 = vadd.f32 %v6538_v52, %v2256_v33 }
 0x2a6   : > { %v4338_v24 = vpop.eup %4337  ;;  %v3321_v34 = vadd.f32 0.014752088, %v3320_v57  ;;  %v3628_v13 = vadd.f32 0.00028619796, %v3627_v40  ;;  %v3639_v43 = vadd.f32 0.001143296, %v3638_v22  ;;  %v3277_v63 = vmul.f32 %v3276_v59, %v6554_v6 }
 0x2a7   : > { %v3678_v0 = vadd.f32 1.0, %v4031_v48  ;;  %v3289_v5 = vmul.f32 %v4338_v24, %v6651_v35  ;;  %v3297_v4 = vand.u32 2147483647, %v6651_v35  ;;  %v3299_v14 = vand.u32 2147483648, %v6651_v35 }
 0x2a8   : > { %v6679_v8 = vadd.f32 1.0, %v3606_v17  ;;  %v3322_v62 = vmul.f32 %v3321_v34, %v6628_v21  ;;  %v3629_v23 = vmul.f32 %v3628_v13, %v6657_v39  ;;  %v3595_v36 = vmul.f32 %v3594_v11, %v6606_v10 }
 0x2a9   : > { %v3710_v55 = vmul.f32 %v3678_v0, %v2334_v12  ;;  %v3290_v16 = vsub.f32 1.0, %v3289_v5  ;;  %v3640_v6 = vmul.f32 %v3639_v43, %v6657_v39  ;;  %vm3293_vm12 = vweird.f32 %v6651_v35 }
 0x2aa   : > { %4339 = vrcp.f32 %v6679_v8  ;;  %v3313_v18 = vmul.f32 %v3312_v32, %v6628_v21  ;;  %v6689_v27 = vadd.f32 %v6538_v52, %v2276_v19  ;;  %vm3294_vm13 = vweird.f32 %v4338_v24 }
 0x2ab   : > { %3742 = vst.msk [vmem:[%s5744_s12 + $0x68] sm:$0xff] %vm1940_vm3, %v3710_v55  ;;  %v3291_v37 = vmul.f32 %v4338_v24, %v3290_v16  ;;  %v3323_v49 = vadd.f32 0.112945676, %v3322_v62  ;;  %v3630_v15 = vadd.f32 0.0036580483, %v3629_v23  ;;  %vm6693_vm9 = vcmp.eq.f32.partialorder %v3297_v4, 8.507059e+37  ;;  %vm3295_vm14 = vmor %vm3293_vm12, %vm3294_vm13 }
 0x2ac   : > { %v3300_v10 = vor.u32 1.1754944e-38, %v3299_v14  ;;  %v3641_v51 = vadd.f32 0.014752088, %v3640_v6  ;;  %v6698_v3 = vmul.f32 0.70710677, %v6673_v50  ;;  %v3619_v33 = vand.u32 2147483648, %v6679_v8 }
 0x2ad   : > { %v3292_v41 = vadd.f32 %v4338_v24, %v3291_v37  ;;  %v3596_v7 = vadd.f32 1.1283791, %v3595_v36  ;;  %v3324_v56 = vmul.f32 %v3323_v49, %v6628_v21  ;;  %v3631_v29 = vmul.f32 %v3630_v15, %v6657_v39 }
 0x2ae   : > { %v3314_v26 = vadd.f32 0.18741608, %v3313_v18  ;;  %v3642_v30 = vmul.f32 %v3641_v51, %v6657_v39  ;;  %v2625_v46 = vmul.f32 %v6698_v3, %v6698_v3  ;;  %v6708_v31 = vmul.f32 0.70710677, %v6689_v27 }
 0x2af   : > { %v3296_v1 = vsel %vm3295_vm14, %v4338_v24, %v3292_v41  ;;  %v3617_v45 = vand.u32 2147483647, %v6679_v8  ;;  %v3325_v28 = vadd.f32 0.4994258, %v3324_v56  ;;  %v3632_v2 = vadd.f32 0.05243302, %v3631_v29 }
 0x2b0   : > { %v4340_v44 = vpop.eup %4339  ;;  %v3301_v20 = vsel %vm6693_vm9, %v3300_v10, %v3296_v1  ;;  %v3643_v35 = vadd.f32 0.112945676, %v3642_v30  ;;  %v6713_v12 = vmin.f32 %v2625_v46, 16.0  ;;  %v2945_v25 = vmul.f32 %v6708_v31, %v6708_v31 }
 0x2b1   : > { %v3302_v59 = vmul.f32 %v3301_v20, %v3277_v63  ;;  %v3609_v61 = vmul.f32 %v4340_v44, %v6679_v8  ;;  %v3326_v57 = vmul.f32 %v3325_v28, %v6628_v21  ;;  %v3315_v40 = vmul.f32 %v3314_v26, %v6628_v21 }
 0x2b2   : > { %v3633_v22 = vmul.f32 %v3632_v2, %v6657_v39  ;;  %v3644_v48 = vmul.f32 %v3643_v35, %v6657_v39  ;;  %v2627_v11 = vmul.f32 2.1237322e-06, %v6713_v12  ;;  %v2638_v34 = vmul.f32 3.8918573e-05, %v6713_v12 }
 0x2b3   : > { %v4040_v17 = vclamps-f32 %v3302_v59, 1.0  ;;  %v3610_v32 = vsub.f32 1.0, %v3609_v61  ;;  %v6724_v24 = vadd.f32 1.0, %v3326_v57  ;;  %vm3614_vm15 = vweird.f32 %v4340_v44 }
 0x2b4   : > { %v3645_v13 = vadd.f32 0.4994258, %v3644_v48  ;;  %v2628_v43 = vadd.f32 0.00028619796, %v2627_v11  ;;  %v6727_v0 = vmin.f32 %v2945_v25, 16.0  ;;  %v3597_v4 = vmul.f32 %v3596_v7, %v6589_v58 }
 0x2b5   : > { %v3687_v63 = vadd.f32 1.0, %v4040_v17  ;;  %v3611_v5 = vmul.f32 %v4340_v44, %v3610_v32  ;;  %4341 = vrcp.f32 %v6724_v24  ;;  %v3634_v21 = vadd.f32 0.18741608, %v3633_v22 }
 0x2b6   : > { %vm3613_vm10 = vweird.f32 %v6679_v8  ;;  %vm6732_vm0 = vcmp.eq.f32.partialorder %v3617_v45, 8.507059e+37  ;;  %v3646_v14 = vmul.f32 %v3645_v13, %v6657_v39  ;;  %v2629_v55 = vmul.f32 %v2628_v43, %v6713_v12  ;;  %v2258_v8 = vpop.f32.mrf.mxu0 }
 0x2b7   : > { %v3719_v62 = vmul.f32 %v3687_v63, %v6666_v60  ;;  %v3612_v23 = vadd.f32 %v4340_v44, %v3611_v5  ;;  %v2639_v16 = vadd.f32 0.001143296, %v2638_v34  ;;  %vm3615_vm11 = vmor %vm3613_vm10, %vm3614_vm15  ;;  %v3620_v36 = vor.u32 1.1754944e-38, %v3619_v33 }
 0x2b8   : > { %v3316_v6 = vadd.f32 1.1283791, %v3315_v40  ;;  %v3337_v58 = vand.u32 2147483647, %v6724_v24  ;;  %v6741_v18 = vadd.f32 1.0, %v3646_v14  ;;  %v3635_v49 = vmul.f32 %v3634_v21, %v6657_v39 }
 0x2b9   : > { %3751 = vst.msk [vmem:[%s5744_s12 + $0xb0] sm:$0xff] %vm1940_vm3, %v3719_v62  ;;  %v3616_v37 = vsel %vm3615_vm11, %v4340_v44, %v3612_v23  ;;  %v2640_v60 = vmul.f32 %v2639_v16, %v6713_v12  ;;  %v2947_v15 = vmul.f32 2.1237322e-06, %v6727_v0  ;;  %v2630_v10 = vadd.f32 0.0036580483, %v2629_v55 }
 0x2ba   : > { %v3621_v38 = vsel %vm6732_vm0, %v3620_v36, %v3616_v37  ;;  %4343 = vrcp.f32 %v6741_v18  ;;  %v2351_v41 = vmul.f32 0.5, %v6574_v42  ;;  %v3339_v56 = vand.u32 2147483648, %v6724_v24 }
 0x2bb   : > { %v4342_v51 = vpop.eup %4341  ;;  %v3622_v7 = vmul.f32 %v3621_v38, %v3597_v4  ;;  %v6754_v29 = vadd.f32 %v6538_v52, %v2258_v8  ;;  %v3317_v39 = vmul.f32 %v3316_v6, %v6601_v9  ;;  %v2641_v30 = vadd.f32 0.014752088, %v2640_v60 }
 0x2bc   : > { %v3329_v26 = vmul.f32 %v4342_v51, %v6724_v24  ;;  %v2948_v46 = vadd.f32 0.00028619796, %v2947_v15  ;;  %vm3333_vm1 = vweird.f32 %v6724_v24  ;;  %vm6759_vm2 = vcmp.eq.f32.partialorder %v3337_v58, 8.507059e+37 }
 0x2bd   : > { %v4048_v1 = vclamps-f32 %v3622_v7, 1.0  ;;  %v3636_v42 = vadd.f32 1.1283791, %v3635_v49  ;;  %v2631_v2 = vmul.f32 %v2630_v10, %v6713_v12  ;;  %v2642_v44 = vmul.f32 %v2641_v30, %v6713_v12 }
 0x2be   : > { %v3330_v28 = vsub.f32 1.0, %v3329_v26  ;;  %v2958_v20 = vmul.f32 3.8918573e-05, %v6727_v0  ;;  %v3340_v35 = vor.u32 1.1754944e-38, %v3339_v56  ;;  %v2949_v25 = vmul.f32 %v2948_v46, %v6727_v0 }
 0x2bf   : > { %v3695_v9 = vadd.f32 1.0, %v4048_v1  ;;  %v6768_v59 = vmul.f32 0.70710677, %v6754_v29  ;;  %vm3334_vm4 = vweird.f32 %v4342_v51  ;;  %v2643_v57 = vadd.f32 0.112945676, %v2642_v44 }
 0x2c0   : > { %v4344_v61 = vpop.eup %4343  ;;  %v3331_v33 = vmul.f32 %v4342_v51, %v3330_v28  ;;  %v2959_v40 = vadd.f32 0.001143296, %v2958_v20  ;;  %v3637_v48 = vmul.f32 %v3636_v42, %v6633_v53  ;;  %vm3653_vm5 = vweird.f32 %v6741_v18  ;;  %vm3335_vm6 = vmor %vm3333_vm1, %vm3334_vm4 }
 0x2c1   : > { %v3727_v22 = vmul.f32 %v3695_v9, %v2351_v41  ;;  %v3649_v11 = vmul.f32 %v4344_v61, %v6741_v18  ;;  %v2632_v32 = vadd.f32 0.05243302, %v2631_v2  ;;  %v2644_v34 = vmul.f32 %v2643_v57, %v6713_v12 }
 0x2c2   : > { %v3332_v17 = vadd.f32 %v4342_v51, %v3331_v33  ;;  %v2960_v13 = vmul.f32 %v2959_v40, %v6727_v0  ;;  %v3657_v63 = vand.u32 2147483647, %v6741_v18  ;;  %v2950_v5 = vadd.f32 0.0036580483, %v2949_v25 }
 0x2c3   : > { %3759 = vst.msk [vmem:[%s5744_s12 + $0xf0] sm:$0xff] %vm1940_vm3, %v3727_v22  ;;  %v3650_v43 = vsub.f32 1.0, %v3649_v11  ;;  %v2665_v53 = vmul.f32 %v6768_v59, %v6768_v59  ;;  %v3659_v4 = vand.u32 2147483648, %v6741_v18  ;;  %v2645_v19 = vadd.f32 0.4994258, %v2644_v34 }
 0x2c4   : > { %v3336_v21 = vsel %vm3335_vm6, %v4342_v51, %v3332_v17  ;;  %v2961_v14 = vadd.f32 0.014752088, %v2960_v13  ;;  %vm3654_vm7 = vweird.f32 %v4344_v61  ;;  %v2633_v16 = vmul.f32 %v2632_v32, %v6713_v12  ;;  %v2278_v51 = vpop.f32.mrf.mxu1 }
 0x2c5   : > { %v3341_v62 = vsel %vm6759_vm2, %v3340_v35, %v3336_v21  ;;  %v3651_v23 = vmul.f32 %v4344_v61, %v3650_v43  ;;  %v6785_v55 = vmin.f32 %v2665_v53, 16.0  ;;  %v2646_v36 = vmul.f32 %v2645_v19, %v6713_v12  ;;  %vm3655_vm8 = vmor %vm3653_vm5, %vm3654_vm7 }
 0x2c6   : > { %v3342_v24 = vmul.f32 %v3341_v62, %v3317_v39  ;;  %v2962_v6 = vmul.f32 %v2961_v14, %v6727_v0  ;;  %v2951_v8 = vmul.f32 %v2950_v5, %v6727_v0  ;;  %v3660_v15 = vor.u32 1.1754944e-38, %v3659_v4 }
 0x2c7   : > { %v3652_v58 = vadd.f32 %v4344_v61, %v3651_v23  ;;  %v2667_v37 = vmul.f32 2.1237322e-06, %v6785_v55  ;;  %v2678_v49 = vmul.f32 3.8918573e-05, %v6785_v55  ;;  %v2647_v38 = vadd.f32 1.0, %v2646_v36 }
 0x2c8   : > { %v4041_v60 = vclamps-f32 %v3342_v24, 1.0  ;;  %v2963_v10 = vadd.f32 0.112945676, %v2962_v6  ;;  %vm3658_vm12 = vcmp.eq.f32.partialorder %v3657_v63, 8.507059e+37  ;;  %v2344_v39 = vmul.f32 0.5, %v6583_v47 }
 0x2c9   : > { %v3656_v41 = vsel %vm3655_vm8, %v4344_v61, %v3652_v58  ;;  %v2668_v7 = vadd.f32 0.00028619796, %v2667_v37  ;;  %v2679_v56 = vadd.f32 0.001143296, %v2678_v49  ;;  %4345 = vrcp.f32 %v2647_v38 }
 0x2ca   : > { %v3688_v26 = vadd.f32 1.0, %v4041_v60  ;;  %v3661_v30 = vsel %vm3658_vm12, %v3660_v15, %v3656_v41  ;;  %v2634_v1 = vadd.f32 0.18741608, %v2633_v16  ;;  %v2952_v45 = vadd.f32 0.05243302, %v2951_v8 }
 0x2cb   : > { %v3662_v46 = vmul.f32 %v3661_v30, %v3637_v48  ;;  %v6797_v18 = vadd.f32 %v6538_v52, %v2278_v51  ;;  %v2964_v28 = vmul.f32 %v2963_v10, %v6727_v0  ;;  %v2669_v2 = vmul.f32 %v2668_v7, %v6785_v55 }
 0x2cc   : > { %v3720_v42 = vmul.f32 %v3688_v26, %v2344_v39  ;;  %v2680_v44 = vmul.f32 %v2679_v56, %v6785_v55  ;;  %v2352_v47 = vmul.f32 0.5, %v6615_v54  ;;  %v2635_v61 = vmul.f32 %v2634_v1, %v6713_v12 }
 0x2cd   : > { %v4049_v20 = vclamps-f32 %v3662_v46, 1.0  ;;  %v2965_v9 = vadd.f32 0.4994258, %v2964_v28  ;;  %v2670_v35 = vadd.f32 0.0036580483, %v2669_v2  ;;  %v2953_v40 = vmul.f32 %v2952_v45, %v6727_v0 }
 0x2ce   : > { %3752 = vst.msk [vmem:[%s5744_s12 + $0xb8] sm:$0xff] %vm1940_vm3, %v3720_v42  ;;  %v2681_v52 = vadd.f32 0.014752088, %v2680_v44  ;;  %v6807_v33 = vmul.f32 0.70710677, %v6797_v18  ;;  %v2659_v5 = vand.u32 2147483648, %v2647_v38  ;;  %vm2653_vm9 = vweird.f32 %v2647_v38 }
 0x2cf   : > { %v3696_v25 = vadd.f32 1.0, %v4049_v20  ;;  %v4346_v57 = vpop.eup %4345  ;;  %v2966_v22 = vmul.f32 %v2965_v9, %v6727_v0  ;;  %v2671_v32 = vmul.f32 %v2670_v35, %v6785_v55  ;;  %v2636_v12 = vadd.f32 1.1283791, %v2635_v61 }
 0x2d0   : > { %v2649_v11 = vmul.f32 %v4346_v57, %v2647_v38  ;;  %v2682_v17 = vmul.f32 %v2681_v52, %v6785_v55  ;;  %v2985_v34 = vmul.f32 %v6807_v33, %v6807_v33  ;;  %v2657_v63 = vand.u32 2147483647, %v2647_v38 }
 0x2d1   : > { %v3728_v48 = vmul.f32 %v3696_v25, %v2352_v47  ;;  %v2967_v54 = vadd.f32 1.0, %v2966_v22  ;;  %v2954_v53 = vadd.f32 0.18741608, %v2953_v40  ;;  %vm2654_vm13 = vweird.f32 %v4346_v57 }
 0x2d2   : > { %v2650_v13 = vsub.f32 1.0, %v2649_v11  ;;  %v2683_v43 = vadd.f32 0.112945676, %v2682_v17  ;;  %v6818_v19 = vmin.f32 %v2985_v34, 16.0  ;;  %v2672_v14 = vadd.f32 0.05243302, %v2671_v32  ;;  %vm2655_vm14 = vmor %vm2653_vm9, %vm2654_vm13 }
 0x2d3   : > { %3760 = vst.msk [vmem:[%s5744_s12 + $0xf8] sm:$0xff] %vm1940_vm3, %v3728_v48  ;;  %4347 = vrcp.f32 %v2967_v54  ;;  %v2637_v16 = vmul.f32 %v2636_v12, %v6698_v3  ;;  %v2660_v36 = vor.u32 1.1754944e-38, %v2659_v5  ;;  %v2955_v6 = vmul.f32 %v2954_v53, %v6727_v0 }
 0x2d4   : > { %v2651_v21 = vmul.f32 %v4346_v57, %v2650_v13  ;;  %v2684_v4 = vmul.f32 %v2683_v43, %v6785_v55  ;;  %v2987_v24 = vmul.f32 2.1237322e-06, %v6818_v19  ;;  %v2998_v58 = vmul.f32 3.8918573e-05, %v6818_v19 }
 0x2d5   : > { %vm2658_vm15 = vcmp.eq.f32.partialorder %v2657_v63, 8.507059e+37  ;;  %v2673_v38 = vmul.f32 %v2672_v14, %v6785_v55  ;;  %v2327_v3 = vmul.f32 0.5, %v6673_v50  ;;  %v2956_v39 = vadd.f32 1.1283791, %v2955_v6 }
 0x2d6   : > { %v2652_v62 = vadd.f32 %v4346_v57, %v2651_v21  ;;  %v2685_v23 = vadd.f32 0.4994258, %v2684_v4  ;;  %v2988_v49 = vadd.f32 0.00028619796, %v2987_v24  ;;  %v2999_v10 = vadd.f32 0.001143296, %v2998_v58 }
 0x2d7   : > { %v2977_v46 = vand.u32 2147483647, %v2967_v54  ;;  %v2979_v1 = vand.u32 2147483648, %v2967_v54  ;;  %v2674_v45 = vadd.f32 0.18741608, %v2673_v38  ;;  %vm2973_vm0 = vweird.f32 %v2967_v54 }
 0x2d8   : > { %v2656_v8 = vsel %vm2655_vm14, %v4346_v57, %v2652_v62  ;;  %v2686_v37 = vmul.f32 %v2685_v23, %v6785_v55  ;;  %v3000_v56 = vmul.f32 %v2999_v10, %v6818_v19  ;;  %v2989_v30 = vmul.f32 %v2988_v49, %v6818_v19 }
 0x2d9   : > { %v4348_v60 = vpop.eup %4347  ;;  %v2661_v15 = vsel %vm2658_vm15, %v2660_v36, %v2656_v8  ;;  %v2957_v9 = vmul.f32 %v2956_v39, %v6708_v31  ;;  %v2980_v35 = vor.u32 1.1754944e-38, %v2979_v1  ;;  %vm2978_vm1 = vcmp.eq.f32.partialorder %v2977_v46, 8.507059e+37 }
 0x2da   : > { %v2662_v51 = vmul.f32 %v2661_v15, %v2637_v16  ;;  %v2969_v41 = vmul.f32 %v4348_v60, %v2967_v54  ;;  %v2687_v7 = vadd.f32 1.0, %v2686_v37  ;;  %vm2974_vm10 = vweird.f32 %v4348_v60 }
 0x2db   : > { %v3001_v2 = vadd.f32 0.014752088, %v3000_v56  ;;  %v2990_v20 = vadd.f32 0.0036580483, %v2989_v30  ;;  %vm2975_vm11 = vmor %vm2973_vm0, %vm2974_vm10  ;;  %v2675_v61 = vmul.f32 %v2674_v45, %v6785_v55  ;;  %v2335_v34 = vmul.f32 0.5, %v6689_v27 }
 0x2dc   : > { %v4024_v0 = vclamps-f32 %v2662_v51, 1.0  ;;  %v2970_v26 = vsub.f32 1.0, %v2969_v41  ;;  %4349 = vrcp.f32 %v2687_v7  ;;  %v2697_v12 = vand.u32 2147483647, %v2687_v7 }
 0x2dd   : > { %v3002_v47 = vmul.f32 %v3001_v2, %v6818_v19  ;;  %v2991_v11 = vmul.f32 %v2990_v20, %v6818_v19  ;;  %v2676_v32 = vadd.f32 1.1283791, %v2675_v61  ;;  %v2699_v13 = vand.u32 2147483648, %v2687_v7 }
 0x2de   : > { %v3671_v42 = vadd.f32 1.0, %v4024_v0  ;;  %v2971_v28 = vmul.f32 %v4348_v60, %v2970_v26  ;;  %vm2693_vm4 = vweird.f32 %v2687_v7  ;;  %vm2698_vm6 = vcmp.eq.f32.partialorder %v2697_v12, 8.507059e+37 }
 0x2df   : > { %v3003_v52 = vadd.f32 0.112945676, %v3002_v47  ;;  %v2992_v5 = vadd.f32 0.05243302, %v2991_v11  ;;  %v2700_v14 = vor.u32 1.1754944e-38, %v2699_v13  ;;  %v2677_v27 = vmul.f32 %v2676_v32, %v6768_v59 }
 0x2e0   : > { %v3703_v44 = vmul.f32 %v3671_v42, %v2327_v3  ;;  %v2972_v50 = vadd.f32 %v4348_v60, %v2971_v28  ;;  %v2328_v8 = vmul.f32 0.5, %v6754_v29  ;;  %v2336_v30 = vmul.f32 0.5, %v6797_v18 }
 0x2e1   : > { %v3004_v17 = vmul.f32 %v3003_v52, %v6818_v19  ;;  %v2993_v24 = vmul.f32 %v2992_v5, %v6818_v19 }
 0x2e2   : > { %3735 = vst.msk [vmem:[%s5744_s12 + $0x30] sm:$0xff] %vm1940_vm3, %v3703_v44  ;;  %v2976_v25 = vsel %vm2975_vm11, %v4348_v60, %v2972_v50  ;;  %v4350_v57 = vpop.eup %4349 }
 0x2e3   : > { %v2981_v40 = vsel %vm2978_vm1, %v2980_v35, %v2976_v25  ;;  %v2689_v48 = vmul.f32 %v4350_v57, %v2687_v7  ;;  %v3005_v43 = vadd.f32 0.4994258, %v3004_v17  ;;  %vm2694_vm2 = vweird.f32 %v4350_v57 }
 0x2e4   : > { %v2982_v22 = vmul.f32 %v2981_v40, %v2957_v9  ;;  %vm2695_vm5 = vmor %vm2693_vm4, %vm2694_vm2  ;;  %v2994_v58 = vadd.f32 0.18741608, %v2993_v24 }
 0x2e5   : > { %v2690_v31 = vsub.f32 1.0, %v2689_v48  ;;  %v3006_v53 = vmul.f32 %v3005_v43, %v6818_v19 }
 0x2e6   : > { %v4032_v54 = vclamps-f32 %v2982_v22, 1.0  ;;  %v2995_v15 = vmul.f32 %v2994_v58, %v6818_v19 }
 0x2e7   : > { %v2691_v55 = vmul.f32 %v4350_v57, %v2690_v31  ;;  %v3007_v62 = vadd.f32 1.0, %v3006_v53 }
 0x2e8   : > { %v3679_v63 = vadd.f32 1.0, %v4032_v54  ;;  %v2996_v51 = vadd.f32 1.1283791, %v2995_v15 }
 0x2e9   : > { %v2692_v4 = vadd.f32 %v4350_v57, %v2691_v55  ;;  %4351 = vrcp.f32 %v3007_v62  ;;  %v3019_v10 = vand.u32 2147483648, %v3007_v62  ;;  %v3017_v3 = vand.u32 2147483647, %v3007_v62 }
 0x2ea   : > { %v3711_v21 = vmul.f32 %v3679_v63, %v2335_v34  ;;  %vm3013_vm8 = vweird.f32 %v3007_v62  ;;  %v2997_v29 = vmul.f32 %v2996_v51, %v6807_v33 }
 0x2eb   : > { %v2696_v23 = vsel %vm2695_vm5, %v4350_v57, %v2692_v4  ;;  %v3020_v56 = vor.u32 1.1754944e-38, %v3019_v10  ;;  %vm3018_vm13 = vcmp.eq.f32.partialorder %v3017_v3, 8.507059e+37 }
 0x2ec   : > { %3743 = vst.msk [vmem:[%s5744_s12 + $0x70] sm:$0xff] %vm1940_vm3, %v3711_v21  ;;  %v2701_v16 = vsel %vm2698_vm6, %v2700_v14, %v2696_v23 }
 0x2ed   : > { %v2702_v36 = vmul.f32 %v2701_v16, %v2677_v27 }
 0x2ef   : > { %v4025_v6 = vclamps-f32 %v2702_v36, 1.0  ;;  %v4352_v49 = vpop.eup %4351 }
 0x2f0   : > { %v3009_v38 = vmul.f32 %v4352_v49, %v3007_v62  ;;  %vm3014_vm7 = vweird.f32 %v4352_v49 }
 0x2f1   : > { %v3672_v37 = vadd.f32 1.0, %v4025_v6  ;;  %vm3015_vm12 = vmor %vm3013_vm8, %vm3014_vm7 }
 0x2f2   : > { %v3010_v59 = vsub.f32 1.0, %v3009_v38 }
 0x2f3   : > { %v3704_v60 = vmul.f32 %v3672_v37, %v2328_v8 }
 0x2f4   : > { %v3011_v41 = vmul.f32 %v4352_v49, %v3010_v59 }
 0x2f5   : > { %3736 = vst.msk [vmem:[%s5744_s12 + $0x38] sm:$0xff] %vm1940_vm3, %v3704_v60 }
 0x2f6   : > { %v3012_v7 = vadd.f32 %v4352_v49, %v3011_v41 }
 0x2f8   : > { %v3016_v0 = vsel %vm3015_vm12, %v4352_v49, %v3012_v7 }
 0x2f9   : > { %v3021_v39 = vsel %vm3018_vm13, %v3020_v56, %v3016_v0 }
 0x2fa   : > { %v3022_v19 = vmul.f32 %v3021_v39, %v2997_v29 }
 0x2fc   : > { %v4033_v26 = vclamps-f32 %v3022_v19, 1.0 }
 0x2fe   : > { %v3680_v46 = vadd.f32 1.0, %v4033_v26 }
 0x300   : > { %v3712_v1 = vmul.f32 %v3680_v46, %v2336_v30 }
 0x302   : > { %3744 = vst.msk [vmem:[%s5744_s12 + $0x78] sm:$0xff] %vm1940_vm3, %v3712_v1 }
 0x303 PF: > { %s13_s14 = sadd.s32 1, %s4455_s14   ;;  %s6903_s12 = smov %s4451_s13 }
 0x304   : > { %p10_p5 = scmp.ge.s32.totalorder %s13_s14, 4   ;;  %s6904_s13 = smov %s6906_s15 }
 0x306   :  { %12 = sbr.rel (!%p10_p5) target bundleno = 2 (0x2), region = 65 }

</bundles_post_ra>
